<compile_context>
chip_gen: v5e
topology: v5e:2x2
jax: 0.10.0
libtpu: 0.0.40
codegen_flags: <defaults>
</compile_context>

<pallas_src>
import jax
import jax.numpy as jnp
from jax.experimental import pallas as pl
from jax.experimental.pallas import tpu as pltpu


def scale_fold_matmul_kernel(x_ref, s_ref, w_ref, o_ref):
    # x_ref: (Cin, HW)        f32  -- one image, channel-major (native NCHW slab)
    # s_ref: (1,  Cin)        f32  -- lane-dense per-channel scale row
    # w_ref: (Cout_blk, Cin)  bf16 -- pre-cast 1x1 conv weight block
    # o_ref: (Cout_blk, HW)   f32  -- already NCHW layout for this image
    #
    # Fold the per-channel scale into the weight rows (broadcasts along the
    # sublane axis of the weight tile; cheap VPU work hidden under the DMAs),
    # then the 1x1 conv is a plain matmul on the MXU with f32 accumulation.
    ws = (w_ref[...].astype(jnp.float32) * s_ref[...]).astype(jnp.bfloat16)
    o_ref[...] = jnp.dot(ws, x_ref[...].astype(jnp.bfloat16),
                         preferred_element_type=jnp.float32)


def prepare_conv_weight(weight_oihw):
    """One-time parameter prep: (Cout, Cin, 1, 1) f32 -> (Cout, Cin) bf16."""
    Cout, Cin = weight_oihw.shape[0], weight_oihw.shape[1]
    return weight_oihw.reshape(Cout, Cin).astype(jnp.bfloat16)


def _cout_blocks_for_device(cout):
    """Split Cout across grid steps only on v7x (2 TensorCores per chip)."""
    try:
        kind = jax.devices()[0].device_kind.lower()
    except Exception:
        return 1
    blocks = 2 if ("v7" in kind or "7x" in kind) else 1
    if cout % blocks != 0 or (cout // blocks) % 8 != 0:
        return 1
    return blocks


def mul_conv1x1(x_nchw, scale_nc11, w2d_bf16):
    """x350 = x344 * x349 ; x351 = Conv2d(Cin, Cout, 1, bias=False)(x350).

    x_nchw:     (N, Cin, H, W) f32
    scale_nc11: (1, Cin, 1, 1) f32   per-channel SE gate (batch dim must be 1)
    w2d_bf16:   (Cout, Cin)    bf16  pre-cast once via prepare_conv_weight()
    """
    N, Cin, H, W = x_nchw.shape
    Cout = w2d_bf16.shape[0]
    HW = H * W
    assert scale_nc11.shape == (1, Cin, 1, 1), "per-sample scale not supported"
    assert w2d_bf16.shape == (Cout, Cin) and w2d_bf16.dtype == jnp.bfloat16

    G = _cout_blocks_for_device(Cout)
    cb = Cout // G

    # Glue (plain JAX): pure reshapes only, no transposes / layout copies.
    x3d = x_nchw.reshape(N, Cin, HW)        # contiguous view of NCHW
    s2d = scale_nc11.reshape(1, Cin)        # lane-dense scale row

    cost = pl.CostEstimate(
        flops=2 * N * Cout * Cin * HW,
        transcendentals=0,
        bytes_accessed=(x3d.size * 4 + s2d.size * 4 + w2d_bf16.size * 2
                        + N * Cout * HW * 4),
    )

    out3d = pl.pallas_call(
        scale_fold_matmul_kernel,
        out_shape=jax.ShapeDtypeStruct((N, Cout, HW), jnp.float32),
        grid=(N, G),
        in_specs=[
            pl.BlockSpec((None, Cin, HW), lambda b, g: (b, 0, 0)),  # one image
            pl.BlockSpec((1, Cin),        lambda b, g: (0, 0)),     # scale: resident
            pl.BlockSpec((cb, Cin),       lambda b, g: (g, 0)),     # weight row-block
        ],
        out_specs=pl.BlockSpec((None, cb, HW), lambda b, g: (b, g, 0)),
        compiler_params=pltpu.CompilerParams(
            dimension_semantics=("parallel", "parallel")),
        cost_estimate=cost,
    )(x3d, s2d, w2d_bf16)

    # (N, Cout, HW) is already channel-major -> plain reshape back to NCHW.
    return out3d.reshape(N, Cout, H, W)


if __name__ == "__main__":
    key = jax.random.PRNGKey(0)
    k1, k2, k3 = jax.random.split(key, 3)

    # Shapes implied by the module's forward (already small: ~1.3 MB total).
    N, Cin, H, W, Cout = 1, 1632, 7, 7, 272
    x344 = jax.random.normal(k1, (N, Cin, H, W), dtype=jnp.float32)
    x349 = jax.random.normal(k2, (1, Cin, 1, 1), dtype=jnp.float32)
    # Deterministic conv weight (Cout, Cin, 1, 1), bias=False.
    conv_w = jax.random.normal(k3, (Cout, Cin, 1, 1), dtype=jnp.float32) * 0.02

    # One-time parameter prep (hoisted bf16 cast of the conv weight).
    w2d_bf16 = jax.block_until_ready(prepare_conv_weight(conv_w))

    fwd = jax.jit(mul_conv1x1)
    out = jax.block_until_ready(fwd(x344, x349, w2d_bf16))

    # Reference in plain JAX at highest precision (same math: scale then 1x1 conv).
    ref = jnp.einsum('nchw,oc->nohw', x344 * x349, conv_w.reshape(Cout, Cin),
                     precision=jax.lax.Precision.HIGHEST)
    assert out.shape == (N, Cout, H, W)

    # bf16 operands on the MXU (f32 accumulation) over a K=1632 contraction:
    # compare with a relative-error metric so the self-test is robust.
    abs_err = float(jnp.max(jnp.abs(out - ref)))
    rel_err = abs_err / (float(jnp.max(jnp.abs(ref))) + 1e-12)
    assert rel_err < 2e-2, f"max abs err={abs_err:.3e}, rel err={rel_err:.3e}"

    print("KERNEL_OK")
</pallas_src>

<mosaic_0001>
module attributes {stable_mosaic.version = 11 : i64} {
  func.func @scale_fold_matmul_kernel(%arg0: i32, %arg1: i32, %arg2: memref<1x1632x49xf32, #tpu.memory_space<vmem>>, %arg3: memref<1x1632xf32, #tpu.memory_space<vmem>>, %arg4: memref<272x1632xbf16, #tpu.memory_space<vmem>>, %arg5: memref<1x272x49xf32, #tpu.memory_space<vmem>>) attributes {dimension_semantics = [#tpu.dimension_semantics<parallel>, #tpu.dimension_semantics<parallel>], iteration_bounds = array<i64: 1, 1>, scalar_prefetch = 0 : i64, scratch_operands = 0 : i64, tpu.core_type = #tpu.core_type<tc>, window_params = [{transform_indices = @transform_0, window_bounds = array<i64: 1, 1632, 49>}, {pipeline_mode = #tpu.pipeline_mode<synchronous>, transform_indices = @transform_1, window_bounds = array<i64: 1, 1632>}, {transform_indices = @transform_2, window_bounds = array<i64: 272, 1632>}, {transform_indices = @transform_3, window_bounds = array<i64: 1, 272, 49>}]} {
    %c0 = arith.constant 0 : index
    %c0_0 = arith.constant 0 : index
    %0 = vector.load %arg4[%c0, %c0_0] : memref<272x1632xbf16, #tpu.memory_space<vmem>>, vector<272x1632xbf16>
    %1 = arith.extf %0 : vector<272x1632xbf16> to vector<272x1632xf32>
    %c0_1 = arith.constant 0 : index
    %c0_2 = arith.constant 0 : index
    %2 = vector.load %arg3[%c0_1, %c0_2] : memref<1x1632xf32, #tpu.memory_space<vmem>>, vector<1x1632xf32>
    %3 = vector.broadcast %2 : vector<1x1632xf32> to vector<272x1632xf32>
    %4 = arith.mulf %1, %3 : vector<272x1632xf32>
    %5 = arith.truncf %4 : vector<272x1632xf32> to vector<272x1632xbf16>
    %c0_3 = arith.constant 0 : index
    %c0_4 = arith.constant 0 : index
    %c0_5 = arith.constant 0 : index
    %6 = vector.load %arg2[%c0_3, %c0_4, %c0_5] : memref<1x1632x49xf32, #tpu.memory_space<vmem>>, vector<1x1632x49xf32>
    %7 = vector.shape_cast %6 : vector<1x1632x49xf32> to vector<1632x49xf32>
    %8 = arith.truncf %7 : vector<1632x49xf32> to vector<1632x49xbf16>
    %cst = arith.constant dense<0.000000e+00> : vector<272x49xf32>
    %9 = tpu.matmul %5, %8, %cst {dimension_numbers = #tpu.dot_dimension_numbers<[1], [0], [0], [1], [0, 0, 1, 1], [], []>} : vector<272x1632xbf16>, vector<1632x49xbf16>, vector<272x49xf32> -> vector<272x49xf32>
    %c0_6 = arith.constant 0 : index
    %c0_7 = arith.constant 0 : index
    %c0_8 = arith.constant 0 : index
    %10 = vector.load %arg5[%c0_6, %c0_7, %c0_8] : memref<1x272x49xf32, #tpu.memory_space<vmem>>, vector<1x272x49xf32>
    %11 = vector.shape_cast %10 : vector<1x272x49xf32> to vector<272x49xf32>
    %12 = vector.shape_cast %9 : vector<272x49xf32> to vector<1x272x49xf32>
    tpu.vector_store %arg5[%c0_6, %c0_7, %c0_8], %12 {strides = array<i32>} : memref<1x272x49xf32, #tpu.memory_space<vmem>>, vector<1x272x49xf32>,
    return
  }
  func.func @transform_0(%arg0: i32, %arg1: i32) -> (i32, i32, i32) {
    %c0_i32 = arith.constant 0 : i32
    %c0_i32_0 = arith.constant 0 : i32
    %c0_i32_1 = arith.constant 0 : i32
    return %arg0, %c0_i32, %c0_i32_0 : i32, i32, i32
  }
  func.func @transform_1(%arg0: i32, %arg1: i32) -> (i32, i32) {
    %c0_i32 = arith.constant 0 : i32
    %c0_i32_0 = arith.constant 0 : i32
    %c0_i32_1 = arith.constant 0 : i32
    return %c0_i32, %c0_i32_0 : i32, i32
  }
  func.func @transform_2(%arg0: i32, %arg1: i32) -> (i32, i32) {
    %c0_i32 = arith.constant 0 : i32
    %c0_i32_0 = arith.constant 0 : i32
    return %arg1, %c0_i32 : i32, i32
  }
  func.func @transform_3(%arg0: i32, %arg1: i32) -> (i32, i32, i32) {
    %c0_i32 = arith.constant 0 : i32
    %c0_i32_0 = arith.constant 0 : i32
    return %arg0, %arg1, %c0_i32 : i32, i32, i32
  }
}

</mosaic_0001>

<bundles_post_ra>
// kernel: mul_conv1x1.1
= control target key start
LH: loop header
LB: loop body
LE: loop exit
PB: predicated region body
PF: predicated region fallthrough
CT: control target
= control target key end

     0   :  { %vm1694_vm0 = vcmask 785408   ;;  %vm2968_vm1 = vcmask 400384   ;;  %s6589_s0 = inlined_call_operand.vmem [shape: f32[1,1632,49], index: 0, kind: input, shape index: {}]   ;;  %s6590_s2 = inlined_call_operand.vmem [shape: bf16[272,1632], index: 2, kind: input, shape index: {}]   ;;  %s6591_s1 = inlined_call_operand.vmem [shape: f32[1,1632], index: 1, kind: input, shape index: {}]   ;;  %s6592_s3 = inlined_call_operand.vmem [shape: f32[1,272,49], index: 3, kind: output, shape index: {}]  }
   0x1   :  { %v1402_v0 = vld [vmem:[%s6589_s0 + $0x70] sm:$0xff]  ;;  %v1403_v1 = vld [vmem:[%s6589_s0 + $0x78] sm:$0xff]  ;;  %v1400_v2 = vld [vmem:[%s6589_s0 + $0x60] sm:$0xff] }
   0x2   :  { %v1599_v3 = vpack.c.bf16 %v1403_v1, %v1402_v0  ;;  %v1401_v4 = vld [vmem:[%s6589_s0 + $0x68] sm:$0xff]  ;;  %v1398_v6 = vld [vmem:[%s6589_s0 + $0x50] sm:$0xff]  ;;  %v1399_v7 = vld [vmem:[%s6589_s0 + $0x58] sm:$0xff] }
   0x3   :  { %v1598_v5 = vpack.c.bf16 %v1401_v4, %v1400_v2  ;;  %v1597_v8 = vpack.c.bf16 %v1399_v7, %v1398_v6  ;;  %v1396_v9 = vld [vmem:[%s6589_s0 + $0x40] sm:$0xff]  ;;  %v1397_v10 = vld [vmem:[%s6589_s0 + $0x48] sm:$0xff]  ;;  %v1394_v12 = vld [vmem:[%s6589_s0 + $0x30] sm:$0xff] }
   0x4   :  { %1746 = vmatpush.bf16.msra.mxu0 %v1599_v3  ;;  %3024 = vmatpush.bf16.msra.mxu1 %v1599_v3  ;;  %v1596_v11 = vpack.c.bf16 %v1397_v10, %v1396_v9  ;;  %v1395_v13 = vld [vmem:[%s6589_s0 + $0x38] sm:$0xff]  ;;  %v1392_v15 = vld [vmem:[%s6589_s0 + $0x20] sm:$0xff]  ;;  %v1393_v16 = vld [vmem:[%s6589_s0 + $0x28] sm:$0xff] }
   0x5   :  { %3026 = vmatpush.bf16.msra.mxu3 %v1599_v3  ;;  %3025 = vmatpush.bf16.msra.mxu2 %v1599_v3  ;;  %v1595_v14 = vpack.c.bf16 %v1395_v13, %v1394_v12  ;;  %v1390_v17 = vld [vmem:[%s6589_s0 + $0x10] sm:$0xff]  ;;  %v3194_v18 = vld [vmem:[%s6590_s2] sm:$0xff]  ;;  %v1594_v20 = vpack.c.bf16 %v1393_v16, %v1392_v15  ;;  %v3209_v22 = vld [vmem:[%s6590_s2 + $0x208] sm:$0xff] }
   0x6   :  { %v3199_v19 = vld [vmem:[%s6590_s2 + $0x34] sm:$0xff]  ;;  %v3204_v21 = vld [vmem:[%s6591_s1] sm:$0xff]  ;;  %v253_v27 = vunpack.c.l.bf16 %v3194_v18  ;;  %v383_v30 = vunpack.c.l.bf16 %v3209_v22  ;;  %v1389_v36 = vld [vmem:[%s6589_s0 + $0x8] sm:$0xff] }
   0x7   :  { %v3214_v23 = vld [vmem:[%s6590_s2 + $0x23c] sm:$0xff]  ;;  %v190_v26 = vld [vmem:[%s6590_s2 + $0x514] sm:$0xff]  ;;  %v266_v28 = vunpack.c.l.bf16 %v3199_v19  ;;  %v3228_v29 = vperm.slane %v3204_v21, 0  ;;  %v1417_v55 = vld [vmem:[%s6589_s0 + $0xe8] sm:$0xff] }
   0x8   :  { %1747 = vmatpush.bf16.msra.mxu0 %v1598_v5  ;;  %3027 = vmatpush.bf16.msra.mxu1 %v1598_v5  ;;  %v1391_v24 = vld [vmem:[%s6589_s0 + $0x18] sm:$0xff]  ;;  %v183_v25 = vld [vmem:[%s6590_s2 + $0x4e0] sm:$0xff]  ;;  %v396_v31 = vunpack.c.l.bf16 %v3214_v23  ;;  %v578_v34 = vunpack.c.l.bf16 %v190_v26  ;;  %v1450_v37 = vld [vmem:[%s6589_s0 + $0x1f0] sm:$0xff] }
   0x9   :  { %3029 = vmatpush.bf16.msra.mxu3 %v1598_v5  ;;  %3028 = vmatpush.bf16.msra.mxu2 %v1598_v5  ;;  %v1593_v32 = vpack.c.bf16 %v1391_v24, %v1390_v17  ;;  %v565_v33 = vunpack.c.l.bf16 %v183_v25  ;;  %v1388_v35 = vld [vmem:[%s6589_s0] sm:$0xff]  ;;  %v1418_v38 = vld [vmem:[%s6589_s0 + $0xf0] sm:$0xff]  ;;  %v1419_v39 = vld [vmem:[%s6589_s0 + $0xf8] sm:$0xff]  ;;  %v725_v40 = vmul.f32 %v3228_v29, %v253_v27  ;;  %v738_v41 = vmul.f32 %v3228_v29, %v266_v28 }
   0xa   :  { %v855_v42 = vmul.f32 %v3228_v29, %v383_v30  ;;  %v868_v43 = vmul.f32 %v3228_v29, %v396_v31  ;;  %v1451_v44 = vld [vmem:[%s6589_s0 + $0x1f8] sm:$0xff]  ;;  %v1466_v45 = vld [vmem:[%s6589_s0 + $0x270] sm:$0xff]  ;;  %v1592_v47 = vpack.c.bf16 %v1389_v36, %v1388_v35  ;;  %v1050_v49 = vmul.f32 %v3228_v29, %v578_v34  ;;  %v1448_v53 = vld [vmem:[%s6589_s0 + $0x1e0] sm:$0xff] }
   0xb   :  { %v1467_v46 = vld [vmem:[%s6589_s0 + $0x278] sm:$0xff]  ;;  %v1037_v48 = vmul.f32 %v3228_v29, %v565_v33  ;;  %v1607_v50 = vpack.c.bf16 %v1419_v39, %v1418_v38  ;;  %v1623_v51 = vpack.c.bf16 %v1451_v44, %v1450_v37  ;;  %v1416_v54 = vld [vmem:[%s6589_s0 + $0xe0] sm:$0xff]  ;;  %v1167_v56 = vpack.c.bf16 %v738_v41, %v725_v40  ;;  %v1449_v58 = vld [vmem:[%s6589_s0 + $0x1e8] sm:$0xff] }
   0xc   :  { %1748 = vmatpush.bf16.msra.mxu0 %v1597_v8  ;;  %3030 = vmatpush.bf16.msra.mxu1 %v1597_v8  ;;  %v1631_v52 = vpack.c.bf16 %v1467_v46, %v1466_v45  ;;  %v1232_v57 = vpack.c.bf16 %v868_v43, %v855_v42  ;;  %v1464_v59 = vld [vmem:[%s6589_s0 + $0x260] sm:$0xff]  ;;  %v1465_v60 = vld [vmem:[%s6589_s0 + $0x268] sm:$0xff]  ;;  %v1606_v62 = vpack.c.bf16 %v1417_v55, %v1416_v54  ;;  %v1446_v0 = vld [vmem:[%s6589_s0 + $0x1d0] sm:$0xff] }
   0xd   :  { %3032 = vmatpush.bf16.msra.mxu3 %v1597_v8  ;;  %3031 = vmatpush.bf16.msra.mxu2 %v1597_v8  ;;  %v1323_v61 = vpack.c.bf16 %v1050_v49, %v1037_v48  ;;  %v3283_v63 = vld [vmem:[%s6590_s2 + $0x68] sm:$0xff]  ;;  %v1447_v1 = vld [vmem:[%s6589_s0 + $0x1d8] sm:$0xff]  ;;  %v1622_v2 = vpack.c.bf16 %v1449_v58, %v1448_v53  ;;  %v3299_v4 = vld [vmem:[%s6590_s2 + $0x270] sm:$0xff]  ;;  %v1630_v5 = vpack.c.bf16 %v1465_v60, %v1464_v59 }
   0xe   :  { %v3294_v3 = vld [vmem:[%s6590_s2 + $0x9c] sm:$0xff]  ;;  %v1414_v6 = vld [vmem:[%s6589_s0 + $0xd0] sm:$0xff]  ;;  %v3322_v12 = vld [vmem:[%s6590_s2 + $0x2a4] sm:$0xff]  ;;  %v1621_v17 = vpack.c.bf16 %v1447_v1, %v1446_v0  ;;  %v279_v28 = vunpack.c.l.bf16 %v3283_v63  ;;  %v409_v37 = vunpack.c.l.bf16 %v3299_v4 }
   0xf   :  { %v1415_v7 = vld [vmem:[%s6589_s0 + $0xd8] sm:$0xff]  ;;  %v1462_v8 = vld [vmem:[%s6589_s0 + $0x250] sm:$0xff]  ;;  %v197_v13 = vld [vmem:[%s6590_s2 + $0x548] sm:$0xff]  ;;  %v292_v36 = vunpack.c.l.bf16 %v3294_v3  ;;  %v422_v38 = vunpack.c.l.bf16 %v3322_v12 }
  0x10   :  { %1749 = vmatpush.bf16.msra.mxu0 %v1596_v11  ;;  %3033 = vmatpush.bf16.msra.mxu1 %v1596_v11  ;;  %v1463_v9 = vld [vmem:[%s6589_s0 + $0x258] sm:$0xff]  ;;  %v155_v10 = vld [vmem:[%s6590_s2 + $0x410] sm:$0xff]  ;;  %v1444_v24 = vld [vmem:[%s6589_s0 + $0x1c0] sm:$0xff]  ;;  %v591_v43 = vunpack.c.l.bf16 %v197_v13  ;;  %v751_v54 = vmul.f32 %v3228_v29, %v279_v28 }
  0x11   :  { %3035 = vmatpush.bf16.msra.mxu3 %v1596_v11  ;;  %3034 = vmatpush.bf16.msra.mxu2 %v1596_v11  ;;  %v162_v11 = vld [vmem:[%s6590_s2 + $0x444] sm:$0xff]  ;;  %v513_v15 = vunpack.c.l.bf16 %v155_v10  ;;  %v1434_v26 = vld [vmem:[%s6589_s0 + $0x170] sm:$0xff]  ;;  %v1435_v27 = vld [vmem:[%s6589_s0 + $0x178] sm:$0xff]  ;;  %v1629_v30 = vpack.c.bf16 %v1463_v9, %v1462_v8  ;;  %v764_v55 = vmul.f32 %v3228_v29, %v292_v36 }
  0x12   :  { %v526_v16 = vunpack.c.l.bf16 %v162_v11  ;;  %v1445_v25 = vld [vmem:[%s6589_s0 + $0x1c8] sm:$0xff]  ;;  %v1412_v31 = vld [vmem:[%s6589_s0 + $0xc0] sm:$0xff]  ;;  %v1615_v40 = vpack.c.bf16 %v1435_v27, %v1434_v26  ;;  %v1431_v53 = vld [vmem:[%s6589_s0 + $0x158] sm:$0xff]  ;;  %v1063_v60 = vmul.f32 %v3228_v29, %v591_v43 }
  0x13   :  { %v985_v33 = vmul.f32 %v3228_v29, %v513_v15  ;;  %v1460_v35 = vld [vmem:[%s6589_s0 + $0x240] sm:$0xff]  ;;  %v1461_v39 = vld [vmem:[%s6589_s0 + $0x248] sm:$0xff]  ;;  %v1620_v49 = vpack.c.bf16 %v1445_v25, %v1444_v24  ;;  %v1442_v58 = vld [vmem:[%s6589_s0 + $0x1b0] sm:$0xff] }
  0x14   :  { %1750 = vmatpush.bf16.msra.mxu0 %v1595_v14  ;;  %3036 = vmatpush.bf16.msra.mxu1 %v1595_v14  ;;  %v998_v34 = vmul.f32 %v3228_v29, %v526_v16  ;;  %v1432_v41 = vld [vmem:[%s6589_s0 + $0x160] sm:$0xff]  ;;  %v1433_v42 = vld [vmem:[%s6589_s0 + $0x168] sm:$0xff]  ;;  %v1443_v59 = vld [vmem:[%s6589_s0 + $0x1b8] sm:$0xff] }
  0x15   :  { %3038 = vmatpush.bf16.msra.mxu3 %v1595_v14  ;;  %3037 = vmatpush.bf16.msra.mxu2 %v1595_v14  ;;  %v204_v14 = vld [vmem:[%s6590_s2 + $0x57c] sm:$0xff]  ;;  %v1614_v48 = vpack.c.bf16 %v1433_v42, %v1432_v41  ;;  %v1619_v1 = vpack.c.bf16 %v1443_v59, %v1442_v58  ;;  %v3398_v8 = vld [vmem:[%s6590_s2 + $0x104] sm:$0xff]  ;;  %v3408_v10 = vld [vmem:[%s6590_s2 + $0x30c] sm:$0xff] }
  0x16   :  { %v604_v44 = vunpack.c.l.bf16 %v204_v14  ;;  %v1297_v45 = vpack.c.bf16 %v998_v34, %v985_v33  ;;  %v3403_v9 = vld [vmem:[%s6590_s2 + $0x2d8] sm:$0xff]  ;;  %v211_v11 = vld [vmem:[%s6590_s2 + $0x5b0] sm:$0xff]  ;;  %v218_v13 = vld [vmem:[%s6590_s2 + $0x5e4] sm:$0xff]  ;;  %v318_v27 = vunpack.c.l.bf16 %v3398_v8  ;;  %v448_v41 = vunpack.c.l.bf16 %v3408_v10 }
  0x17   :  { %v169_v14 = vld [vmem:[%s6590_s2 + $0x478] sm:$0xff]  ;;  %v176_v15 = vld [vmem:[%s6590_s2 + $0x4ac] sm:$0xff]  ;;  %v617_v42 = vunpack.c.l.bf16 %v211_v11 }
  0x18   :  { %1751 = vmatpush.bf16.msra.mxu0 %v1594_v20  ;;  %3039 = vmatpush.bf16.msra.mxu1 %v1594_v20  ;;  %v1458_v16 = vld [vmem:[%s6589_s0 + $0x230] sm:$0xff]  ;;  %v539_v24 = vunpack.c.l.bf16 %v169_v14  ;;  %v552_v25 = vunpack.c.l.bf16 %v176_v15  ;;  %v1409_v36 = vld [vmem:[%s6589_s0 + $0xa8] sm:$0xff]  ;;  %v3497_v15 = vld [vmem:[%s6590_s2 + $0x138] sm:$0xff] }
  0x19   :  { %3041 = vmatpush.bf16.msra.mxu3 %v1594_v20  ;;  %3040 = vmatpush.bf16.msra.mxu2 %v1594_v20  ;;  %v1605_v20 = vpack.c.bf16 %v1415_v7, %v1414_v6  ;;  %v3393_v7 = vld [vmem:[%s6590_s2 + $0xd0] sm:$0xff] }
  0x1a   :  { %v305_v26 = vunpack.c.l.bf16 %v3393_v7 }
  0x1c   :  { %1752 = vmatpush.bf16.msra.mxu0 %v1593_v32  ;;  %3042 = vmatpush.bf16.msra.mxu1 %v1593_v32 }
  0x1d   :  { %3044 = vmatpush.bf16.msra.mxu3 %v1593_v32  ;;  %3043 = vmatpush.bf16.msra.mxu2 %v1593_v32  ;;  %v1413_v32 = vld [vmem:[%s6589_s0 + $0xc8] sm:$0xff] }
  0x1e   :  { %v1604_v46 = vpack.c.bf16 %v1413_v32, %v1412_v31  ;;  %v1428_v31 = vld [vmem:[%s6589_s0 + $0x140] sm:$0xff]  ;;  %v1429_v32 = vld [vmem:[%s6589_s0 + $0x148] sm:$0xff] }
  0x1f   :  { %v1612_v34 = vpack.c.bf16 %v1429_v32, %v1428_v31  ;;  %v3526_v31 = vld [vmem:[%s6590_s2 + $0x8] sm:$0xff]  ;;  %v3531_v32 = vld [vmem:[%s6590_s2 + $0x3c] sm:$0xff] }
  0x20   :  { %1753 = vmatpush.bf16.msra.mxu0 %v1592_v47  ;;  %3045 = vmatpush.bf16.msra.mxu1 %v1592_v47 }
  0x21   :  { %3047 = vmatpush.bf16.msra.mxu3 %v1592_v47  ;;  %3046 = vmatpush.bf16.msra.mxu2 %v1592_v47  ;;  %v1410_v47 = vld [vmem:[%s6589_s0 + $0xb0] sm:$0xff] }
  0x23   :  { %1754 = vmatmul.bf16.vlgmr.msra.gmra.mxu0 %v1167_v56  ;;  %1779 = vmatmul.bf16.vlgmr.msra.gmra.mxu1 %v1232_v57  ;;  %v881_v56 = vmul.f32 %v3228_v29, %v409_v37  ;;  %v894_v57 = vmul.f32 %v3228_v29, %v422_v38  ;;  %v1011_v37 = vmul.f32 %v3228_v29, %v539_v24  ;;  %v3512_v24 = vld [vmem:[%s6590_s2 + $0x374] sm:$0xff] }
  0x24   :  { %1840 = vmatpush.bf16.msrb.mxu1 %v1607_v50  ;;  %2122 = vmatpush.bf16.msrb.mxu0 %v1631_v52  ;;  %v1628_v50 = vpack.c.bf16 %v1461_v39, %v1460_v35  ;;  %v1430_v52 = vld [vmem:[%s6589_s0 + $0x150] sm:$0xff]  ;;  %v1408_v35 = vld [vmem:[%s6589_s0 + $0xa0] sm:$0xff]  ;;  %v1024_v38 = vmul.f32 %v3228_v29, %v552_v25  ;;  %v225_v25 = vld [vmem:[%s6590_s2 + $0x618] sm:$0xff] }
  0x25   :  { %2028 = vmatpush.bf16.msrb.mxu3 %v1623_v51  ;;  %1934 = vmatpush.bf16.msrb.mxu2 %v1615_v40  ;;  %v1411_v51 = vld [vmem:[%s6589_s0 + $0xb8] sm:$0xff]  ;;  %v1613_v0 = vpack.c.bf16 %v1431_v53, %v1430_v52  ;;  %v1426_v39 = vld [vmem:[%s6589_s0 + $0x130] sm:$0xff]  ;;  %v435_v40 = vunpack.c.l.bf16 %v3403_v9  ;;  %v1602_v43 = vpack.c.bf16 %v1409_v36, %v1408_v35  ;;  %v1425_v52 = vld [vmem:[%s6589_s0 + $0x128] sm:$0xff]  ;;  %v255_v35 = vunpack.c.l.bf16 %v3526_v31 }
  0x26   :  { %1814 = vmatmul.bf16.vlgmr.msra.gmra.mxu3 %v1323_v61  ;;  %1804 = vmatmul.bf16.vlgmr.msra.gmra.mxu2 %v1297_v45  ;;  %v1076_v61 = vmul.f32 %v3228_v29, %v604_v44  ;;  %v1427_v44 = vld [vmem:[%s6589_s0 + $0x138] sm:$0xff]  ;;  %v1456_v45 = vld [vmem:[%s6589_s0 + $0x220] sm:$0xff]  ;;  %v1438_v53 = vld [vmem:[%s6589_s0 + $0x190] sm:$0xff]  ;;  %v268_v36 = vunpack.c.l.bf16 %v3531_v32 }
  0x28   :  { %1841 = vmatpush.bf16.msrb.mxu1 %v1606_v62  ;;  %2123 = vmatpush.bf16.msrb.mxu0 %v1630_v5  ;;  %v1603_v62 = vpack.c.bf16 %v1411_v51, %v1410_v47  ;;  %v1245_v5 = vpack.c.bf16 %v894_v57, %v881_v56  ;;  %v1336_v6 = vpack.c.bf16 %v1076_v61, %v1063_v60  ;;  %v630_v47 = vunpack.c.l.bf16 %v218_v13  ;;  %v1424_v51 = vld [vmem:[%s6589_s0 + $0x120] sm:$0xff]  ;;  %v1407_v56 = vld [vmem:[%s6589_s0 + $0x98] sm:$0xff] }
  0x29   :  { %2029 = vmatpush.bf16.msrb.mxu3 %v1622_v2  ;;  %1935 = vmatpush.bf16.msrb.mxu2 %v1614_v48  ;;  %v1180_v2 = vpack.c.bf16 %v764_v55, %v751_v54  ;;  %v1310_v48 = vpack.c.bf16 %v1024_v38, %v1011_v37  ;;  %v1439_v54 = vld [vmem:[%s6589_s0 + $0x198] sm:$0xff]  ;;  %v1406_v55 = vld [vmem:[%s6589_s0 + $0x90] sm:$0xff]  ;;  %v777_v57 = vmul.f32 %v3228_v29, %v305_v26  ;;  %v254_v26 = vunpack.c.h.bf16 %v3194_v18 }
  0x2a   :  { %v1617_v58 = vpack.c.bf16 %v1439_v54, %v1438_v53  ;;  %v1601_v59 = vpack.c.bf16 %v1407_v56, %v1406_v55  ;;  %v790_v60 = vmul.f32 %v3228_v29, %v318_v27  ;;  %v907_v61 = vmul.f32 %v3228_v29, %v435_v40  ;;  %v1453_v54 = vld [vmem:[%s6589_s0 + $0x208] sm:$0xff]  ;;  %v1498_v55 = vld [vmem:[%s6589_s0 + $0x370] sm:$0xff]  ;;  %v1499_v56 = vld [vmem:[%s6589_s0 + $0x378] sm:$0xff] }
  0x2b   :  { %v267_v27 = vunpack.c.h.bf16 %v3199_v19  ;;  %v1420_v19 = vld [vmem:[%s6589_s0 + $0x100] sm:$0xff]  ;;  %v3546_v37 = vperm.slane %v3204_v21, 2 }
  0x2c   :  { %1842 = vmatpush.bf16.msrb.mxu1 %v1605_v20  ;;  %2124 = vmatpush.bf16.msrb.mxu0 %v1629_v30  ;;  %v1440_v20 = vld [vmem:[%s6589_s0 + $0x1a0] sm:$0xff]  ;;  %v1441_v30 = vld [vmem:[%s6589_s0 + $0x1a8] sm:$0xff]  ;;  %v1193_v11 = vpack.c.bf16 %v790_v60, %v777_v57 }
  0x2d   :  { %2030 = vmatpush.bf16.msrb.mxu3 %v1621_v17  ;;  %1936 = vmatpush.bf16.msrb.mxu2 %v1613_v0  ;;  %v1459_v17 = vld [vmem:[%s6589_s0 + $0x238] sm:$0xff]  ;;  %v1618_v33 = vpack.c.bf16 %v1441_v30, %v1440_v20  ;;  %v1089_v0 = vmul.f32 %v3228_v29, %v617_v42  ;;  %v3507_v20 = vld [vmem:[%s6590_s2 + $0x340] sm:$0xff]  ;;  %v232_v30 = vld [vmem:[%s6590_s2 + $0x64c] sm:$0xff] }
  0x2e   :  { %v1627_v28 = vpack.c.bf16 %v1459_v17, %v1458_v16  ;;  %v3502_v17 = vld [vmem:[%s6590_s2 + $0x16c] sm:$0xff]  ;;  %v461_v38 = vunpack.c.l.bf16 %v3507_v20  ;;  %v1436_v42 = vld [vmem:[%s6589_s0 + $0x180] sm:$0xff] }
  0x2f   :  { %v344_v18 = vunpack.c.l.bf16 %v3502_v17 }
  0x30   :  { %1843 = vmatpush.bf16.msrb.mxu1 %v1604_v46  ;;  %2125 = vmatpush.bf16.msrb.mxu0 %v1628_v50  ;;  %v1457_v46 = vld [vmem:[%s6589_s0 + $0x228] sm:$0xff] }
  0x31   :  { %2031 = vmatpush.bf16.msrb.mxu3 %v1620_v49  ;;  %1937 = vmatpush.bf16.msrb.mxu2 %v1612_v34  ;;  %v1611_v49 = vpack.c.bf16 %v1427_v44, %v1426_v39  ;;  %v1626_v50 = vpack.c.bf16 %v1457_v46, %v1456_v45  ;;  %v1454_v34 = vld [vmem:[%s6589_s0 + $0x210] sm:$0xff]  ;;  %v474_v39 = vunpack.c.l.bf16 %v3512_v24  ;;  %v3560_v44 = vperm.slane %v3204_v21, 1 }
  0x32   :  { %v727_v46 = vmul.f32 %v3546_v37, %v255_v35  ;;  %v1514_v35 = vld [vmem:[%s6589_s0 + $0x3f0] sm:$0xff] }
  0x33   :  { %1759 = vmatmul.bf16.gmra.mxu0 %v1180_v2  ;;  %1784 = vmatmul.bf16.gmra.mxu1 %v1245_v5  ;;  %v1610_v2 = vpack.c.bf16 %v1425_v52, %v1424_v51  ;;  %v1422_v5 = vld [vmem:[%s6589_s0 + $0x110] sm:$0xff]  ;;  %v1452_v51 = vld [vmem:[%s6589_s0 + $0x200] sm:$0xff]  ;;  %v643_v52 = vunpack.c.l.bf16 %v225_v25  ;;  %v3583_v57 = vmul.f32 %v3560_v44, %v254_v26 }
  0x34   :  { %1844 = vmatpush.bf16.msrb.mxu1 %v1603_v62  ;;  %2126 = vmatpush.bf16.msrb.mxu0 %v1627_v28  ;;  %v920_v62 = vmul.f32 %v3228_v29, %v448_v41  ;;  %v331_v28 = vunpack.c.l.bf16 %v3497_v15  ;;  %v1455_v41 = vld [vmem:[%s6589_s0 + $0x218] sm:$0xff]  ;;  %v3599_v26 = vld [vmem:[%s6590_s2 + $0x1a0] sm:$0xff] }
  0x35   :  { %2032 = vmatpush.bf16.msrb.mxu3 %v1619_v1  ;;  %v1102_v1 = vmul.f32 %v3228_v29, %v630_v47  ;;  %1938 = vmatpush.bf16.msrb.mxu2 %v1611_v49  ;;  %v1625_v45 = vpack.c.bf16 %v1455_v41, %v1454_v34  ;;  %v740_v47 = vmul.f32 %v3546_v37, %v268_v36  ;;  %v1404_v49 = vld [vmem:[%s6589_s0 + $0x80] sm:$0xff]  ;;  %v1515_v36 = vld [vmem:[%s6589_s0 + $0x3f8] sm:$0xff] }
  0x36   :  { %1819 = vmatmul.bf16.gmra.mxu3 %v1336_v6  ;;  %1809 = vmatmul.bf16.gmra.mxu2 %v1310_v48  ;;  %v1423_v6 = vld [vmem:[%s6589_s0 + $0x118] sm:$0xff]  ;;  %v1258_v13 = vpack.c.bf16 %v920_v62, %v907_v61  ;;  %v1624_v61 = vpack.c.bf16 %v1453_v54, %v1452_v51  ;;  %v1647_v62 = vpack.c.bf16 %v1499_v56, %v1498_v55  ;;  %v3630_v34 = vld [vmem:[%s6590_s2 + $0xa4] sm:$0xff] }
  0x37   :  { %v1349_v14 = vpack.c.bf16 %v1102_v1, %v1089_v0  ;;  %v1609_v16 = vpack.c.bf16 %v1423_v6, %v1422_v5  ;;  %v1169_v60 = vpack.c.bf16 %v740_v47, %v727_v46  ;;  %v803_v1 = vmul.f32 %v3228_v29, %v331_v28  ;;  %v3609_v28 = vld [vmem:[%s6590_s2 + $0x3a8] sm:$0xff]  ;;  %v1483_v41 = vld [vmem:[%s6589_s0 + $0x2f8] sm:$0xff] }
  0x38   :  { %1845 = vmatpush.bf16.msrb.mxu1 %v1602_v43  ;;  %2127 = vmatpush.bf16.msrb.mxu0 %v1626_v50  ;;  %v1437_v43 = vld [vmem:[%s6589_s0 + $0x188] sm:$0xff]  ;;  %v933_v5 = vmul.f32 %v3228_v29, %v461_v38  ;;  %v946_v6 = vmul.f32 %v3228_v29, %v474_v39  ;;  %v1482_v38 = vld [vmem:[%s6589_s0 + $0x2f0] sm:$0xff]  ;;  %v357_v46 = vunpack.c.l.bf16 %v3599_v26 }
  0x39   :  { %2033 = vmatpush.bf16.msrb.mxu3 %v1618_v33  ;;  %1939 = vmatpush.bf16.msrb.mxu2 %v1610_v2  ;;  %v1421_v33 = vld [vmem:[%s6589_s0 + $0x108] sm:$0xff]  ;;  %v1616_v48 = vpack.c.bf16 %v1437_v43, %v1436_v42  ;;  %v816_v2 = vmul.f32 %v3228_v29, %v344_v18  ;;  %v239_v18 = vld [vmem:[%s6590_s2 + $0x680] sm:$0xff]  ;;  %v294_v42 = vunpack.c.l.bf16 %v3630_v34  ;;  %v1530_v43 = vld [vmem:[%s6589_s0 + $0x470] sm:$0xff] }
  0x3a   :  { %v1608_v40 = vpack.c.bf16 %v1421_v33, %v1420_v19  ;;  %v1405_v50 = vld [vmem:[%s6589_s0 + $0x88] sm:$0xff]  ;;  %v246_v19 = vld [vmem:[%s6590_s2 + $0x6b4] sm:$0xff]  ;;  %v669_v54 = vunpack.c.l.bf16 %v239_v18 }
  0x3b   :  { %v1600_v53 = vpack.c.bf16 %v1405_v50, %v1404_v49  ;;  %v3625_v33 = vld [vmem:[%s6590_s2 + $0x70] sm:$0xff]  ;;  %v487_v50 = vunpack.c.l.bf16 %v3609_v28  ;;  %v682_v55 = vunpack.c.l.bf16 %v246_v19 }
  0x3c   :  { %1846 = vmatpush.bf16.msrb.mxu1 %v1601_v59  ;;  %v656_v59 = vunpack.c.l.bf16 %v232_v30  ;;  %2128 = vmatpush.bf16.msrb.mxu0 %v1625_v45  ;;  %v3614_v30 = vld [vmem:[%s6590_s2 + $0x3dc] sm:$0xff]  ;;  %v281_v39 = vunpack.c.l.bf16 %v3625_v33 }
  0x3d   :  { %2034 = vmatpush.bf16.msrb.mxu3 %v1617_v58  ;;  %1940 = vmatpush.bf16.msrb.mxu2 %v1609_v16  ;;  %v3586_v58 = vmul.f32 %v3560_v44, %v267_v27  ;;  %v1271_v16 = vpack.c.bf16 %v946_v6, %v933_v5  ;;  %v3604_v27 = vld [vmem:[%s6590_s2 + $0x1d4] sm:$0xff]  ;;  %v500_v51 = vunpack.c.l.bf16 %v3614_v30 }
  0x3e   :  { %v1531_v45 = vld [vmem:[%s6589_s0 + $0x478] sm:$0xff]  ;;  %v370_v47 = vunpack.c.l.bf16 %v3604_v27  ;;  %v753_v49 = vmul.f32 %v3546_v37, %v281_v39  ;;  %v3685_v39 = vperm.slane %v3204_v21, 4 }
  0x3f   :  { %v1168_v0 = vpack.c.bf16 %v3586_v58, %v3583_v57  ;;  %v1496_v57 = vld [vmem:[%s6589_s0 + $0x360] sm:$0xff]  ;;  %v1497_v58 = vld [vmem:[%s6589_s0 + $0x368] sm:$0xff] }
  0x40   :  { %1847 = vmatpush.bf16.msrb.mxu1 %v1600_v53  ;;  %2129 = vmatpush.bf16.msrb.mxu0 %v1624_v61  ;;  %v1663_v53 = vpack.c.bf16 %v1531_v45, %v1530_v43  ;;  %v959_v61 = vmul.f32 %v3228_v29, %v487_v50 }
  0x41   :  { %1941 = vmatpush.bf16.msrb.mxu2 %v1608_v40  ;;  %2035 = vmatpush.bf16.msrb.mxu3 %v1616_v48  ;;  %v1655_v40 = vpack.c.bf16 %v1515_v36, %v1514_v35  ;;  %v1639_v48 = vpack.c.bf16 %v1483_v41, %v1482_v38  ;;  %v269_v41 = vunpack.c.h.bf16 %v3531_v32  ;;  %v3708_v32 = vld [vmem:[%s6590_s2 + $0x140] sm:$0xff] }
  0x43   :  { %1764 = vmatmul.bf16.gmra.mxu0 %v1193_v11  ;;  %1789 = vmatmul.bf16.gmra.mxu1 %v1258_v13  ;;  %v1115_v11 = vmul.f32 %v3228_v29, %v643_v52  ;;  %v1128_v13 = vmul.f32 %v3228_v29, %v656_v59  ;;  %v766_v52 = vmul.f32 %v3546_v37, %v294_v42  ;;  %v3690_v42 = vperm.slane %v3204_v21, 3  ;;  %v38_v21 = vld [vmem:[%s6590_s2 + $0xac] sm:$0xff] }
  0x44   :  { %2216 = vmatpush.bf16.msra.mxu1 %v1639_v48  ;;  %2498 = vmatpush.bf16.msra.mxu0 %v1663_v53  ;;  %v829_v59 = vmul.f32 %v3228_v29, %v357_v46 }
  0x45   :  { %2310 = vmatpush.bf16.msra.mxu2 %v1647_v62  ;;  %v1362_v25 = vpack.c.bf16 %v1128_v13, %v1115_v11  ;;  %2404 = vmatpush.bf16.msra.mxu3 %v1655_v40  ;;  %v1182_v56 = vpack.c.bf16 %v766_v52, %v753_v49  ;;  %v972_v62 = vmul.f32 %v3228_v29, %v500_v51  ;;  %v3667_v13 = vld [vmem:[%s6590_s2 + $0xd8] sm:$0xff]  ;;  %v256_v40 = vunpack.c.h.bf16 %v3526_v31 }
  0x46   :  { %1824 = vmatmul.bf16.gmra.mxu3 %v1349_v14  ;;  %1942 = vmatmul.bf16.vlgmr.msrb.gmra.mxu2 %v1169_v60  ;;  %v1206_v14 = vpack.c.bf16 %v816_v2, %v803_v1  ;;  %v842_v60 = vmul.f32 %v3228_v29, %v370_v47  ;;  %v1141_v1 = vmul.f32 %v3228_v29, %v669_v54  ;;  %v31_v31 = vld [vmem:[%s6590_s2 + $0x78] sm:$0xff]  ;;  %v333_v52 = vunpack.c.l.bf16 %v3708_v32 }
  0x47   :  { %v1154_v2 = vmul.f32 %v3228_v29, %v682_v55  ;;  %v1284_v6 = vpack.c.bf16 %v972_v62, %v959_v61  ;;  %v17_v29 = vld [vmem:[%s6590_s2 + $0x10] sm:$0xff]  ;;  %v728_v47 = vmul.f32 %v3690_v42, %v256_v40  ;;  %v741_v48 = vmul.f32 %v3690_v42, %v269_v41 }
  0x48   :  { %v1219_v5 = vpack.c.bf16 %v842_v60, %v829_v59  ;;  %v257_v36 = vunpack.c.l.bf16 %v17_v29  ;;  %v3713_v51 = vld [vmem:[%s6590_s2 + $0x174] sm:$0xff]  ;;  %v280_v54 = vunpack.c.h.bf16 %v3283_v63  ;;  %v1646_v55 = vpack.c.bf16 %v1497_v58, %v1496_v57  ;;  %v1480_v59 = vld [vmem:[%s6589_s0 + $0x2e0] sm:$0xff]  ;;  %v1481_v60 = vld [vmem:[%s6589_s0 + $0x2e8] sm:$0xff] }
  0x49   :  { %v1375_v11 = vpack.c.bf16 %v1154_v2, %v1141_v1  ;;  %v1170_v50 = vpack.c.bf16 %v741_v48, %v728_v47  ;;  %v346_v53 = vunpack.c.l.bf16 %v3713_v51  ;;  %v1638_v62 = vpack.c.bf16 %v1481_v60, %v1480_v59  ;;  %v1528_v63 = vld [vmem:[%s6589_s0 + $0x460] sm:$0xff]  ;;  %v52_v48 = vld [vmem:[%s6590_s2 + $0x114] sm:$0xff] }
  0x4a   :  { %v729_v45 = vmul.f32 %v3685_v39, %v257_v36  ;;  %v805_v1 = vmul.f32 %v3546_v37, %v333_v52  ;;  %v296_v29 = vunpack.c.l.bf16 %v38_v21  ;;  %2311 = vmatpush.bf16.msra.mxu2 %v1646_v55  ;;  %v45_v47 = vld [vmem:[%s6590_s2 + $0xe0] sm:$0xff]  ;;  %v306_v57 = vunpack.c.h.bf16 %v3393_v7 }
  0x4b   :  { %v818_v2 = vmul.f32 %v3546_v37, %v346_v53  ;;  %2217 = vmatpush.bf16.msra.mxu1 %v1638_v62  ;;  %v319_v58 = vunpack.c.h.bf16 %v3398_v8  ;;  %v322_v52 = vunpack.c.l.bf16 %v52_v48  ;;  %v308_v53 = vunpack.c.h.bf16 %v3667_v13 }
  0x4d   :  { %v791_v59 = vmul.f32 %v3560_v44, %v319_v58  ;;  %v780_v7 = vmul.f32 %v3690_v42, %v308_v53 }
  0x53   :  { %1769 = vmatmul.bf16.gmra.mxu0 %v1206_v14  ;;  %1794 = vmatmul.bf16.gmra.mxu1 %v1271_v16  ;;  %v3672_v14 = vld [vmem:[%s6590_s2 + $0x10c] sm:$0xff]  ;;  %v24_v16 = vld [vmem:[%s6590_s2 + $0x44] sm:$0xff] }
  0x54   :  { %v320_v18 = vunpack.c.l.bf16 %v3672_v14  ;;  %v270_v38 = vunpack.c.l.bf16 %v24_v16 }
  0x56   :  { %1829 = vmatmul.bf16.gmra.mxu3 %v1362_v25  ;;  %1947 = vmatmul.bf16.gmra.mxu2 %v1182_v56  ;;  %v307_v25 = vunpack.c.l.bf16 %v3667_v13  ;;  %v792_v35 = vmul.f32 %v3546_v37, %v320_v18  ;;  %v742_v46 = vmul.f32 %v3685_v39, %v270_v38  ;;  %v1513_v56 = vld [vmem:[%s6589_s0 + $0x3e8] sm:$0xff]  ;;  %v295_v18 = vunpack.c.h.bf16 %v3630_v34 }
  0x57   :  { %v59_v13 = vld [vmem:[%s6590_s2 + $0x148] sm:$0xff] }
  0x58   :  { %v779_v19 = vmul.f32 %v3546_v37, %v307_v25  ;;  %v1171_v49 = vpack.c.bf16 %v742_v46, %v729_v45  ;;  %v282_v25 = vunpack.c.h.bf16 %v3625_v33  ;;  %v767_v41 = vmul.f32 %v3690_v42, %v295_v18  ;;  %v3756_v45 = vld [vmem:[%s6590_s2 + $0x1a8] sm:$0xff]  ;;  %v3761_v46 = vld [vmem:[%s6590_s2 + $0x1dc] sm:$0xff] }
  0x59   :  { %v332_v18 = vunpack.c.h.bf16 %v3497_v15  ;;  %v347_v15 = vunpack.c.h.bf16 %v3713_v51 }
  0x5a   :  { %v1195_v43 = vpack.c.bf16 %v792_v35, %v779_v19  ;;  %v1208_v19 = vpack.c.bf16 %v818_v2, %v805_v1  ;;  %v752_v35 = vmul.f32 %v3560_v44, %v280_v54  ;;  %v754_v40 = vmul.f32 %v3690_v42, %v282_v25 }
  0x5b   :  { %v321_v54 = vunpack.c.h.bf16 %v3672_v14  ;;  %v3789_v14 = vld [vmem:[%s6590_s2 + $0x210] sm:$0xff] }
  0x5c   :  { %v1183_v34 = vpack.c.bf16 %v767_v41, %v754_v40  ;;  %v1510_v40 = vld [vmem:[%s6589_s0 + $0x3d0] sm:$0xff]  ;;  %v1511_v41 = vld [vmem:[%s6589_s0 + $0x3d8] sm:$0xff] }
  0x5d   :  { %v793_v8 = vmul.f32 %v3690_v42, %v321_v54 }
  0x5f   :  { %v1196_v2 = vpack.c.bf16 %v793_v8, %v780_v7  ;;  %v80_v7 = vld [vmem:[%s6590_s2 + $0x1e4] sm:$0xff] }
  0x63   :  { %1774 = vmatmul.bf16.gmra.mxu0 %v1219_v5  ;;  %1799 = vmatmul.bf16.gmra.mxu1 %v1284_v6  ;;  %v1529_v5 = vld [vmem:[%s6589_s0 + $0x468] sm:$0xff]  ;;  %v293_v6 = vunpack.c.h.bf16 %v3294_v3  ;;  %v768_v3 = vmul.f32 %v3685_v39, %v296_v29  ;;  %v385_v29 = vunpack.c.l.bf16 %v3789_v14 }
  0x64   :  { %v1662_v16 = vpack.c.bf16 %v1529_v5, %v1528_v63  ;;  %v3794_v63 = vld [vmem:[%s6590_s2 + $0x244] sm:$0xff]  ;;  %v66_v5 = vld [vmem:[%s6590_s2 + $0x17c] sm:$0xff] }
  0x65   :  { %v765_v36 = vmul.f32 %v3560_v44, %v293_v6  ;;  %v1494_v6 = vld [vmem:[%s6589_s0 + $0x350] sm:$0xff] }
  0x66   :  { %1834 = vmatmul.bf16.gmra.mxu3 %v1375_v11  ;;  %1952 = vmatmul.bf16.gmra.mxu2 %v1195_v43  ;;  %v283_v11 = vunpack.c.l.bf16 %v31_v31 }
  0x67   :  { %2499 = vmatpush.bf16.msra.mxu0 %v1662_v16  ;;  %v1181_v33 = vpack.c.bf16 %v765_v36, %v752_v35  ;;  %v398_v16 = vunpack.c.l.bf16 %v3794_v63  ;;  %v345_v36 = vunpack.c.h.bf16 %v3502_v17  ;;  %v1478_v17 = vld [vmem:[%s6589_s0 + $0x2d0] sm:$0xff] }
  0x68   :  { %v755_v38 = vmul.f32 %v3685_v39, %v283_v11  ;;  %v1495_v11 = vld [vmem:[%s6589_s0 + $0x358] sm:$0xff] }
  0x69   :  { %v1645_v25 = vpack.c.bf16 %v1495_v11, %v1494_v6  ;;  %v870_v35 = vmul.f32 %v3546_v37, %v398_v16  ;;  %v371_v6 = vunpack.c.h.bf16 %v3604_v27 }
  0x6a   :  { %v1184_v43 = vpack.c.bf16 %v768_v3, %v755_v38  ;;  %v335_v38 = vunpack.c.l.bf16 %v59_v13  ;;  %v348_v3 = vunpack.c.l.bf16 %v66_v5  ;;  %v358_v5 = vunpack.c.h.bf16 %v3599_v26 }
  0x6b   :  { %2312 = vmatpush.bf16.msra.mxu2 %v1645_v25 }
  0x6c   :  { %v820_v51 = vmul.f32 %v3685_v39, %v348_v3 }
  0x73   :  { %1848 = vmatmul.bf16.vlgmr.msrb.gmra.mxu1 %v1168_v0  ;;  %2130 = vmatmul.bf16.vlgmr.msrb.gmra.mxu0 %v1171_v49  ;;  %v1512_v0 = vld [vmem:[%s6589_s0 + $0x3e0] sm:$0xff]  ;;  %v359_v49 = vunpack.c.l.bf16 %v3756_v45 }
  0x74   :  { %v1654_v61 = vpack.c.bf16 %v1513_v56, %v1512_v0  ;;  %v309_v0 = vunpack.c.l.bf16 %v45_v47  ;;  %v778_v56 = vmul.f32 %v3560_v44, %v306_v57  ;;  %v1479_v47 = vld [vmem:[%s6589_s0 + $0x2d8] sm:$0xff] }
  0x75   :  { %v831_v31 = vmul.f32 %v3546_v37, %v359_v49  ;;  %v1637_v48 = vpack.c.bf16 %v1479_v47, %v1478_v17  ;;  %v804_v49 = vmul.f32 %v3560_v44, %v332_v18  ;;  %v360_v18 = vunpack.c.h.bf16 %v3756_v45  ;;  %v3888_v17 = vld [vmem:[%s6590_s2 + $0x2e0] sm:$0xff]  ;;  %v3893_v47 = vld [vmem:[%s6590_s2 + $0x314] sm:$0xff] }
  0x76   :  { %2036 = vmatmul.bf16.vlgmr.msrb.gmra.mxu3 %v1170_v50  ;;  %1957 = vmatmul.bf16.gmra.mxu2 %v1208_v19  ;;  %v372_v50 = vunpack.c.l.bf16 %v3761_v46  ;;  %v781_v60 = vmul.f32 %v3685_v39, %v309_v0  ;;  %v1194_v62 = vpack.c.bf16 %v791_v59, %v778_v56  ;;  %v857_v19 = vmul.f32 %v3546_v37, %v385_v29  ;;  %v1526_v0 = vld [vmem:[%s6589_s0 + $0x450] sm:$0xff]  ;;  %v3844_v59 = vld [vmem:[%s6590_s2 + $0x278] sm:$0xff] }
  0x77   :  { %2405 = vmatpush.bf16.msra.mxu3 %v1654_v61  ;;  %v794_v61 = vmul.f32 %v3685_v39, %v322_v52  ;;  %2218 = vmatpush.bf16.msra.mxu1 %v1637_v48  ;;  %v1527_v52 = vld [vmem:[%s6589_s0 + $0x458] sm:$0xff]  ;;  %v411_v8 = vunpack.c.l.bf16 %v3844_v59  ;;  %v374_v29 = vunpack.c.l.bf16 %v80_v7  ;;  %v832_v27 = vmul.f32 %v3690_v42, %v360_v18 }
  0x78   :  { %v844_v21 = vmul.f32 %v3546_v37, %v372_v50  ;;  %v817_v50 = vmul.f32 %v3560_v44, %v345_v36  ;;  %v1661_v56 = vpack.c.bf16 %v1527_v52, %v1526_v0  ;;  %v830_v36 = vmul.f32 %v3560_v44, %v358_v5  ;;  %v87_v48 = vld [vmem:[%s6590_s2 + $0x218] sm:$0xff]  ;;  %v1509_v5 = vld [vmem:[%s6589_s0 + $0x3c8] sm:$0xff] }
  0x79   :  { %v1197_v1 = vpack.c.bf16 %v794_v61, %v781_v60  ;;  %v3849_v60 = vld [vmem:[%s6590_s2 + $0x2ac] sm:$0xff]  ;;  %v846_v26 = vmul.f32 %v3685_v39, %v374_v29  ;;  %v397_v0 = vunpack.c.h.bf16 %v3214_v23  ;;  %v387_v52 = vunpack.c.l.bf16 %v87_v48 }
  0x7a   :  { %v1221_v55 = vpack.c.bf16 %v844_v21, %v831_v31  ;;  %v819_v21 = vmul.f32 %v3690_v42, %v347_v15  ;;  %v1207_v57 = vpack.c.bf16 %v817_v50, %v804_v49  ;;  %2500 = vmatpush.bf16.msra.mxu0 %v1661_v56  ;;  %v73_v61 = vld [vmem:[%s6590_s2 + $0x1b0] sm:$0xff]  ;;  %v437_v50 = vunpack.c.l.bf16 %v3888_v17  ;;  %v1492_v56 = vld [vmem:[%s6589_s0 + $0x340] sm:$0xff] }
  0x7b   :  { %v361_v11 = vunpack.c.l.bf16 %v73_v61  ;;  %v94_v49 = vld [vmem:[%s6590_s2 + $0x24c] sm:$0xff]  ;;  %v869_v18 = vmul.f32 %v3560_v44, %v397_v0  ;;  %v3973_v0 = vld [vmem:[%s6590_s2 + $0x37c] sm:$0xff] }
  0x7d   :  { %v833_v3 = vmul.f32 %v3685_v39, %v361_v11 }
  0x83   :  { %1853 = vmatmul.bf16.gmra.mxu1 %v1181_v33  ;;  %2135 = vmatmul.bf16.gmra.mxu0 %v1184_v43  ;;  %v334_v33 = vunpack.c.h.bf16 %v3708_v32  ;;  %v1653_v43 = vpack.c.bf16 %v1511_v41, %v1510_v40  ;;  %v807_v32 = vmul.f32 %v3685_v39, %v335_v38  ;;  %v843_v38 = vmul.f32 %v3560_v44, %v371_v6  ;;  %v1476_v6 = vld [vmem:[%s6589_s0 + $0x2c0] sm:$0xff] }
  0x85   :  { %2406 = vmatpush.bf16.msra.mxu3 %v1653_v43  ;;  %v806_v31 = vmul.f32 %v3690_v42, %v334_v33  ;;  %v1210_v58 = vpack.c.bf16 %v820_v51, %v807_v32  ;;  %v1220_v45 = vpack.c.bf16 %v843_v38, %v830_v36  ;;  %v450_v32 = vunpack.c.l.bf16 %v3893_v47 }
  0x86   :  { %2041 = vmatmul.bf16.gmra.mxu3 %v1183_v34  ;;  %1962 = vmatmul.bf16.gmra.mxu2 %v1221_v55  ;;  %v1234_v34 = vpack.c.bf16 %v870_v35, %v857_v19  ;;  %v373_v19 = vunpack.c.h.bf16 %v3761_v46  ;;  %v1223_v46 = vpack.c.bf16 %v846_v26, %v833_v3  ;;  %v384_v51 = vunpack.c.h.bf16 %v3209_v22  ;;  %v1493_v22 = vld [vmem:[%s6589_s0 + $0x348] sm:$0xff] }
  0x87   :  { %v1209_v55 = vpack.c.bf16 %v819_v21, %v806_v31  ;;  %v909_v21 = vmul.f32 %v3546_v37, %v437_v50  ;;  %v436_v36 = vunpack.c.h.bf16 %v3403_v9  ;;  %v449_v38 = vunpack.c.h.bf16 %v3408_v10  ;;  %v1524_v9 = vld [vmem:[%s6589_s0 + $0x440] sm:$0xff]  ;;  %v1525_v10 = vld [vmem:[%s6589_s0 + $0x448] sm:$0xff] }
  0x88   :  { %v845_v40 = vmul.f32 %v3690_v42, %v373_v19  ;;  %v859_v19 = vmul.f32 %v3685_v39, %v387_v52  ;;  %v101_v52 = vld [vmem:[%s6590_s2 + $0x280] sm:$0xff] }
  0x89   :  { %v3958_v50 = vmul.f32 %v3560_v44, %v436_v36 }
  0x93   :  { %1858 = vmatmul.bf16.gmra.mxu1 %v1194_v62  ;;  %2140 = vmatmul.bf16.gmra.mxu0 %v1197_v1  ;;  %v424_v62 = vunpack.c.l.bf16 %v3849_v60  ;;  %v883_v1 = vmul.f32 %v3546_v37, %v411_v8  ;;  %v386_v8 = vunpack.c.h.bf16 %v3789_v14  ;;  %v1477_v14 = vld [vmem:[%s6589_s0 + $0x2c8] sm:$0xff] }
  0x94   :  { %v1636_v29 = vpack.c.bf16 %v1477_v14, %v1476_v6  ;;  %v413_v6 = vunpack.c.l.bf16 %v101_v52 }
  0x95   :  { %v858_v3 = vmul.f32 %v3690_v42, %v386_v8 }
  0x96   :  { %2046 = vmatmul.bf16.gmra.mxu3 %v1196_v2  ;;  %1967 = vmatmul.bf16.gmra.mxu2 %v1234_v34  ;;  %v896_v2 = vmul.f32 %v3546_v37, %v424_v62  ;;  %v1222_v34 = vpack.c.bf16 %v845_v40, %v832_v27  ;;  %v399_v62 = vunpack.c.h.bf16 %v3794_v63  ;;  %v856_v63 = vmul.f32 %v3560_v44, %v384_v51 }
  0x97   :  { %2219 = vmatpush.bf16.msra.mxu1 %v1636_v29  ;;  %v1660_v51 = vpack.c.bf16 %v1525_v10, %v1524_v9  ;;  %v412_v29 = vunpack.c.h.bf16 %v3844_v59 }
  0x98   :  { %v1247_v35 = vpack.c.bf16 %v896_v2, %v883_v1  ;;  %v1644_v1 = vpack.c.bf16 %v1493_v22, %v1492_v56  ;;  %v1508_v2 = vld [vmem:[%s6589_s0 + $0x3c0] sm:$0xff]  ;;  %v871_v26 = vmul.f32 %v3690_v42, %v399_v62  ;;  %v476_v22 = vunpack.c.l.bf16 %v3973_v0 }
  0x99   :  { %v1652_v11 = vpack.c.bf16 %v1509_v5, %v1508_v2  ;;  %2501 = vmatpush.bf16.msra.mxu0 %v1660_v51  ;;  %v410_v2 = vunpack.c.h.bf16 %v3299_v4  ;;  %v423_v5 = vunpack.c.h.bf16 %v3322_v12  ;;  %v462_v12 = vunpack.c.h.bf16 %v3507_v20 }
  0x9a   :  { %2313 = vmatpush.bf16.msra.mxu2 %v1644_v1  ;;  %v948_v1 = vmul.f32 %v3546_v37, %v476_v22  ;;  %v115_v22 = vld [vmem:[%s6590_s2 + $0x2e8] sm:$0xff] }
  0x9b   :  { %2407 = vmatpush.bf16.msra.mxu3 %v1652_v11  ;;  %v895_v36 = vmul.f32 %v3560_v44, %v423_v5  ;;  %v4014_v52 = vmul.f32 %v3560_v44, %v462_v12 }
  0xa0   :  { %v3837_v53 = vpop.f32.mrf.mxu0  ;;  %v3839_v54 = vpop.f32.mrf.mxu1 }
  0xa3   :  { %1863 = vmatmul.bf16.gmra.mxu1 %v1207_v57  ;;  %2145 = vmatmul.bf16.gmra.mxu0 %v1210_v58  ;;  %v922_v57 = vmul.f32 %v3546_v37, %v450_v32  ;;  %v3961_v32 = vmul.f32 %v3560_v44, %v449_v38  ;;  %v885_v38 = vmul.f32 %v3685_v39, %v413_v6 }
  0xa5   :  { %v1260_v23 = vpack.c.bf16 %v922_v57, %v909_v21  ;;  %v1259_v21 = vpack.c.bf16 %v3961_v32, %v3958_v50  ;;  %v3968_v57 = vld [vmem:[%s6590_s2 + $0x348] sm:$0xff]  ;;  %v1522_v32 = vld [vmem:[%s6589_s0 + $0x430] sm:$0xff] }
  0xa6   :  { %2051 = vmatmul.bf16.gmra.mxu3 %v1209_v55  ;;  %1972 = vmatmul.bf16.gmra.mxu2 %v1247_v35  ;;  %v400_v55 = vunpack.c.l.bf16 %v94_v49  ;;  %v1235_v49 = vpack.c.bf16 %v871_v26, %v858_v3  ;;  %v463_v56 = vunpack.c.l.bf16 %v3968_v57  ;;  %v475_v3 = vunpack.c.h.bf16 %v3512_v24  ;;  %v136_v50 = vld [vmem:[%s6590_s2 + $0x384] sm:$0xff] }
  0xa7   :  { %v884_v26 = vmul.f32 %v3690_v42, %v412_v29 }
  0xa8   :  { %v3865_v16 = vpop.f32.mrf.mxu0  ;;  %v3867_v25 = vpop.f32.mrf.mxu1  ;;  %v872_v35 = vmul.f32 %v3685_v39, %v400_v55  ;;  %v108_v55 = vld [vmem:[%s6590_s2 + $0x2b4] sm:$0xff]  ;;  %v935_v62 = vmul.f32 %v3546_v37, %v463_v56  ;;  %v4017_v20 = vmul.f32 %v3560_v44, %v475_v3  ;;  %v4029_v56 = vld [vmem:[%s6590_s2 + $0x3e4] sm:$0xff] }
  0xa9   :  { %v3861_v13 = vpop.f32.mrf.mxu3  ;;  %v3877_v41 = vpop.f32.mrf.mxu2  ;;  %v426_v11 = vunpack.c.l.bf16 %v108_v55  ;;  %v4024_v55 = vld [vmem:[%s6590_s2 + $0x3b0] sm:$0xff] }
  0xaa   :  { %v1490_v3 = vld [vmem:[%s6589_s0 + $0x330] sm:$0xff] }
  0xab   :  { %v898_v4 = vmul.f32 %v3685_v39, %v426_v11 }
  0xb0   :  { %v3881_v15 = vpop.f32.mrf.mxu0  ;;  %v3883_v43 = vpop.f32.mrf.mxu1 }
  0xb1   :  { %v3879_v33 = vpop.f32.mrf.mxu3  ;;  %v3904_v31 = vpop.f32.mrf.mxu2 }
  0xb3   :  { %1868 = vmatmul.bf16.gmra.mxu1 %v1220_v45  ;;  %2150 = vmatmul.bf16.gmra.mxu0 %v1223_v46  ;;  %v1233_v45 = vpack.c.bf16 %v869_v18, %v856_v63  ;;  %v1236_v46 = vpack.c.bf16 %v872_v35, %v859_v19  ;;  %v425_v18 = vunpack.c.h.bf16 %v3849_v60  ;;  %v1273_v19 = vpack.c.bf16 %v948_v1, %v935_v62  ;;  %v122_v62 = vld [vmem:[%s6590_s2 + $0x31c] sm:$0xff] }
  0xb4   :  { %v882_v35 = vmul.f32 %v3560_v44, %v410_v2  ;;  %v489_v1 = vunpack.c.l.bf16 %v4024_v55  ;;  %v502_v2 = vunpack.c.l.bf16 %v4029_v56 }
  0xb5   :  { %v897_v59 = vmul.f32 %v3690_v42, %v425_v18  ;;  %v439_v18 = vunpack.c.l.bf16 %v115_v22 }
  0xb6   :  { %2056 = vmatmul.bf16.gmra.mxu3 %v1222_v34  ;;  %1977 = vmatmul.bf16.gmra.mxu2 %v1260_v23  ;;  %v961_v6 = vmul.f32 %v3546_v37, %v489_v1  ;;  %v974_v11 = vmul.f32 %v3546_v37, %v502_v2  ;;  %v488_v2 = vunpack.c.h.bf16 %v3609_v28 }
  0xb7   :  { %v1248_v51 = vpack.c.bf16 %v897_v59, %v884_v26  ;;  %v1491_v26 = vld [vmem:[%s6589_s0 + $0x338] sm:$0xff]  ;;  %v1506_v59 = vld [vmem:[%s6589_s0 + $0x3b0] sm:$0xff] }
  0xb8   :  { %v3917_v61 = vpop.f32.mrf.mxu0  ;;  %v3919_v7 = vpop.f32.mrf.mxu1  ;;  %v1286_v12 = vpack.c.bf16 %v974_v11, %v961_v6  ;;  %v501_v6 = vunpack.c.h.bf16 %v3614_v30  ;;  %v4084_v28 = vmul.f32 %v3560_v44, %v488_v2 }
  0xb9   :  { %v3908_v58 = vpop.f32.mrf.mxu3  ;;  %v3943_v27 = vpop.f32.mrf.mxu2 }
  0xba   :  { %v4087_v30 = vmul.f32 %v3560_v44, %v501_v6 }
  0xc0   :  { %v3947_v34 = vpop.f32.mrf.mxu0  ;;  %v3949_v48 = vpop.f32.mrf.mxu1 }
  0xc1   :  { %v3945_v40 = vpop.f32.mrf.mxu3  ;;  %v3983_v8 = vpop.f32.mrf.mxu2 }
  0xc2   :  { %6593 = vst [vmem:[#allocation2_spill] sm:$0xff] %v3945_v40  ;;  %v1488_v40 = vld [vmem:[%s6589_s0 + $0x320] sm:$0xff] }
  0xc3   :  { %1873 = vmatmul.bf16.gmra.mxu1 %v1233_v45  ;;  %2155 = vmatmul.bf16.gmra.mxu0 %v1236_v46  ;;  %v1246_v46 = vpack.c.bf16 %v895_v36, %v882_v35 }
  0xc6   :  { %2061 = vmatmul.bf16.gmra.mxu3 %v1235_v49  ;;  %1982 = vmatmul.bf16.gmra.mxu2 %v1273_v19  ;;  %v1249_v49 = vpack.c.bf16 %v898_v4, %v885_v38  ;;  %v452_v19 = vunpack.c.l.bf16 %v122_v62  ;;  %v438_v38 = vunpack.c.h.bf16 %v3888_v17  ;;  %v451_v4 = vunpack.c.h.bf16 %v3893_v47  ;;  %v1507_v17 = vld [vmem:[%s6589_s0 + $0x3b8] sm:$0xff]  ;;  %v1474_v47 = vld [vmem:[%s6589_s0 + $0x2b0] sm:$0xff] }
  0xc7   :  { %v1651_v62 = vpack.c.bf16 %v1507_v17, %v1506_v59  ;;  %v4105_v17 = vld [vmem:[%s6590_s2 + $0x44c] sm:$0xff] }
  0xc8   :  { %v3991_v14 = vpop.f32.mrf.mxu0  ;;  %v3993_v63 = vpop.f32.mrf.mxu1  ;;  %v924_v22 = vmul.f32 %v3685_v39, %v452_v19  ;;  %v910_v11 = vmul.f32 %v3690_v42, %v438_v38  ;;  %v477_v38 = vunpack.c.h.bf16 %v3973_v0 }
  0xc9   :  { %v3987_v23 = vpop.f32.mrf.mxu3  ;;  %v4005_v45 = vpop.f32.mrf.mxu2  ;;  %2408 = vmatpush.bf16.msra.mxu3 %v1651_v62 }
  0xca   :  { %6594 = vst [vmem:[#allocation3_spill] sm:$0xff] %v3987_v23  ;;  %v949_v0 = vmul.f32 %v3690_v42, %v477_v38  ;;  %v6600_v38 = vpack.c.bf16 %v4017_v20, %v4014_v52  ;;  %v150_v52 = vld [vmem:[%s6590_s2 + $0x3ec] sm:$0xff] }
  0xd0   :  { %v4009_v9 = vpop.f32.mrf.mxu0  ;;  %v4011_v10 = vpop.f32.mrf.mxu1 }
  0xd1   :  { %v4007_v60 = vpop.f32.mrf.mxu3  ;;  %v4039_v5 = vpop.f32.mrf.mxu2 }
  0xd2   :  { %6595 = vst [vmem:[#allocation4_spill] sm:$0xff] %v4007_v60 }
  0xd3   :  { %1878 = vmatmul.bf16.gmra.mxu1 %v1246_v46  ;;  %2160 = vmatmul.bf16.gmra.mxu0 %v1249_v49  ;;  %v1643_v46 = vpack.c.bf16 %v1491_v26, %v1490_v3  ;;  %v1475_v49 = vld [vmem:[%s6589_s0 + $0x2b8] sm:$0xff]  ;;  %v923_v3 = vmul.f32 %v3690_v42, %v451_v4  ;;  %v129_v4 = vld [vmem:[%s6590_s2 + $0x350] sm:$0xff] }
  0xd4   :  { %v1635_v1 = vpack.c.bf16 %v1475_v49, %v1474_v47  ;;  %v528_v49 = vunpack.c.l.bf16 %v4105_v17  ;;  %v465_v6 = vunpack.c.l.bf16 %v129_v4  ;;  %v3048_v4 = vld [vmem:[%s6590_s2 + $0x410] sm:$0xff] }
  0xd5   :  { %2314 = vmatpush.bf16.msra.mxu2 %v1643_v46  ;;  %v1261_v59 = vpack.c.bf16 %v923_v3, %v910_v11  ;;  %v4100_v46 = vld [vmem:[%s6590_s2 + $0x418] sm:$0xff]  ;;  %v478_v11 = vunpack.c.l.bf16 %v136_v50  ;;  %v514_v50 = vunpack.c.h.bf16 %v3048_v4 }
  0xd6   :  { %2066 = vmatmul.bf16.gmra.mxu3 %v1248_v51  ;;  %v911_v51 = vmul.f32 %v3685_v39, %v439_v18  ;;  %1987 = vmatmul.bf16.gmra.mxu2 %v1286_v12  ;;  %v515_v47 = vunpack.c.l.bf16 %v4100_v46 }
  0xd7   :  { %2220 = vmatpush.bf16.msra.mxu1 %v1635_v1  ;;  %v1000_v1 = vmul.f32 %v3546_v37, %v528_v49  ;;  %v3049_v49 = vld [vmem:[%s6590_s2 + $0x444] sm:$0xff] }
  0xd8   :  { %v4045_v35 = vpop.f32.mrf.mxu0  ;;  %v4047_v36 = vpop.f32.mrf.mxu1  ;;  %v1262_v18 = vpack.c.bf16 %v924_v22, %v911_v51  ;;  %v987_v62 = vmul.f32 %v3546_v37, %v515_v47  ;;  %v950_v47 = vmul.f32 %v3685_v39, %v478_v11 }
  0xd9   :  { %v4043_v29 = vpop.f32.mrf.mxu3  ;;  %v4075_v26 = vpop.f32.mrf.mxu2 }
  0xda   :  { %6596 = vst [vmem:[#allocation5_spill] sm:$0xff] %v4043_v29  ;;  %v503_v29 = vunpack.c.h.bf16 %v4029_v56 }
  0xe0   :  { %v4079_v19 = vpop.f32.mrf.mxu0  ;;  %v4081_v12 = vpop.f32.mrf.mxu1 }
  0xe1   :  { %v4077_v24 = vpop.f32.mrf.mxu3  ;;  %v4118_v22 = vpop.f32.mrf.mxu2 }
  0xe2   :  { %6597 = vst [vmem:[#allocation6_spill] sm:$0xff] %v4077_v24  ;;  %v4145_v24 = vmul.f32 %v3560_v44, %v514_v50  ;;  %v4165_v50 = vld [vmem:[%s6590_s2 + $0x4b4] sm:$0xff] }
  0xe3   :  { %1883 = vmatmul.bf16.gmra.mxu1 %v1259_v21  ;;  %2165 = vmatmul.bf16.gmra.mxu0 %v1262_v18  ;;  %v1523_v21 = vld [vmem:[%s6589_s0 + $0x438] sm:$0xff]  ;;  %v554_v20 = vunpack.c.l.bf16 %v4165_v50 }
  0xe4   :  { %v1659_v51 = vpack.c.bf16 %v1523_v21, %v1522_v32  ;;  %v1299_v32 = vpack.c.bf16 %v1000_v1, %v987_v62  ;;  %v937_v21 = vmul.f32 %v3685_v39, %v465_v6 }
  0xe6   :  { %2071 = vmatmul.bf16.gmra.mxu3 %v1261_v59  ;;  %2502 = vmatpush.bf16.msra.mxu0 %v1659_v51  ;;  %v464_v59 = vunpack.c.h.bf16 %v3968_v57  ;;  %v527_v51 = vunpack.c.h.bf16 %v3049_v49  ;;  %v1275_v6 = vpack.c.bf16 %v950_v47, %v937_v21  ;;  %v4160_v47 = vld [vmem:[%s6590_s2 + $0x480] sm:$0xff] }
  0xe7   :  { %1992 = vmatmul.bf16.gmra.mxu2 %v1299_v32 }
  0xe8   :  { %v4124_v3 = vpop.f32.mrf.mxu0  ;;  %v4126_v18 = vpop.f32.mrf.mxu1  ;;  %v936_v57 = vmul.f32 %v3690_v42, %v464_v59  ;;  %v4148_v4 = vmul.f32 %v3560_v44, %v527_v51 }
  0xe9   :  { %v4122_v2 = vpop.f32.mrf.mxu3  ;;  %v4140_v62 = vpop.f32.mrf.mxu2 }
  0xea   :  { %6598 = vst [vmem:[#allocation7_spill] sm:$0xff] %v4122_v2  ;;  %v1274_v2 = vpack.c.bf16 %v949_v0, %v936_v57  ;;  %v1026_v0 = vmul.f32 %v3546_v37, %v554_v20 }
  0xf0   :  { %v1849_v11 = vpop.f32.mrf.mxu1  ;;  %v2131_v32 = vpop.f32.mrf.mxu0 }
  0xf1   :  { %v4142_v1 = vpop.f32.mrf.mxu3  ;;  %v1850_v49 = vadd.f32 %v1849_v11, %v3837_v53  ;;  %v143_v53 = vld [vmem:[%s6590_s2 + $0x3b8] sm:$0xff]  ;;  %v4175_v51 = vpop.f32.mrf.mxu2  ;;  %v504_v11 = vunpack.c.l.bf16 %v150_v52 }
  0xf2   :  { %6599 = vst [vmem:[#allocation8_spill] sm:$0xff] %v4142_v1  ;;  %v490_v1 = vunpack.c.h.bf16 %v4024_v55  ;;  %v1505_v55 = vld [vmem:[%s6589_s0 + $0x3a8] sm:$0xff] }
  0xf3   :  { %1888 = vmatmul.bf16.gmra.mxu1 %v6600_v38  ;;  %2170 = vmatmul.bf16.gmra.mxu0 %v1275_v6  ;;  %v1944_v21 = vadd.f32 %v4005_v45, %v1850_v49  ;;  %v541_v45 = vunpack.c.l.bf16 %v4160_v47  ;;  %v976_v20 = vmul.f32 %v3685_v39, %v504_v11 }
  0xf5   :  { %v1013_v57 = vmul.f32 %v3546_v37, %v541_v45  ;;  %v1489_v45 = vld [vmem:[%s6589_s0 + $0x328] sm:$0xff] }
  0xf6   :  { %2076 = vmatmul.bf16.gmra.mxu3 %v1274_v2  ;;  %v491_v2 = vunpack.c.l.bf16 %v143_v53  ;;  %v1642_v53 = vpack.c.bf16 %v1489_v45, %v1488_v40  ;;  %v3051_v40 = vld [vmem:[%s6590_s2 + $0x4ac] sm:$0xff] }
  0xf7   :  { %v1312_v60 = vpack.c.bf16 %v1026_v0, %v1013_v57  ;;  %v3050_v0 = vld [vmem:[%s6590_s2 + $0x478] sm:$0xff] }
  0xf8   :  { %v1851_v38 = vpop.f32.mrf.mxu1  ;;  %v2133_v59 = vpop.f32.mrf.mxu0  ;;  %v963_v52 = vmul.f32 %v3685_v39, %v491_v2  ;;  %2315 = vmatpush.bf16.msra.mxu2 %v1642_v53 }
  0xf9   :  { %v2037_v6 = vpop.f32.mrf.mxu3  ;;  %v1852_v23 = vadd.f32 %v1851_v38, %v3865_v16  ;;  %1997 = vmatmul.bf16.gmra.mxu2 %v1312_v60  ;;  %v553_v38 = vunpack.c.h.bf16 %v3051_v40 }
  0xfa   :  { %v2038_v49 = vadd.f32 %v2037_v6, %v1944_v21  ;;  %v1504_v21 = vld [vmem:[%s6589_s0 + $0x3a0] sm:$0xff]  ;;  %v540_v6 = vunpack.c.h.bf16 %v3050_v0  ;;  %v1288_v2 = vpack.c.bf16 %v976_v20, %v963_v52  ;;  %v6602_v0 = vpack.c.bf16 %v4087_v30, %v4084_v28  ;;  %v164_v28 = vld [vmem:[%s6590_s2 + $0x454] sm:$0xff]  ;;  %v1521_v30 = vld [vmem:[%s6589_s0 + $0x428] sm:$0xff] }
  0xfb   :  { %v1946_v16 = vadd.f32 %v4039_v5, %v1852_v23  ;;  %v1650_v57 = vpack.c.bf16 %v1505_v55, %v1504_v21  ;;  %v975_v23 = vmul.f32 %v3690_v42, %v503_v29  ;;  %v4207_v5 = vpop.f32.mrf.mxu2  ;;  %v1472_v55 = vld [vmem:[%s6589_s0 + $0x2a0] sm:$0xff]  ;;  %v4219_v53 = vmul.f32 %v3560_v44, %v553_v38 }
  0xfc   :  { %v4194_v56 = vadd.f32 %v2131_v32, %v2038_v49  ;;  %v962_v32 = vmul.f32 %v3690_v42, %v490_v1  ;;  %v1473_v1 = vld [vmem:[%s6589_s0 + $0x2a8] sm:$0xff]  ;;  %v4216_v29 = vmul.f32 %v3560_v44, %v540_v6  ;;  %v157_v6 = vld [vmem:[%s6590_s2 + $0x420] sm:$0xff]  ;;  %v529_v20 = vunpack.c.h.bf16 %v4105_v17 }
  0xfd   :  { %2409 = vmatpush.bf16.msra.mxu3 %v1650_v57 }
  0xfe   :  { %v1287_v21 = vpack.c.bf16 %v975_v23, %v962_v32 }
 0x100   :  { %v1854_v49 = vpop.f32.mrf.mxu1  ;;  %v2136_v45 = vpop.f32.mrf.mxu0 }
 0x101   :  { %v2039_v60 = vpop.f32.mrf.mxu3  ;;  %v1855_v52 = vadd.f32 %v1854_v49, %v3881_v15  ;;  %v4236_v15 = vld [vmem:[%s6590_s2 + $0x4e8] sm:$0xff] }
 0x102   :  { %v2040_v11 = vadd.f32 %v2039_v60, %v1946_v16  ;;  %v1634_v16 = vpack.c.bf16 %v1473_v1, %v1472_v55  ;;  %v567_v38 = vunpack.c.l.bf16 %v4236_v15  ;;  %v530_v55 = vunpack.c.l.bf16 %v164_v28 }
 0x103   :  { %1893 = vmatmul.bf16.gmra.mxu1 %v6602_v0  ;;  %2175 = vmatmul.bf16.gmra.mxu0 %v1288_v2  ;;  %v1949_v40 = vadd.f32 %v4075_v26, %v1855_v52  ;;  %v1520_v26 = vld [vmem:[%s6589_s0 + $0x420] sm:$0xff]  ;;  %v4254_v60 = vpop.f32.mrf.mxu2  ;;  %v516_v0 = vunpack.c.h.bf16 %v4100_v46  ;;  %v3053_v46 = vld [vmem:[%s6590_s2 + $0x514] sm:$0xff] }
 0x104   :  { %v4224_v57 = vadd.f32 %v2133_v59, %v2040_v11  ;;  %v4241_v59 = vld [vmem:[%s6590_s2 + $0x51c] sm:$0xff]  ;;  %2221 = vmatpush.bf16.msra.mxu1 %v1634_v16  ;;  %v1658_v23 = vpack.c.bf16 %v1521_v30, %v1520_v26  ;;  %v1039_v2 = vmul.f32 %v3546_v37, %v567_v38  ;;  %v579_v17 = vunpack.c.h.bf16 %v3053_v46 }
 0x105   :  { %v580_v32 = vunpack.c.l.bf16 %v4241_v59 }
 0x106   :  { %6601 = vst [vmem:[#allocation9_spill] sm:$0xff] %v4224_v57  ;;  %2081 = vmatmul.bf16.gmra.mxu3 %v1287_v21  ;;  %v517_v21 = vunpack.c.l.bf16 %v157_v6  ;;  %2503 = vmatpush.bf16.msra.mxu0 %v1658_v23  ;;  %v1002_v6 = vmul.f32 %v3685_v39, %v530_v55 }
 0x107   :  { %v1052_v11 = vmul.f32 %v3546_v37, %v580_v32 }
 0x108   :  { %v1856_v52 = vpop.f32.mrf.mxu1  ;;  %v2138_v16 = vpop.f32.mrf.mxu0  ;;  %v989_v32 = vmul.f32 %v3685_v39, %v517_v21 }
 0x109   :  { %v2042_v49 = vpop.f32.mrf.mxu3  ;;  %v1325_v57 = vpack.c.bf16 %v1052_v11, %v1039_v2  ;;  %v1857_v26 = vadd.f32 %v1856_v52, %v3917_v61  ;;  %v988_v61 = vmul.f32 %v3690_v42, %v516_v0 }
 0x10a   :  { %v2043_v1 = vadd.f32 %v2042_v49, %v1949_v40  ;;  %v3052_v40 = vld [vmem:[%s6590_s2 + $0x4e0] sm:$0xff]  ;;  %v1301_v2 = vpack.c.bf16 %v1002_v6, %v989_v32  ;;  %v4294_v32 = vld [vmem:[%s6590_s2 + $0x550] sm:$0xff] }
 0x10b   :  { %v1951_v38 = vadd.f32 %v4118_v22, %v1857_v26  ;;  %2002 = vmatmul.bf16.gmra.mxu2 %v1325_v57  ;;  %v566_v28 = vunpack.c.h.bf16 %v3052_v40  ;;  %v4274_v22 = vpop.f32.mrf.mxu2  ;;  %v6603_v26 = vpack.c.bf16 %v4148_v4, %v4145_v24  ;;  %v178_v24 = vld [vmem:[%s6590_s2 + $0x4bc] sm:$0xff] }
 0x10c   :  { %v4261_v30 = vadd.f32 %v2136_v45, %v2043_v1  ;;  %v1001_v45 = vmul.f32 %v3690_v42, %v529_v20  ;;  %v4280_v1 = vmul.f32 %v3560_v44, %v579_v17 }
 0x10d   :  { %v4277_v55 = vmul.f32 %v3560_v44, %v566_v28 }
 0x10e   :  { %v1300_v21 = vpack.c.bf16 %v1001_v45, %v988_v61  ;;  %v556_v61 = vunpack.c.l.bf16 %v178_v24 }
 0x10f   :  { %v1324_v0 = vpack.c.bf16 %v4280_v1, %v4277_v55  ;;  %v206_v55 = vld [vmem:[%s6590_s2 + $0x58c] sm:$0xff] }
 0x110   :  { %v1859_v57 = vpop.f32.mrf.mxu1  ;;  %v2141_v49 = vpop.f32.mrf.mxu0 }
 0x111   :  { %v2044_v23 = vpop.f32.mrf.mxu3  ;;  %v1860_v52 = vadd.f32 %v1859_v57, %v3947_v34  ;;  %v4299_v34 = vld [vmem:[%s6590_s2 + $0x584] sm:$0xff]  ;;  %v555_v57 = vunpack.c.h.bf16 %v4165_v50  ;;  %v1028_v50 = vmul.f32 %v3685_v39, %v556_v61 }
 0x112   :  { %v2045_v11 = vadd.f32 %v2044_v23, %v1951_v38  ;;  %v606_v4 = vunpack.c.l.bf16 %v4299_v34 }
 0x113   :  { %1898 = vmatmul.bf16.gmra.mxu1 %v6603_v26  ;;  %2180 = vmatmul.bf16.gmra.mxu0 %v1301_v2  ;;  %v1954_v38 = vadd.f32 %v4140_v62, %v1860_v52  ;;  %v593_v62 = vunpack.c.l.bf16 %v4294_v32  ;;  %v4309_v6 = vpop.f32.mrf.mxu2  ;;  %v1486_v26 = vld [vmem:[%s6589_s0 + $0x310] sm:$0xff] }
 0x114   :  { %v4285_v20 = vadd.f32 %v2138_v16, %v2045_v11  ;;  %v171_v16 = vld [vmem:[%s6590_s2 + $0x488] sm:$0xff]  ;;  %v1078_v28 = vmul.f32 %v3546_v37, %v606_v4  ;;  %v542_v11 = vunpack.c.h.bf16 %v4160_v47 }
 0x115   :  { %v1065_v40 = vmul.f32 %v3546_v37, %v593_v62  ;;  %v543_v17 = vunpack.c.l.bf16 %v171_v16  ;;  %v1487_v62 = vld [vmem:[%s6589_s0 + $0x318] sm:$0xff] }
 0x116   :  { %2086 = vmatmul.bf16.gmra.mxu3 %v1300_v21  ;;  %v1641_v16 = vpack.c.bf16 %v1487_v62, %v1486_v26  ;;  %v1502_v26 = vld [vmem:[%s6589_s0 + $0x390] sm:$0xff]  ;;  %v1503_v62 = vld [vmem:[%s6589_s0 + $0x398] sm:$0xff] }
 0x117   :  { %v1338_v21 = vpack.c.bf16 %v1078_v28, %v1065_v40  ;;  %v1015_v47 = vmul.f32 %v3685_v39, %v543_v17  ;;  %v3055_v40 = vld [vmem:[%s6590_s2 + $0x57c] sm:$0xff] }
 0x118   :  { %v1861_v23 = vpop.f32.mrf.mxu1  ;;  %v2143_v2 = vpop.f32.mrf.mxu0  ;;  %v605_v28 = vunpack.c.h.bf16 %v3055_v40  ;;  %2316 = vmatpush.bf16.msra.mxu2 %v1641_v16 }
 0x119   :  { %v2047_v46 = vpop.f32.mrf.mxu3  ;;  %v1862_v52 = vadd.f32 %v1861_v23, %v3991_v14  ;;  %v3054_v14 = vld [vmem:[%s6590_s2 + $0x548] sm:$0xff]  ;;  %v1314_v61 = vpack.c.bf16 %v1028_v50, %v1015_v47  ;;  %v1470_v47 = vld [vmem:[%s6589_s0 + $0x290] sm:$0xff]  ;;  %v1471_v50 = vld [vmem:[%s6589_s0 + $0x298] sm:$0xff] }
 0x11a   :  { %v2048_v45 = vadd.f32 %v2047_v46, %v1954_v38  ;;  %v592_v4 = vunpack.c.h.bf16 %v3054_v14  ;;  %v1027_v46 = vmul.f32 %v3690_v42, %v555_v57  ;;  %v4347_v57 = vmul.f32 %v3560_v44, %v605_v28 }
 0x11b   :  { %v1956_v38 = vadd.f32 %v4175_v51, %v1862_v52  ;;  %2007 = vmatmul.bf16.gmra.mxu2 %v1338_v21  ;;  %v4335_v51 = vpop.f32.mrf.mxu2  ;;  %v1633_v14 = vpack.c.bf16 %v1471_v50, %v1470_v47  ;;  %v6604_v28 = vpack.c.bf16 %v4219_v53, %v4216_v29  ;;  %v192_v29 = vld [vmem:[%s6590_s2 + $0x524] sm:$0xff]  ;;  %v568_v50 = vunpack.c.h.bf16 %v4236_v15 }
 0x11c   :  { %v4322_v24 = vadd.f32 %v2141_v49, %v2048_v45  ;;  %v1014_v49 = vmul.f32 %v3690_v42, %v542_v11  ;;  %v4344_v11 = vmul.f32 %v3560_v44, %v592_v4 }
 0x11d   :  { %2222 = vmatpush.bf16.msra.mxu1 %v1633_v14  ;;  %v581_v14 = vunpack.c.h.bf16 %v4241_v59 }
 0x11e   :  { %v1313_v52 = vpack.c.bf16 %v1027_v46, %v1014_v49  ;;  %v4367_v49 = vld [vmem:[%s6590_s2 + $0x5b8] sm:$0xff]  ;;  %v4372_v46 = vld [vmem:[%s6590_s2 + $0x5ec] sm:$0xff] }
 0x11f   :  { %v632_v53 = vunpack.c.l.bf16 %v4372_v46 }
 0x120   :  { %v1864_v23 = vpop.f32.mrf.mxu1  ;;  %v2146_v21 = vpop.f32.mrf.mxu0 }
 0x121   :  { %v2049_v17 = vpop.f32.mrf.mxu3  ;;  %v1865_v16 = vadd.f32 %v1864_v23, %v4009_v9 }
 0x122   :  { %v2050_v45 = vadd.f32 %v2049_v17, %v1956_v38  ;;  %v1649_v38 = vpack.c.bf16 %v1503_v62, %v1502_v26  ;;  %v582_v26 = vunpack.c.l.bf16 %v192_v29 }
 0x123   :  { %1903 = vmatmul.bf16.gmra.mxu1 %v6604_v28  ;;  %2185 = vmatmul.bf16.gmra.mxu0 %v1314_v61  ;;  %v1959_v9 = vadd.f32 %v4207_v5, %v1865_v16  ;;  %v619_v5 = vunpack.c.l.bf16 %v4367_v49  ;;  %v4382_v17 = vpop.f32.mrf.mxu2  ;;  %v1519_v28 = vld [vmem:[%s6589_s0 + $0x418] sm:$0xff] }
 0x124   :  { %v4358_v4 = vadd.f32 %v2143_v2, %v2050_v45  ;;  %v185_v2 = vld [vmem:[%s6590_s2 + $0x4f0] sm:$0xff]  ;;  %2410 = vmatpush.bf16.msra.mxu3 %v1649_v38  ;;  %v1104_v45 = vmul.f32 %v3546_v37, %v632_v53  ;;  %v1054_v59 = vmul.f32 %v3685_v39, %v582_v26 }
 0x125   :  { %v1091_v61 = vmul.f32 %v3546_v37, %v619_v5  ;;  %v1518_v38 = vld [vmem:[%s6589_s0 + $0x410] sm:$0xff] }
 0x126   :  { %2091 = vmatmul.bf16.gmra.mxu3 %v1313_v52  ;;  %v569_v52 = vunpack.c.l.bf16 %v185_v2  ;;  %v1657_v2 = vpack.c.bf16 %v1519_v28, %v1518_v38 }
 0x127   :  { %v1351_v5 = vpack.c.bf16 %v1104_v45, %v1091_v61 }
 0x128   :  { %v1866_v16 = vpop.f32.mrf.mxu1  ;;  %v2148_v47 = vpop.f32.mrf.mxu0  ;;  %v1041_v15 = vmul.f32 %v3685_v39, %v569_v52  ;;  %2504 = vmatpush.bf16.msra.mxu0 %v1657_v2 }
 0x129   :  { %v2052_v23 = vpop.f32.mrf.mxu3  ;;  %v1867_v53 = vadd.f32 %v1866_v16, %v4045_v35  ;;  %v3057_v35 = vld [vmem:[%s6590_s2 + $0x5e4] sm:$0xff] }
 0x12a   :  { %v2053_v62 = vadd.f32 %v2052_v23, %v1959_v9  ;;  %v3056_v23 = vld [vmem:[%s6590_s2 + $0x5b0] sm:$0xff]  ;;  %v631_v61 = vunpack.c.h.bf16 %v3057_v35  ;;  %v1327_v26 = vpack.c.bf16 %v1054_v59, %v1041_v15 }
 0x12b   :  { %v1961_v9 = vadd.f32 %v4254_v60, %v1867_v53  ;;  %2012 = vmatmul.bf16.gmra.mxu2 %v1351_v5  ;;  %v618_v40 = vunpack.c.h.bf16 %v3056_v23  ;;  %v1053_v60 = vmul.f32 %v3690_v42, %v581_v14  ;;  %v4408_v45 = vpop.f32.mrf.mxu2 }
 0x12c   :  { %v4395_v29 = vadd.f32 %v2146_v21, %v2053_v62  ;;  %v1040_v21 = vmul.f32 %v3690_v42, %v568_v50  ;;  %v4414_v53 = vmul.f32 %v3560_v44, %v631_v61  ;;  %v608_v61 = vunpack.c.l.bf16 %v206_v55 }
 0x12d   :  { %v4411_v5 = vmul.f32 %v3560_v44, %v618_v40  ;;  %v4428_v40 = vld [vmem:[%s6590_s2 + $0x620] sm:$0xff] }
 0x12e   :  { %v1326_v28 = vpack.c.bf16 %v1053_v60, %v1040_v21 }
 0x130   :  { %v1869_v16 = vpop.f32.mrf.mxu1  ;;  %v2151_v38 = vpop.f32.mrf.mxu0 }
 0x131   :  { %v2054_v52 = vpop.f32.mrf.mxu3  ;;  %v1870_v2 = vadd.f32 %v1869_v16, %v4079_v19  ;;  %v4433_v19 = vld [vmem:[%s6590_s2 + $0x654] sm:$0xff] }
 0x132   :  { %v2055_v62 = vadd.f32 %v2054_v52, %v1961_v9  ;;  %v658_v1 = vunpack.c.l.bf16 %v4433_v19 }
 0x133   :  { %1908 = vmatmul.bf16.gmra.mxu1 %v1324_v0  ;;  %2190 = vmatmul.bf16.gmra.mxu0 %v1327_v26  ;;  %v1964_v9 = vadd.f32 %v4274_v22, %v1870_v2  ;;  %v645_v22 = vunpack.c.l.bf16 %v4428_v40  ;;  %v4443_v0 = vpop.f32.mrf.mxu2  ;;  %v594_v26 = vunpack.c.h.bf16 %v4294_v32  ;;  %v3059_v32 = vld [vmem:[%s6590_s2 + $0x64c] sm:$0xff] }
 0x134   :  { %v4419_v14 = vadd.f32 %v2148_v47, %v2055_v62  ;;  %v199_v47 = vld [vmem:[%s6590_s2 + $0x558] sm:$0xff]  ;;  %v1130_v59 = vmul.f32 %v3546_v37, %v658_v1  ;;  %v607_v62 = vunpack.c.h.bf16 %v4299_v34  ;;  %v1080_v1 = vmul.f32 %v3685_v39, %v608_v61 }
 0x135   :  { %v1117_v15 = vmul.f32 %v3546_v37, %v645_v22  ;;  %v595_v35 = vunpack.c.l.bf16 %v199_v47  ;;  %v657_v34 = vunpack.c.h.bf16 %v3059_v32  ;;  %v6606_v32 = vpack.c.bf16 %v4347_v57, %v4344_v11  ;;  %v220_v11 = vld [vmem:[%s6590_s2 + $0x5f4] sm:$0xff]  ;;  %v1469_v57 = vld [vmem:[%s6589_s0 + $0x288] sm:$0xff] }
 0x136   :  { %2096 = vmatmul.bf16.gmra.mxu3 %v1326_v28 }
 0x137   :  { %v1364_v16 = vpack.c.bf16 %v1130_v59, %v1117_v15  ;;  %v1067_v22 = vmul.f32 %v3685_v39, %v595_v35 }
 0x138   :  { %v1871_v60 = vpop.f32.mrf.mxu1  ;;  %v2153_v52 = vpop.f32.mrf.mxu0 }
 0x139   :  { %v2057_v23 = vpop.f32.mrf.mxu3  ;;  %v1872_v28 = vadd.f32 %v1871_v60, %v4124_v3  ;;  %v1066_v3 = vmul.f32 %v3690_v42, %v594_v26  ;;  %v1340_v15 = vpack.c.bf16 %v1080_v1, %v1067_v22  ;;  %v1485_v60 = vld [vmem:[%s6589_s0 + $0x308] sm:$0xff] }
 0x13a   :  { %v2058_v21 = vadd.f32 %v2057_v23, %v1964_v9  ;;  %v3058_v9 = vld [vmem:[%s6590_s2 + $0x618] sm:$0xff]  ;;  %v1501_v22 = vld [vmem:[%s6589_s0 + $0x388] sm:$0xff] }
 0x13b   :  { %v1966_v50 = vadd.f32 %v4309_v6, %v1872_v28  ;;  %2017 = vmatmul.bf16.gmra.mxu2 %v1364_v16  ;;  %v644_v47 = vunpack.c.h.bf16 %v3058_v9  ;;  %v4463_v6 = vpop.f32.mrf.mxu2  ;;  %v1500_v28 = vld [vmem:[%s6589_s0 + $0x380] sm:$0xff]  ;;  %v633_v9 = vunpack.c.h.bf16 %v4372_v46 }
 0x13c   :  { %v4450_v2 = vadd.f32 %v2151_v38, %v2058_v21  ;;  %v1079_v38 = vmul.f32 %v3690_v42, %v607_v62  ;;  %v1484_v21 = vld [vmem:[%s6589_s0 + $0x300] sm:$0xff]  ;;  %v4475_v62 = vmul.f32 %v3560_v44, %v657_v34  ;;  %v1648_v1 = vpack.c.bf16 %v1501_v22, %v1500_v28 }
 0x13d   :  { %v4472_v26 = vmul.f32 %v3560_v44, %v644_v47  ;;  %v213_v34 = vld [vmem:[%s6590_s2 + $0x5c0] sm:$0xff] }
 0x13e   :  { %v1339_v61 = vpack.c.bf16 %v1079_v38, %v1066_v3  ;;  %v4498_v3 = vld [vmem:[%s6590_s2 + $0x688] sm:$0xff]  ;;  %2411 = vmatpush.bf16.msra.mxu3 %v1648_v1 }
 0x13f   :  { %v671_v38 = vunpack.c.l.bf16 %v4498_v3 }
 0x140   :  { %v1874_v23 = vpop.f32.mrf.mxu1  ;;  %v2156_v35 = vpop.f32.mrf.mxu0 }
 0x141   :  { %v2059_v55 = vpop.f32.mrf.mxu3  ;;  %v1875_v16 = vadd.f32 %v1874_v23, %v3839_v54  ;;  %v1143_v23 = vmul.f32 %v3546_v37, %v671_v38  ;;  %v3061_v38 = vld [vmem:[%s6590_s2 + $0x6b4] sm:$0xff] }
 0x142   :  { %v2060_v59 = vadd.f32 %v2059_v55, %v1966_v50  ;;  %v1640_v50 = vpack.c.bf16 %v1485_v60, %v1484_v21  ;;  %v621_v60 = vunpack.c.l.bf16 %v213_v34 }
 0x143   :  { %1913 = vmatmul.bf16.gmra.mxu1 %v6606_v32  ;;  %2195 = vmatmul.bf16.gmra.mxu0 %v1340_v15  ;;  %v1969_v54 = vadd.f32 %v4335_v51, %v1875_v16  ;;  %v1468_v51 = vld [vmem:[%s6589_s0 + $0x280] sm:$0xff]  ;;  %v634_v16 = vunpack.c.l.bf16 %v220_v11  ;;  %v620_v32 = vunpack.c.h.bf16 %v4367_v49 }
 0x144   :  { %v4486_v47 = vadd.f32 %v2153_v52, %v2060_v59  ;;  %v4503_v52 = vld [vmem:[%s6590_s2 + $0x6bc] sm:$0xff]  ;;  %2317 = vmatpush.bf16.msra.mxu2 %v1640_v50  ;;  %v1632_v15 = vpack.c.bf16 %v1469_v57, %v1468_v51  ;;  %v4516_v59 = vpop.f32.mrf.mxu2  ;;  %v1093_v49 = vmul.f32 %v3685_v39, %v621_v60 }
 0x145   :  { %v684_v55 = vunpack.c.l.bf16 %v4503_v52  ;;  %v1516_v51 = vld [vmem:[%s6589_s0 + $0x400] sm:$0xff]  ;;  %v1106_v46 = vmul.f32 %v3685_v39, %v634_v16 }
 0x146   :  { %6605 = vst [vmem:[#allocation10_spill] sm:$0xff] %v4486_v47  ;;  %2101 = vmatmul.bf16.gmra.mxu3 %v1339_v61  ;;  %2223 = vmatpush.bf16.msra.mxu1 %v1632_v15  ;;  %v1105_v15 = vmul.f32 %v3690_v42, %v633_v9 }
 0x147   :  { %v1156_v61 = vmul.f32 %v3546_v37, %v684_v55  ;;  %v1517_v37 = vld [vmem:[%s6589_s0 + $0x408] sm:$0xff]  ;;  %v683_v55 = vunpack.c.h.bf16 %v3061_v38 }
 0x148   :  { %v1876_v28 = vpop.f32.mrf.mxu1  ;;  %v2158_v22 = vpop.f32.mrf.mxu0  ;;  %v1656_v34 = vpack.c.bf16 %v1517_v37, %v1516_v51  ;;  %v6607_v51 = vpack.c.bf16 %v4414_v53, %v4411_v5  ;;  %v234_v5 = vld [vmem:[%s6590_s2 + $0x65c] sm:$0xff] }
 0x149   :  { %v2062_v21 = vpop.f32.mrf.mxu3  ;;  %v1377_v47 = vpack.c.bf16 %v1156_v61, %v1143_v23  ;;  %v1877_v1 = vadd.f32 %v1876_v28, %v3867_v25  ;;  %v3060_v25 = vld [vmem:[%s6590_s2 + $0x680] sm:$0xff]  ;;  %v1353_v61 = vpack.c.bf16 %v1106_v46, %v1093_v49  ;;  %v4548_v28 = vmul.f32 %v3560_v44, %v683_v55 }
 0x14a   :  { %v2063_v50 = vadd.f32 %v2062_v21, %v1969_v54  ;;  %v670_v57 = vunpack.c.h.bf16 %v3060_v25  ;;  %2505 = vmatpush.bf16.msra.mxu0 %v1656_v34  ;;  %v4562_v34 = vld [vmem:[%s6590_s2 + $0x18] sm:$0xff]  ;;  %v660_v55 = vunpack.c.l.bf16 %v234_v5 }
 0x14b   :  { %v1971_v54 = vadd.f32 %v4382_v17, %v1877_v1  ;;  %2022 = vmatmul.bf16.gmra.mxu2 %v1377_v47 }
 0x14c   :  { %v4529_v11 = vadd.f32 %v2156_v35, %v2063_v50  ;;  %v1092_v35 = vmul.f32 %v3690_v42, %v620_v32  ;;  %v4542_v17 = vpop.f32.mrf.mxu2  ;;  %v4545_v50 = vmul.f32 %v3560_v44, %v670_v57  ;;  %v4567_v44 = vld [vmem:[%s6590_s2 + $0x4c] sm:$0xff] }
 0x14d   :  { %v272_v53 = vunpack.c.l.bf16 %v4567_v44 }
 0x14e   :  { %v1352_v16 = vpack.c.bf16 %v1105_v15, %v1092_v35 }
 0x150   :  { %v1879_v21 = vpop.f32.mrf.mxu1  ;;  %v2161_v60 = vpop.f32.mrf.mxu0 }
 0x151   :  { %v2064_v23 = vpop.f32.mrf.mxu3  ;;  %v1880_v1 = vadd.f32 %v1879_v21, %v3883_v43  ;;  %v227_v43 = vld [vmem:[%s6590_s2 + $0x628] sm:$0xff] }
 0x152   :  { %v2065_v47 = vadd.f32 %v2064_v23, %v1971_v54  ;;  %v647_v38 = vunpack.c.l.bf16 %v227_v43 }
 0x153   :  { %1918 = vmatmul.bf16.gmra.mxu1 %v6607_v51  ;;  %2200 = vmatmul.bf16.gmra.mxu0 %v1353_v61  ;;  %v1974_v37 = vadd.f32 %v4408_v45, %v1880_v1  ;;  %v259_v45 = vunpack.c.l.bf16 %v4562_v34  ;;  %v646_v61 = vunpack.c.h.bf16 %v4428_v40  ;;  %v3064_v51 = vld [vmem:[%s6590_s2 + $0x44] sm:$0xff] }
 0x154   :  { %v4553_v32 = vadd.f32 %v2158_v22, %v2065_v47  ;;  %v4580_v22 = vld [vmem:[%s6591_s1] sm:$0xff]  ;;  %v4585_v49 = vpop.f32.mrf.mxu2  ;;  %v659_v47 = vunpack.c.h.bf16 %v4433_v19  ;;  %v1119_v19 = vmul.f32 %v3685_v39, %v647_v38 }
 0x155   :  { %v4583_v54 = vperm.slane %v4580_v22, 6  ;;  %v4598_v43 = vperm.slane %v4580_v22, 5 }
 0x156   :  { %2106 = vmatmul.bf16.gmra.mxu3 %v1352_v16  ;;  %v3063_v16 = vld [vmem:[%s6590_s2 + $0x10] sm:$0xff] }
 0x157   :  { %v731_v46 = vmul.f32 %v4583_v54, %v259_v45  ;;  %v744_v25 = vmul.f32 %v4583_v54, %v272_v53  ;;  %v258_v1 = vunpack.c.h.bf16 %v3063_v16  ;;  %v271_v45 = vunpack.c.h.bf16 %v3064_v51 }
 0x158   :  { %v1881_v15 = vpop.f32.mrf.mxu1  ;;  %v2163_v23 = vpop.f32.mrf.mxu0  ;;  %v1132_v53 = vmul.f32 %v3685_v39, %v660_v55 }
 0x159   :  { %v2067_v57 = vpop.f32.mrf.mxu3  ;;  %v1173_v21 = vpack.c.bf16 %v744_v25, %v731_v46  ;;  %v1118_v46 = vmul.f32 %v3690_v42, %v646_v61  ;;  %v1131_v25 = vmul.f32 %v3690_v42, %v659_v47  ;;  %v4612_v16 = vmul.f32 %v4598_v43, %v271_v45  ;;  %v1562_v61 = vld [vmem:[%s6589_s0 + $0x570] sm:$0xff]  ;;  %v1563_v47 = vld [vmem:[%s6589_s0 + $0x578] sm:$0xff] }
 0x15a   :  { %v2068_v35 = vadd.f32 %v2067_v57, %v1974_v37  ;;  %v1882_v37 = vadd.f32 %v1881_v15, %v3919_v7  ;;  %v4609_v57 = vmul.f32 %v4598_v43, %v258_v1  ;;  %v241_v1 = vld [vmem:[%s6590_s2 + $0x690] sm:$0xff]  ;;  %v1679_v45 = vpack.c.bf16 %v1563_v47, %v1562_v61 }
 0x15b   :  { %2318 = vmatmul.bf16.vlgmr.msra.gmra.mxu2 %v1173_v21  ;;  %v1365_v51 = vpack.c.bf16 %v1131_v25, %v1118_v46  ;;  %v673_v47 = vunpack.c.l.bf16 %v241_v1  ;;  %v1591_v1 = vld [vmem:[%s6589_s0 + $0x658] sm:$0xff] }
 0x15c   :  { %v4601_v5 = vadd.f32 %v2161_v60, %v2068_v35  ;;  %v1976_v40 = vadd.f32 %v4443_v0, %v1882_v37  ;;  %v4614_v7 = vpop.f32.mrf.mxu2  ;;  %v1366_v35 = vpack.c.bf16 %v1132_v53, %v1119_v19  ;;  %v248_v19 = vld [vmem:[%s6590_s2 + $0x6c4] sm:$0xff]  ;;  %2686 = vmatpush.bf16.msrb.mxu2 %v1679_v45 }
 0x15d   :  { %v4640_v53 = vld [vmem:[%s6590_s2 + $0x80] sm:$0xff]  ;;  %v686_v45 = vunpack.c.l.bf16 %v248_v19 }
 0x15e   :  { %6608 = vst [vmem:[#allocation11_spill] sm:$0xff] %v4601_v5  ;;  %v285_v46 = vunpack.c.l.bf16 %v4640_v53 }
 0x160   :  { %v1884_v15 = vpop.f32.mrf.mxu1  ;;  %v2166_v38 = vpop.f32.mrf.mxu0 }
 0x161   :  { %v2069_v60 = vpop.f32.mrf.mxu3  ;;  %v1885_v55 = vadd.f32 %v1884_v15, %v3949_v48  ;;  %v6610_v48 = vpack.c.bf16 %v4475_v62, %v4472_v26  ;;  %v1579_v26 = vld [vmem:[%s6589_s0 + $0x5f8] sm:$0xff]  ;;  %v1546_v62 = vld [vmem:[%s6589_s0 + $0x4f0] sm:$0xff] }
 0x162   :  { %v2070_v0 = vadd.f32 %v2069_v60, %v1976_v40 }
 0x163   :  { %1923 = vmatmul.bf16.gmra.mxu1 %v6610_v48  ;;  %2205 = vmatmul.bf16.gmra.mxu0 %v1366_v35  ;;  %v1979_v40 = vadd.f32 %v4463_v6, %v1885_v55  ;;  %v1578_v6 = vld [vmem:[%s6589_s0 + $0x5f0] sm:$0xff]  ;;  %v1547_v35 = vld [vmem:[%s6589_s0 + $0x4f8] sm:$0xff] }
 0x164   :  { %v4628_v37 = vadd.f32 %v2163_v23, %v2070_v0  ;;  %v4645_v23 = vld [vmem:[%s6590_s2 + $0xb4] sm:$0xff]  ;;  %v1687_v60 = vpack.c.bf16 %v1579_v26, %v1578_v6  ;;  %v4661_v0 = vpop.f32.mrf.mxu2  ;;  %v1671_v15 = vpack.c.bf16 %v1547_v35, %v1546_v62  ;;  %v672_v6 = vunpack.c.h.bf16 %v4498_v3 }
 0x165   :  { %v298_v25 = vunpack.c.l.bf16 %v4645_v23  ;;  %v685_v26 = vunpack.c.h.bf16 %v4503_v52  ;;  %v1590_v62 = vld [vmem:[%s6589_s0 + $0x650] sm:$0xff]  ;;  %v1145_v3 = vmul.f32 %v3685_v39, %v673_v47  ;;  %v1158_v52 = vmul.f32 %v3685_v39, %v686_v45 }
 0x166   :  { %6609 = vst [vmem:[#allocation12_spill] sm:$0xff] %v4628_v37  ;;  %2111 = vmatmul.bf16.gmra.mxu3 %v1365_v51  ;;  %v757_v51 = vmul.f32 %v4583_v54, %v285_v46  ;;  %2592 = vmatpush.bf16.msrb.mxu1 %v1671_v15  ;;  %v1693_v19 = vpack.c.bf16 %v1591_v1, %v1590_v62  ;;  %v4707_v62 = vld [vmem:[%s6590_s2 + $0xe8] sm:$0xff] }
 0x167   :  { %v770_v55 = vmul.f32 %v4583_v54, %v298_v25  ;;  %2780 = vmatpush.bf16.msrb.mxu3 %v1687_v60  ;;  %v3066_v25 = vld [vmem:[%s6590_s2 + $0xac] sm:$0xff]  ;;  %v1157_v35 = vmul.f32 %v3690_v42, %v685_v26  ;;  %v1379_v39 = vpack.c.bf16 %v1158_v52, %v1145_v3 }
 0x168   :  { %v1886_v21 = vpop.f32.mrf.mxu1  ;;  %v2168_v9 = vpop.f32.mrf.mxu0  ;;  %v297_v60 = vunpack.c.h.bf16 %v3066_v25  ;;  %2876 = vmatpush.bf16.msrb.mxu0 %v1693_v19 }
 0x169   :  { %v2072_v61 = vpop.f32.mrf.mxu3  ;;  %v1186_v37 = vpack.c.bf16 %v770_v55, %v757_v51  ;;  %v1887_v5 = vadd.f32 %v1886_v21, %v3993_v63  ;;  %v3065_v63 = vld [vmem:[%s6590_s2 + $0x78] sm:$0xff] }
 0x16a   :  { %v2073_v48 = vadd.f32 %v2072_v61, %v1979_v40  ;;  %v284_v21 = vunpack.c.h.bf16 %v3065_v63  ;;  %v4693_v47 = vmul.f32 %v4598_v43, %v297_v60  ;;  %v260_v63 = vunpack.c.h.bf16 %v4562_v34 }
 0x16b   :  { %v1981_v46 = vadd.f32 %v4516_v59, %v1887_v5  ;;  %2323 = vmatmul.bf16.gmra.mxu2 %v1186_v37 }
 0x16c   :  { %v4674_v40 = vadd.f32 %v2166_v38, %v2073_v48  ;;  %v1144_v38 = vmul.f32 %v3690_v42, %v672_v6  ;;  %v4687_v59 = vpop.f32.mrf.mxu2  ;;  %v4690_v61 = vmul.f32 %v4598_v43, %v284_v21  ;;  %v6611_v6 = vpack.c.bf16 %v4548_v28, %v4545_v50  ;;  %v26_v50 = vld [vmem:[%s6590_s2 + $0x54] sm:$0xff] }
 0x16d   :  { %v311_v28 = vunpack.c.l.bf16 %v4707_v62  ;;  %v274_v25 = vunpack.c.l.bf16 %v26_v50 }
 0x16e   :  { %v1378_v55 = vpack.c.bf16 %v1157_v35, %v1144_v38  ;;  %v1185_v42 = vpack.c.bf16 %v4693_v47, %v4690_v61  ;;  %v54_v61 = vld [vmem:[%s6590_s2 + $0x124] sm:$0xff] }
 0x170   :  { %v1889_v15 = vpop.f32.mrf.mxu1  ;;  %v2171_v51 = vpop.f32.mrf.mxu0 }
 0x171   :  { %v2074_v5 = vpop.f32.mrf.mxu3  ;;  %v1890_v45 = vadd.f32 %v1889_v15, %v4011_v10  ;;  %v4712_v10 = vld [vmem:[%s6590_s2 + $0x11c] sm:$0xff] }
 0x172   :  { %v2075_v37 = vadd.f32 %v2074_v5, %v1981_v46  ;;  %v324_v1 = vunpack.c.l.bf16 %v4712_v10  ;;  %v783_v46 = vmul.f32 %v4583_v54, %v311_v28 }
 0x173   :  { %1928 = vmatmul.bf16.gmra.mxu1 %v6611_v6  ;;  %2210 = vmatmul.bf16.gmra.mxu0 %v1379_v39  ;;  %v1984_v26 = vadd.f32 %v4542_v17, %v1890_v45  ;;  %v696_v17 = vld [vmem:[%s6591_s1 + $0x8] sm:$0x1f]  ;;  %v273_v39 = vunpack.c.h.bf16 %v4567_v44 }
 0x174   :  { %v4698_v48 = vadd.f32 %v2168_v9, %v2075_v37  ;;  %v19_v9 = vld [vmem:[%s6590_s2 + $0x20] sm:$0xff]  ;;  %v4725_v19 = vpop.f32.mrf.mxu2  ;;  %v796_v3 = vmul.f32 %v4583_v54, %v324_v1  ;;  %v4730_v60 = vperm.slane %v696_v17, 0  ;;  %v4734_v37 = vperm.slane %v4580_v22, 7  ;;  %v3068_v22 = vld [vmem:[%s6590_s2 + $0x114] sm:$0xff] }
 0x175   :  { %v261_v21 = vunpack.c.l.bf16 %v19_v9  ;;  %v323_v50 = vunpack.c.h.bf16 %v3068_v22 }
 0x176   :  { %2116 = vmatmul.bf16.gmra.mxu3 %v1378_v55  ;;  %v1199_v15 = vpack.c.bf16 %v796_v3, %v783_v46  ;;  %v746_v9 = vmul.f32 %v4730_v60, %v274_v25 }
 0x177   :  { %v733_v34 = vmul.f32 %v4730_v60, %v261_v21  ;;  %v4756_v25 = vmul.f32 %v4598_v43, %v323_v50 }
 0x178   :  { %v1891_v35 = vpop.f32.mrf.mxu1  ;;  %v2173_v5 = vpop.f32.mrf.mxu0 }
 0x179   :  { %v2077_v52 = vpop.f32.mrf.mxu3  ;;  %v1892_v55 = vadd.f32 %v1891_v35, %v4047_v36  ;;  %v732_v36 = vmul.f32 %v4734_v37, %v260_v63  ;;  %v1175_v28 = vpack.c.bf16 %v746_v9, %v733_v34  ;;  %v33_v63 = vld [vmem:[%s6590_s2 + $0x88] sm:$0xff] }
 0x17a   :  { %v2078_v38 = vadd.f32 %v2077_v52, %v1984_v26  ;;  %v3067_v26 = vld [vmem:[%s6590_s2 + $0xe0] sm:$0xff] }
 0x17b   :  { %v1986_v6 = vadd.f32 %v4585_v49, %v1892_v55  ;;  %2328 = vmatmul.bf16.gmra.mxu2 %v1199_v15  ;;  %v310_v44 = vunpack.c.h.bf16 %v3067_v26  ;;  %v6612_v15 = vpack.c.bf16 %v4612_v16, %v4609_v57  ;;  %v1560_v57 = vld [vmem:[%s6589_s0 + $0x560] sm:$0xff]  ;;  %v1561_v16 = vld [vmem:[%s6589_s0 + $0x568] sm:$0xff] }
 0x17c   :  { %v4737_v45 = vadd.f32 %v2171_v51, %v2078_v38  ;;  %v745_v51 = vmul.f32 %v4734_v37, %v273_v39  ;;  %v4750_v49 = vpop.f32.mrf.mxu2  ;;  %v1678_v26 = vpack.c.bf16 %v1561_v16, %v1560_v57  ;;  %v299_v57 = vunpack.c.h.bf16 %v4645_v23  ;;  %v1544_v16 = vld [vmem:[%s6589_s0 + $0x4e0] sm:$0xff] }
 0x17d   :  { %v4753_v21 = vmul.f32 %v4598_v43, %v310_v44  ;;  %v1577_v44 = vld [vmem:[%s6589_s0 + $0x5e8] sm:$0xff] }
 0x17e   :  { %v1174_v52 = vpack.c.bf16 %v745_v51, %v732_v36  ;;  %2687 = vmatpush.bf16.msrb.mxu2 %v1678_v26  ;;  %v3069_v26 = vld [vmem:[%s6590_s2 + $0x148] sm:$0xff] }
 0x17f   :  { %v1198_v35 = vpack.c.bf16 %v4756_v25, %v4753_v21  ;;  %v68_v21 = vld [vmem:[%s6590_s2 + $0x18c] sm:$0xff]  ;;  %v1559_v25 = vld [vmem:[%s6589_s0 + $0x558] sm:$0xff] }
 0x180   :  { %v1894_v46 = vpop.f32.mrf.mxu1  ;;  %v2176_v3 = vpop.f32.mrf.mxu0 }
 0x181   :  { %v2079_v17 = vpop.f32.mrf.mxu3  ;;  %v1895_v38 = vadd.f32 %v1894_v46, %v4081_v12  ;;  %v40_v12 = vld [vmem:[%s6590_s2 + $0xbc] sm:$0xff] }
 0x182   :  { %v2080_v1 = vadd.f32 %v2079_v17, %v1986_v6  ;;  %v4776_v6 = vld [vmem:[%s6590_s2 + $0x150] sm:$0xff] }
 0x183   :  { %2224 = vmatmul.bf16.vlgmr.msra.gmra.mxu1 %v6612_v15  ;;  %2506 = vmatmul.bf16.vlgmr.msra.gmra.mxu0 %v1175_v28  ;;  %v1989_v55 = vadd.f32 %v4614_v7, %v1895_v38  ;;  %v1576_v7 = vld [vmem:[%s6589_s0 + $0x5e0] sm:$0xff]  ;;  %v337_v34 = vunpack.c.l.bf16 %v4776_v6  ;;  %v287_v28 = vunpack.c.l.bf16 %v33_v63  ;;  %v286_v15 = vunpack.c.h.bf16 %v4640_v53 }
 0x184   :  { %v4764_v39 = vadd.f32 %v2173_v5, %v2080_v1  ;;  %v4781_v5 = vld [vmem:[%s6590_s2 + $0x184] sm:$0xff]  ;;  %v4797_v22 = vpop.f32.mrf.mxu2  ;;  %v1686_v50 = vpack.c.bf16 %v1577_v44, %v1576_v7  ;;  %v300_v1 = vunpack.c.l.bf16 %v40_v12  ;;  %v336_v44 = vunpack.c.h.bf16 %v3069_v26 }
 0x185   :  { %v350_v9 = vunpack.c.l.bf16 %v4781_v5  ;;  %v809_v36 = vmul.f32 %v4583_v54, %v337_v34  ;;  %v1545_v7 = vld [vmem:[%s6589_s0 + $0x4e8] sm:$0xff]  ;;  %v759_v53 = vmul.f32 %v4730_v60, %v287_v28 }
 0x186   :  { %2412 = vmatmul.bf16.vlgmr.msra.gmra.mxu3 %v1174_v52  ;;  %v1670_v12 = vpack.c.bf16 %v1545_v7, %v1544_v16  ;;  %v772_v23 = vmul.f32 %v4730_v60, %v300_v1  ;;  %v4826_v16 = vmul.f32 %v4598_v43, %v336_v44  ;;  %v326_v44 = vunpack.c.l.bf16 %v54_v61 }
 0x187   :  { %v822_v51 = vmul.f32 %v4583_v54, %v350_v9  ;;  %2781 = vmatpush.bf16.msrb.mxu3 %v1686_v50 }
 0x188   :  { %v1896_v52 = vpop.f32.mrf.mxu1  ;;  %v2178_v38 = vpop.f32.mrf.mxu0  ;;  %2593 = vmatpush.bf16.msrb.mxu1 %v1670_v12  ;;  %v4843_v12 = vld [vmem:[%s6590_s2 + $0x1b8] sm:$0xff] }
 0x189   :  { %v2082_v17 = vpop.f32.mrf.mxu3  ;;  %v1212_v34 = vpack.c.bf16 %v822_v51, %v809_v36  ;;  %v1897_v63 = vadd.f32 %v1896_v52, %v4126_v18  ;;  %v3070_v18 = vld [vmem:[%s6590_s2 + $0x17c] sm:$0xff] }
 0x18a   :  { %v2083_v46 = vadd.f32 %v2082_v17, %v1989_v55  ;;  %v349_v50 = vunpack.c.h.bf16 %v3070_v18  ;;  %v1188_v17 = vpack.c.bf16 %v772_v23, %v759_v53 }
 0x18b   :  { %v1991_v9 = vadd.f32 %v4661_v0, %v1897_v63  ;;  %2333 = vmatmul.bf16.gmra.mxu2 %v1212_v34  ;;  %v771_v0 = vmul.f32 %v4734_v37, %v299_v57 }
 0x18c   :  { %v4810_v55 = vadd.f32 %v2176_v3, %v2083_v46  ;;  %v758_v3 = vmul.f32 %v4734_v37, %v286_v15  ;;  %v4829_v7 = vmul.f32 %v4598_v43, %v349_v50 }
 0x18e   :  { %v4823_v36 = vpop.f32.mrf.mxu2  ;;  %v1187_v52 = vpack.c.bf16 %v771_v0, %v758_v3  ;;  %v1211_v15 = vpack.c.bf16 %v4829_v7, %v4826_v16  ;;  %v312_v0 = vunpack.c.h.bf16 %v4707_v62  ;;  %v82_v16 = vld [vmem:[%s6590_s2 + $0x1f4] sm:$0xff] }
 0x190   :  { %v1899_v1 = vpop.f32.mrf.mxu1  ;;  %v2181_v46 = vpop.f32.mrf.mxu0 }
 0x191   :  { %v2084_v51 = vpop.f32.mrf.mxu3  ;;  %v1900_v34 = vadd.f32 %v1899_v1, %v3877_v41  ;;  %v4848_v41 = vld [vmem:[%s6590_s2 + $0x1ec] sm:$0xff]  ;;  %v1588_v1 = vld [vmem:[%s6589_s0 + $0x640] sm:$0xff] }
 0x192   :  { %v2085_v28 = vadd.f32 %v2084_v51, %v1991_v9  ;;  %v376_v47 = vunpack.c.l.bf16 %v4848_v41  ;;  %v325_v51 = vunpack.c.h.bf16 %v4712_v10  ;;  %v798_v10 = vmul.f32 %v4730_v60, %v326_v44 }
 0x193   :  { %2229 = vmatmul.bf16.gmra.mxu1 %v1185_v42  ;;  %2511 = vmatmul.bf16.gmra.mxu0 %v1188_v17  ;;  %v1994_v63 = vadd.f32 %v4687_v59, %v1900_v34  ;;  %v363_v59 = vunpack.c.l.bf16 %v4843_v12 }
 0x194   :  { %v4834_v57 = vadd.f32 %v2178_v38, %v2085_v28  ;;  %v47_v38 = vld [vmem:[%s6590_s2 + $0xf0] sm:$0xff]  ;;  %v848_v53 = vmul.f32 %v4583_v54, %v376_v47 }
 0x195   :  { %v835_v9 = vmul.f32 %v4583_v54, %v363_v59  ;;  %v313_v26 = vunpack.c.l.bf16 %v47_v38  ;;  %v3072_v59 = vld [vmem:[%s6590_s2 + $0x1e4] sm:$0xff] }
 0x196   :  { %2417 = vmatmul.bf16.gmra.mxu3 %v1187_v52  ;;  %v4858_v42 = vpop.f32.mrf.mxu2  ;;  %v1589_v52 = vld [vmem:[%s6589_s0 + $0x648] sm:$0xff]  ;;  %v375_v47 = vunpack.c.h.bf16 %v3072_v59 }
 0x197   :  { %v1225_v17 = vpack.c.bf16 %v848_v53, %v835_v9  ;;  %v1692_v34 = vpack.c.bf16 %v1589_v52, %v1588_v1  ;;  %v785_v62 = vmul.f32 %v4730_v60, %v313_v26  ;;  %v797_v9 = vmul.f32 %v4734_v37, %v325_v51 }
 0x198   :  { %v1901_v50 = vpop.f32.mrf.mxu1  ;;  %v2183_v3 = vpop.f32.mrf.mxu0 }
 0x199   :  { %v2087_v23 = vpop.f32.mrf.mxu3  ;;  %v1902_v28 = vadd.f32 %v1901_v50, %v3904_v31  ;;  %v3071_v31 = vld [vmem:[%s6590_s2 + $0x1b0] sm:$0xff]  ;;  %2877 = vmatpush.bf16.msrb.mxu0 %v1692_v34  ;;  %v61_v34 = vld [vmem:[%s6590_s2 + $0x158] sm:$0xff] }
 0x19a   :  { %v2088_v18 = vadd.f32 %v2087_v23, %v1994_v63  ;;  %v362_v61 = vunpack.c.h.bf16 %v3071_v31  ;;  %v1201_v23 = vpack.c.bf16 %v798_v10, %v785_v62 }
 0x19b   :  { %v1996_v63 = vadd.f32 %v4725_v19, %v1902_v28  ;;  %2338 = vmatmul.bf16.gmra.mxu2 %v1225_v17  ;;  %v4890_v28 = vmul.f32 %v4598_v43, %v375_v47  ;;  %v339_v47 = vunpack.c.l.bf16 %v61_v34 }
 0x19c   :  { %v4871_v38 = vadd.f32 %v2181_v46, %v2088_v18  ;;  %v784_v46 = vmul.f32 %v4734_v37, %v312_v0  ;;  %v4887_v17 = vmul.f32 %v4598_v43, %v362_v61 }
 0x19e   :  { %v4884_v19 = vpop.f32.mrf.mxu2  ;;  %v1200_v50 = vpack.c.bf16 %v797_v9, %v784_v46  ;;  %v1224_v0 = vpack.c.bf16 %v4890_v28, %v4887_v17  ;;  %v352_v46 = vunpack.c.l.bf16 %v68_v21  ;;  %v96_v17 = vld [vmem:[%s6590_s2 + $0x25c] sm:$0xff] }
 0x1a0   :  { %v1904_v44 = vpop.f32.mrf.mxu1  ;;  %v2186_v18 = vpop.f32.mrf.mxu0 }
 0x1a1   :  { %v2089_v53 = vpop.f32.mrf.mxu3  ;;  %v1905_v1 = vadd.f32 %v1904_v44, %v3943_v27  ;;  %v4907_v27 = vld [vmem:[%s6590_s2 + $0x220] sm:$0xff]  ;;  %v351_v44 = vunpack.c.h.bf16 %v4781_v5 }
 0x1a2   :  { %v2090_v26 = vadd.f32 %v2089_v53, %v1996_v63 }
 0x1a3   :  { %2234 = vmatmul.bf16.gmra.mxu1 %v1198_v35  ;;  %2516 = vmatmul.bf16.gmra.mxu0 %v1201_v23  ;;  %v1999_v52 = vadd.f32 %v4750_v49, %v1905_v1  ;;  %v1558_v49 = vld [vmem:[%s6589_s0 + $0x550] sm:$0xff]  ;;  %v389_v35 = vunpack.c.l.bf16 %v4907_v27  ;;  %v1575_v1 = vld [vmem:[%s6589_s0 + $0x5d8] sm:$0xff] }
 0x1a4   :  { %v4895_v51 = vadd.f32 %v2183_v3, %v2090_v26  ;;  %v4912_v3 = vld [vmem:[%s6590_s2 + $0x254] sm:$0xff]  ;;  %v1677_v62 = vpack.c.bf16 %v1559_v25, %v1558_v49  ;;  %v338_v26 = vunpack.c.h.bf16 %v4776_v6 }
 0x1a5   :  { %v402_v63 = vunpack.c.l.bf16 %v4912_v3  ;;  %v861_v31 = vmul.f32 %v4583_v54, %v389_v35  ;;  %v1543_v6 = vld [vmem:[%s6589_s0 + $0x4d8] sm:$0xff] }
 0x1a6   :  { %2422 = vmatmul.bf16.gmra.mxu3 %v1200_v50  ;;  %v4925_v10 = vpop.f32.mrf.mxu2  ;;  %2688 = vmatpush.bf16.msrb.mxu2 %v1677_v62  ;;  %v1574_v50 = vld [vmem:[%s6589_s0 + $0x5d0] sm:$0xff]  ;;  %v824_v62 = vmul.f32 %v4730_v60, %v352_v46 }
 0x1a7   :  { %v874_v61 = vmul.f32 %v4583_v54, %v402_v63  ;;  %v1685_v21 = vpack.c.bf16 %v1575_v1, %v1574_v50  ;;  %v811_v63 = vmul.f32 %v4730_v60, %v339_v47 }
 0x1a8   :  { %v1906_v53 = vpop.f32.mrf.mxu1  ;;  %v2188_v23 = vpop.f32.mrf.mxu0 }
 0x1a9   :  { %v2092_v59 = vpop.f32.mrf.mxu3  ;;  %v1238_v49 = vpack.c.bf16 %v874_v61, %v861_v31  ;;  %v1907_v34 = vadd.f32 %v1906_v53, %v3983_v8  ;;  %2782 = vmatpush.bf16.msrb.mxu3 %v1685_v21  ;;  %v3073_v8 = vld [vmem:[%s6590_s2 + $0x218] sm:$0xff]  ;;  %v3074_v61 = vld [vmem:[%s6590_s2 + $0x24c] sm:$0xff] }
 0x1aa   :  { %v2093_v9 = vadd.f32 %v2092_v59, %v1999_v52  ;;  %v1542_v52 = vld [vmem:[%s6589_s0 + $0x4d0] sm:$0xff]  ;;  %v388_v31 = vunpack.c.h.bf16 %v3073_v8  ;;  %v401_v59 = vunpack.c.h.bf16 %v3074_v61 }
 0x1ab   :  { %v1669_v5 = vpack.c.bf16 %v1543_v6, %v1542_v52  ;;  %v2001_v35 = vadd.f32 %v4797_v22, %v1907_v34  ;;  %2343 = vmatmul.bf16.gmra.mxu2 %v1238_v49  ;;  %v823_v22 = vmul.f32 %v4734_v37, %v351_v44 }
 0x1ac   :  { %v4944_v25 = vadd.f32 %v2186_v18, %v2093_v9  ;;  %v810_v18 = vmul.f32 %v4734_v37, %v338_v26  ;;  %v1214_v9 = vpack.c.bf16 %v824_v62, %v811_v63  ;;  %v4960_v34 = vmul.f32 %v4598_v43, %v388_v31 }
 0x1ad   :  { %2594 = vmatpush.bf16.msrb.mxu1 %v1669_v5  ;;  %v4963_v21 = vmul.f32 %v4598_v43, %v401_v59  ;;  %v4977_v5 = vld [vmem:[%s6590_s2 + $0x288] sm:$0xff]  ;;  %v378_v31 = vunpack.c.l.bf16 %v82_v16 }
 0x1ae   :  { %v4957_v47 = vpop.f32.mrf.mxu2  ;;  %v1213_v49 = vpack.c.bf16 %v823_v22, %v810_v18  ;;  %v364_v22 = vunpack.c.h.bf16 %v4843_v12  ;;  %v3076_v12 = vld [vmem:[%s6590_s2 + $0x2b4] sm:$0xff] }
 0x1af   :  { %v1237_v26 = vpack.c.bf16 %v4963_v21, %v4960_v34  ;;  %v110_v34 = vld [vmem:[%s6590_s2 + $0x2c4] sm:$0xff] }
 0x1b0   :  { %v1909_v50 = vpop.f32.mrf.mxu1  ;;  %v2191_v1 = vpop.f32.mrf.mxu0 }
 0x1b1   :  { %v2094_v46 = vpop.f32.mrf.mxu3  ;;  %v1910_v52 = vadd.f32 %v1909_v50, %v3861_v13  ;;  %v4982_v13 = vld [vmem:[%s6590_s2 + $0x2bc] sm:$0xff] }
 0x1b2   :  { %v2095_v53 = vadd.f32 %v2094_v46, %v2001_v35  ;;  %v428_v7 = vunpack.c.l.bf16 %v4982_v13  ;;  %v377_v46 = vunpack.c.h.bf16 %v4848_v41  ;;  %v427_v41 = vunpack.c.h.bf16 %v3076_v12 }
 0x1b3   :  { %2239 = vmatmul.bf16.gmra.mxu1 %v1211_v15  ;;  %2521 = vmatmul.bf16.gmra.mxu0 %v1214_v9  ;;  %v2004_v6 = vadd.f32 %v4823_v36, %v1910_v52  ;;  %v415_v36 = vunpack.c.l.bf16 %v4977_v5 }
 0x1b4   :  { %v4968_v44 = vadd.f32 %v2188_v23, %v2095_v53  ;;  %v75_v23 = vld [vmem:[%s6590_s2 + $0x1c0] sm:$0xff]  ;;  %v900_v63 = vmul.f32 %v4583_v54, %v428_v7 }
 0x1b5   :  { %v887_v35 = vmul.f32 %v4583_v54, %v415_v36  ;;  %v365_v8 = vunpack.c.l.bf16 %v75_v23  ;;  %v850_v36 = vmul.f32 %v4730_v60, %v378_v31 }
 0x1b6   :  { %2427 = vmatmul.bf16.gmra.mxu3 %v1213_v49  ;;  %v4992_v15 = vpop.f32.mrf.mxu2 }
 0x1b7   :  { %v1251_v9 = vpack.c.bf16 %v900_v63, %v887_v35  ;;  %v837_v52 = vmul.f32 %v4730_v60, %v365_v8 }
 0x1b8   :  { %v1911_v59 = vpop.f32.mrf.mxu1  ;;  %v2193_v18 = vpop.f32.mrf.mxu0 }
 0x1b9   :  { %v2097_v62 = vpop.f32.mrf.mxu3  ;;  %v1912_v53 = vadd.f32 %v1911_v59, %v3879_v33  ;;  %v836_v33 = vmul.f32 %v4734_v37, %v364_v22  ;;  %v1227_v7 = vpack.c.bf16 %v850_v36, %v837_v52 }
 0x1ba   :  { %v2098_v61 = vadd.f32 %v2097_v62, %v2004_v6  ;;  %v3075_v6 = vld [vmem:[%s6590_s2 + $0x280] sm:$0xff] }
 0x1bb   :  { %v2006_v49 = vadd.f32 %v4858_v42, %v1912_v53  ;;  %2348 = vmatmul.bf16.gmra.mxu2 %v1251_v9  ;;  %v414_v23 = vunpack.c.h.bf16 %v3075_v6  ;;  %v89_v53 = vld [vmem:[%s6590_s2 + $0x228] sm:$0xff] }
 0x1bc   :  { %v4999_v50 = vadd.f32 %v2191_v1, %v2098_v61  ;;  %v849_v1 = vmul.f32 %v4734_v37, %v377_v46  ;;  %v5018_v61 = vmul.f32 %v4598_v43, %v427_v41 }
 0x1bd   :  { %v5015_v31 = vmul.f32 %v4598_v43, %v414_v23  ;;  %v404_v23 = vunpack.c.l.bf16 %v96_v17  ;;  %v1573_v17 = vld [vmem:[%s6589_s0 + $0x5c8] sm:$0xff] }
 0x1be   :  { %v5012_v42 = vpop.f32.mrf.mxu2  ;;  %v1226_v8 = vpack.c.bf16 %v849_v1, %v836_v33  ;;  %v390_v1 = vunpack.c.h.bf16 %v4907_v27  ;;  %v1557_v27 = vld [vmem:[%s6589_s0 + $0x548] sm:$0xff] }
 0x1c0   :  { %v1914_v63 = vpop.f32.mrf.mxu1  ;;  %v2196_v62 = vpop.f32.mrf.mxu0 }
 0x1c1   :  { %v2099_v16 = vpop.f32.mrf.mxu3  ;;  %v1915_v59 = vadd.f32 %v1914_v63, %v3908_v58  ;;  %v5035_v58 = vld [vmem:[%s6590_s2 + $0x2f0] sm:$0xff]  ;;  %v1556_v63 = vld [vmem:[%s6589_s0 + $0x540] sm:$0xff] }
 0x1c2   :  { %v2100_v35 = vadd.f32 %v2099_v16, %v2006_v49  ;;  %v403_v16 = vunpack.c.h.bf16 %v4912_v3  ;;  %v1572_v3 = vld [vmem:[%s6589_s0 + $0x5c0] sm:$0xff] }
 0x1c3   :  { %2244 = vmatmul.bf16.gmra.mxu1 %v1224_v0  ;;  %2526 = vmatmul.bf16.gmra.mxu0 %v1227_v7  ;;  %v2009_v9 = vadd.f32 %v4884_v19, %v1915_v59  ;;  %v441_v19 = vunpack.c.l.bf16 %v5035_v58  ;;  %v391_v0 = vunpack.c.l.bf16 %v89_v53  ;;  %v1586_v7 = vld [vmem:[%s6589_s0 + $0x630] sm:$0xff]  ;;  %v6613_v59 = vld [vmem:[#allocation2_spill] sm:$0xff] }
 0x1c4   :  { %v5023_v46 = vadd.f32 %v2193_v18, %v2100_v35  ;;  %v5040_v18 = vld [vmem:[%s6590_s2 + $0x324] sm:$0xff]  ;;  %v1587_v35 = vld [vmem:[%s6589_s0 + $0x638] sm:$0xff] }
 0x1c5   :  { %v454_v28 = vunpack.c.l.bf16 %v5040_v18  ;;  %v913_v52 = vmul.f32 %v4583_v54, %v441_v19  ;;  %v1691_v53 = vpack.c.bf16 %v1587_v35, %v1586_v7  ;;  %v863_v19 = vmul.f32 %v4730_v60, %v391_v0 }
 0x1c6   :  { %2432 = vmatmul.bf16.gmra.mxu3 %v1226_v8  ;;  %v5047_v49 = vpop.f32.mrf.mxu2  ;;  %v876_v35 = vmul.f32 %v4730_v60, %v404_v23  ;;  %v862_v0 = vmul.f32 %v4734_v37, %v390_v1 }
 0x1c7   :  { %v926_v36 = vmul.f32 %v4583_v54, %v454_v28  ;;  %v1676_v28 = vpack.c.bf16 %v1557_v27, %v1556_v63  ;;  %2878 = vmatpush.bf16.msrb.mxu0 %v1691_v53  ;;  %v875_v63 = vmul.f32 %v4734_v37, %v403_v16  ;;  %v5097_v16 = vld [vmem:[%s6590_s2 + $0x358] sm:$0xff] }
 0x1c8   :  { %v1916_v41 = vpop.f32.mrf.mxu1  ;;  %v2198_v33 = vpop.f32.mrf.mxu0 }
 0x1c9   :  { %v2102_v6 = vpop.f32.mrf.mxu3  ;;  %v1264_v8 = vpack.c.bf16 %v926_v36, %v913_v52  ;;  %v1540_v52 = vld [vmem:[%s6589_s0 + $0x4c0] sm:$0xff]  ;;  %v1541_v36 = vld [vmem:[%s6589_s0 + $0x4c8] sm:$0xff]  ;;  %2689 = vmatpush.bf16.msrb.mxu2 %v1676_v28 }
 0x1ca   :  { %v2103_v12 = vadd.f32 %v2102_v6, %v2009_v9  ;;  %v1917_v9 = vadd.f32 %v1916_v41, %v6613_v59  ;;  %v1684_v6 = vpack.c.bf16 %v1573_v17, %v1572_v3  ;;  %v1668_v59 = vpack.c.bf16 %v1541_v36, %v1540_v52 }
 0x1cb   :  { %2353 = vmatmul.bf16.gmra.mxu2 %v1264_v8  ;;  %v1240_v17 = vpack.c.bf16 %v876_v35, %v863_v19  ;;  %v5102_v8 = vld [vmem:[%s6590_s2 + $0x38c] sm:$0xff]  ;;  %v430_v36 = vunpack.c.l.bf16 %v110_v34 }
 0x1cc   :  { %v5079_v41 = vadd.f32 %v2196_v62, %v2103_v12  ;;  %v2011_v7 = vadd.f32 %v4925_v10, %v1917_v9  ;;  %2783 = vmatpush.bf16.msrb.mxu3 %v1684_v6  ;;  %2595 = vmatpush.bf16.msrb.mxu1 %v1668_v59  ;;  %v1239_v10 = vpack.c.bf16 %v875_v63, %v862_v0  ;;  %v6614_v9 = vld [vmem:[#allocation3_spill] sm:$0xff]  ;;  %v480_v21 = vunpack.c.l.bf16 %v5102_v8 }
 0x1cd   :  { %v416_v0 = vunpack.c.h.bf16 %v4977_v5  ;;  %v429_v63 = vunpack.c.h.bf16 %v4982_v13 }
 0x1ce   :  { %v5085_v27 = vpop.f32.mrf.mxu2  ;;  %v952_v28 = vmul.f32 %v4583_v54, %v480_v21 }
 0x1d0   :  { %v1919_v12 = vpop.f32.mrf.mxu1  ;;  %v2201_v22 = vpop.f32.mrf.mxu0 }
 0x1d1   :  { %v2104_v3 = vpop.f32.mrf.mxu3  ;;  %v1920_v23 = vadd.f32 %v1919_v12, %v6614_v9 }
 0x1d2   :  { %v2105_v62 = vadd.f32 %v2104_v3, %v2011_v7 }
 0x1d3   :  { %2249 = vmatmul.bf16.gmra.mxu1 %v1237_v26  ;;  %2531 = vmatmul.bf16.gmra.mxu0 %v1240_v17  ;;  %v2014_v1 = vadd.f32 %v4957_v47, %v1920_v23  ;;  %v467_v47 = vunpack.c.l.bf16 %v5097_v16  ;;  %v6615_v17 = vld [vmem:[#allocation4_spill] sm:$0xff]  ;;  %v902_v23 = vmul.f32 %v4730_v60, %v430_v36 }
 0x1d4   :  { %v5088_v53 = vadd.f32 %v2198_v33, %v2105_v62  ;;  %v103_v33 = vld [vmem:[%s6590_s2 + $0x290] sm:$0xff] }
 0x1d5   :  { %v939_v19 = vmul.f32 %v4583_v54, %v467_v47  ;;  %v417_v52 = vunpack.c.l.bf16 %v103_v33  ;;  %v901_v33 = vmul.f32 %v4734_v37, %v429_v63 }
 0x1d6   :  { %2437 = vmatmul.bf16.gmra.mxu3 %v1239_v10  ;;  %v5112_v26 = vpop.f32.mrf.mxu2 }
 0x1d7   :  { %v1277_v3 = vpack.c.bf16 %v952_v28, %v939_v19  ;;  %v889_v9 = vmul.f32 %v4730_v60, %v417_v52  ;;  %v6616_v28 = vld [vmem:[#allocation5_spill] sm:$0xff]  ;;  %v6618_v52 = vpack.c.bf16 %v5018_v61, %v5015_v31  ;;  %v124_v31 = vld [vmem:[%s6590_s2 + $0x32c] sm:$0xff] }
 0x1d8   :  { %v1921_v35 = vpop.f32.mrf.mxu1  ;;  %v2203_v59 = vpop.f32.mrf.mxu0 }
 0x1d9   :  { %v2107_v6 = vpop.f32.mrf.mxu3  ;;  %v1922_v62 = vadd.f32 %v1921_v35, %v6615_v17  ;;  %v1253_v13 = vpack.c.bf16 %v902_v23, %v889_v9  ;;  %v5141_v35 = vld [vmem:[%s6590_s2 + $0x3c0] sm:$0xff] }
 0x1da   :  { %v2108_v7 = vadd.f32 %v2107_v6, %v2014_v1  ;;  %v888_v1 = vmul.f32 %v4734_v37, %v416_v0  ;;  %v3077_v0 = vld [vmem:[%s6590_s2 + $0x2e8] sm:$0xff] }
 0x1db   :  { %v2016_v10 = vadd.f32 %v4992_v15, %v1922_v62  ;;  %2358 = vmatmul.bf16.gmra.mxu2 %v1277_v3  ;;  %v440_v63 = vunpack.c.h.bf16 %v3077_v0  ;;  %v3078_v3 = vld [vmem:[%s6590_s2 + $0x31c] sm:$0xff] }
 0x1dc   :  { %v5119_v12 = vadd.f32 %v2201_v22, %v2108_v7  ;;  %v1252_v22 = vpack.c.bf16 %v901_v33, %v888_v1  ;;  %v117_v7 = vld [vmem:[%s6590_s2 + $0x2f8] sm:$0xff]  ;;  %v453_v17 = vunpack.c.h.bf16 %v3078_v3  ;;  %v456_v33 = vunpack.c.l.bf16 %v124_v31 }
 0x1dd   :  { %v443_v62 = vunpack.c.l.bf16 %v117_v7  ;;  %v912_v7 = vmul.f32 %v4598_v43, %v440_v63  ;;  %v1555_v31 = vld [vmem:[%s6589_s0 + $0x538] sm:$0xff]  ;;  %v1538_v63 = vld [vmem:[%s6589_s0 + $0x4b0] sm:$0xff] }
 0x1de   :  { %v5126_v34 = vpop.f32.mrf.mxu2  ;;  %v1571_v0 = vld [vmem:[%s6589_s0 + $0x5b8] sm:$0xff] }
 0x1df   :  { %v1539_v3 = vld [vmem:[%s6589_s0 + $0x4b8] sm:$0xff] }
 0x1e0   :  { %v1924_v21 = vpop.f32.mrf.mxu1  ;;  %v2206_v19 = vpop.f32.mrf.mxu0 }
 0x1e1   :  { %v2109_v5 = vpop.f32.mrf.mxu3  ;;  %v1925_v6 = vadd.f32 %v1924_v21, %v6616_v28  ;;  %v442_v21 = vunpack.c.h.bf16 %v5035_v58  ;;  %v925_v58 = vmul.f32 %v4598_v43, %v453_v17  ;;  %v928_v17 = vmul.f32 %v4730_v60, %v456_v33  ;;  %v6621_v33 = vld [vmem:[#allocation7_spill] sm:$0xff] }
 0x1e2   :  { %v2110_v47 = vadd.f32 %v2109_v5, %v2016_v10 }
 0x1e3   :  { %2254 = vmatmul.bf16.gmra.mxu1 %v6618_v52  ;;  %2536 = vmatmul.bf16.gmra.mxu0 %v1253_v13  ;;  %v2019_v36 = vadd.f32 %v5012_v42, %v1925_v6  ;;  %v493_v42 = vunpack.c.l.bf16 %v5141_v35  ;;  %v6619_v6 = vld [vmem:[#allocation6_spill] sm:$0xff] }
 0x1e4   :  { %v5129_v15 = vadd.f32 %v2203_v59, %v2110_v47  ;;  %v5146_v59 = vld [vmem:[%s6590_s2 + $0x3f4] sm:$0xff] }
 0x1e5   :  { %v506_v61 = vunpack.c.l.bf16 %v5146_v59  ;;  %v965_v9 = vmul.f32 %v4583_v54, %v493_v42  ;;  %v1554_v42 = vld [vmem:[%s6589_s0 + $0x530] sm:$0xff] }
 0x1e6   :  { %6617 = vst [vmem:[#allocation2_spill] sm:$0xff] %v5129_v15  ;;  %2442 = vmatmul.bf16.gmra.mxu3 %v1252_v22  ;;  %v5159_v10 = vpop.f32.mrf.mxu2  ;;  %v455_v22 = vunpack.c.h.bf16 %v5040_v18  ;;  %v915_v18 = vmul.f32 %v4730_v60, %v443_v62  ;;  %v1263_v15 = vpack.c.bf16 %v925_v58, %v912_v7  ;;  %v5205_v7 = vld [vmem:[%s6590_s2 + $0x428] sm:$0xff]  ;;  %v5210_v58 = vld [vmem:[%s6590_s2 + $0x45c] sm:$0xff] }
 0x1e7   :  { %v978_v23 = vmul.f32 %v4583_v54, %v506_v61  ;;  %v1675_v61 = vpack.c.bf16 %v1555_v31, %v1554_v42 }
 0x1e8   :  { %v1926_v13 = vpop.f32.mrf.mxu1  ;;  %v2208_v47 = vpop.f32.mrf.mxu0 }
 0x1e9   :  { %v2112_v1 = vpop.f32.mrf.mxu3  ;;  %v1290_v28 = vpack.c.bf16 %v978_v23, %v965_v9  ;;  %v1927_v52 = vadd.f32 %v1926_v13, %v6619_v6  ;;  %v914_v13 = vmul.f32 %v4734_v37, %v442_v21  ;;  %v927_v6 = vmul.f32 %v4734_v37, %v455_v22  ;;  %2690 = vmatpush.bf16.msrb.mxu2 %v1675_v61  ;;  %v131_v22 = vld [vmem:[%s6590_s2 + $0x360] sm:$0xff] }
 0x1ea   :  { %v2113_v5 = vadd.f32 %v2112_v1, %v2019_v36  ;;  %v1570_v36 = vld [vmem:[%s6589_s0 + $0x5b0] sm:$0xff]  ;;  %v1667_v1 = vpack.c.bf16 %v1539_v3, %v1538_v63  ;;  %v532_v61 = vunpack.c.l.bf16 %v5210_v58 }
 0x1eb   :  { %v2021_v23 = vadd.f32 %v5047_v49, %v1927_v52  ;;  %2363 = vmatmul.bf16.gmra.mxu2 %v1290_v28  ;;  %v1683_v62 = vpack.c.bf16 %v1571_v0, %v1570_v36  ;;  %v1265_v52 = vpack.c.bf16 %v927_v6, %v914_v13  ;;  %v3079_v63 = vld [vmem:[%s6590_s2 + $0x350] sm:$0xff]  ;;  %v469_v6 = vunpack.c.l.bf16 %v131_v22 }
 0x1ec   :  { %v5187_v9 = vadd.f32 %v2206_v19, %v2113_v5  ;;  %2596 = vmatpush.bf16.msrb.mxu1 %v1667_v1  ;;  %v1266_v19 = vpack.c.bf16 %v928_v17, %v915_v18  ;;  %v519_v18 = vunpack.c.l.bf16 %v5205_v7  ;;  %v466_v3 = vunpack.c.h.bf16 %v3079_v63  ;;  %v3080_v1 = vld [vmem:[%s6590_s2 + $0x384] sm:$0xff] }
 0x1ed   :  { %2784 = vmatpush.bf16.msrb.mxu3 %v1683_v62  ;;  %v1004_v17 = vmul.f32 %v4583_v54, %v532_v61  ;;  %v479_v13 = vunpack.c.h.bf16 %v3080_v1 }
 0x1ee   :  { %6620 = vst [vmem:[#allocation3_spill] sm:$0xff] %v5187_v9  ;;  %v5193_v42 = vpop.f32.mrf.mxu2  ;;  %v938_v61 = vmul.f32 %v4598_v43, %v466_v3 }
 0x1ef   :  { %v951_v22 = vmul.f32 %v4598_v43, %v479_v13 }
 0x1f0   :  { %v1929_v9 = vpop.f32.mrf.mxu1  ;;  %v2211_v49 = vpop.f32.mrf.mxu0 }
 0x1f1   :  { %v2114_v31 = vpop.f32.mrf.mxu3  ;;  %v1930_v28 = vadd.f32 %v1929_v9, %v6621_v33  ;;  %v468_v33 = vunpack.c.h.bf16 %v5097_v16 }
 0x1f2   :  { %v2115_v5 = vadd.f32 %v2114_v31, %v2021_v23  ;;  %v991_v23 = vmul.f32 %v4583_v54, %v519_v18 }
 0x1f3   :  { %2259 = vmatmul.bf16.gmra.mxu1 %v1263_v15  ;;  %2541 = vmatmul.bf16.gmra.mxu0 %v1266_v19  ;;  %v2024_v21 = vadd.f32 %v5085_v27, %v1930_v28  ;;  %v138_v15 = vld [vmem:[%s6590_s2 + $0x394] sm:$0xff]  ;;  %v1584_v27 = vld [vmem:[%s6589_s0 + $0x620] sm:$0xff]  ;;  %v481_v28 = vunpack.c.h.bf16 %v5102_v8  ;;  %v940_v16 = vmul.f32 %v4734_v37, %v468_v33 }
 0x1f4   :  { %v5196_v36 = vadd.f32 %v2208_v47, %v2115_v5  ;;  %v1585_v47 = vld [vmem:[%s6589_s0 + $0x628] sm:$0xff]  ;;  %v482_v31 = vunpack.c.l.bf16 %v138_v15  ;;  %v941_v15 = vmul.f32 %v4730_v60, %v469_v6  ;;  %v3081_v33 = vld [vmem:[%s6590_s2 + $0x3b8] sm:$0xff] }
 0x1f5   :  { %v1690_v0 = vpack.c.bf16 %v1585_v47, %v1584_v27  ;;  %v1303_v27 = vpack.c.bf16 %v1004_v17, %v991_v23  ;;  %v6623_v47 = vld [vmem:[#allocation8_spill] sm:$0xff]  ;;  %v953_v8 = vmul.f32 %v4734_v37, %v481_v28  ;;  %v1276_v17 = vpack.c.bf16 %v951_v22, %v938_v61 }
 0x1f6   :  { %6622 = vst [vmem:[#allocation4_spill] sm:$0xff] %v5196_v36  ;;  %2447 = vmatmul.bf16.gmra.mxu3 %v1265_v52  ;;  %v5226_v9 = vpop.f32.mrf.mxu2  ;;  %v492_v28 = vunpack.c.h.bf16 %v3081_v33  ;;  %v1552_v33 = vld [vmem:[%s6589_s0 + $0x520] sm:$0xff] }
 0x1f7   :  { %2879 = vmatpush.bf16.msrb.mxu0 %v1690_v0 }
 0x1f8   :  { %v1931_v5 = vpop.f32.mrf.mxu1  ;;  %v2213_v52 = vpop.f32.mrf.mxu0 }
 0x1f9   :  { %v2117_v62 = vpop.f32.mrf.mxu3  ;;  %v1932_v18 = vadd.f32 %v1931_v5, %v6623_v47  ;;  %v152_v5 = vld [vmem:[%s6590_s2 + $0x3fc] sm:$0xff] }
 0x1fa   :  { %v2118_v19 = vadd.f32 %v2117_v62, %v2024_v21  ;;  %v954_v21 = vmul.f32 %v4730_v60, %v482_v31  ;;  %v5254_v31 = vld [vmem:[%s6590_s2 + $0x490] sm:$0xff] }
 0x1fb   :  { %v2026_v36 = vadd.f32 %v5112_v26, %v1932_v18  ;;  %2368 = vmatmul.bf16.gmra.mxu2 %v1303_v27  ;;  %v1278_v26 = vpack.c.bf16 %v953_v8, %v940_v16  ;;  %v3082_v27 = vld [vmem:[%s6590_s2 + $0x3ec] sm:$0xff]  ;;  %v508_v16 = vunpack.c.l.bf16 %v152_v5 }
 0x1fc   :  { %v5237_v63 = vadd.f32 %v2211_v49, %v2118_v19  ;;  %v1279_v3 = vpack.c.bf16 %v954_v21, %v941_v15  ;;  %v505_v47 = vunpack.c.h.bf16 %v3082_v27  ;;  %v1569_v5 = vld [vmem:[%s6589_s0 + $0x5a8] sm:$0xff] }
 0x1fe   :  { %v5245_v0 = vpop.f32.mrf.mxu2 }
 0x200   :  { %v2225_v62 = vpop.f32.mrf.mxu1  ;;  %v2507_v1 = vpop.f32.mrf.mxu0 }
 0x201   :  { %v2119_v23 = vpop.f32.mrf.mxu3  ;;  %v2226_v13 = vadd.f32 %v2225_v62, %v4194_v56  ;;  %v145_v56 = vld [vmem:[%s6590_s2 + $0x3c8] sm:$0xff] }
 0x202   :  { %v2120_v49 = vadd.f32 %v2119_v23, %v2026_v36  ;;  %v5259_v36 = vld [vmem:[%s6590_s2 + $0x4c4] sm:$0xff]  ;;  %v495_v21 = vunpack.c.l.bf16 %v145_v56  ;;  %v964_v56 = vmul.f32 %v4598_v43, %v492_v28 }
 0x203   :  { %2264 = vmatmul.bf16.gmra.mxu1 %v1276_v17  ;;  %2546 = vmatmul.bf16.gmra.mxu0 %v1279_v3  ;;  %v2320_v6 = vadd.f32 %v5126_v34, %v2226_v13  ;;  %v545_v34 = vunpack.c.l.bf16 %v5254_v31  ;;  %v494_v3 = vunpack.c.h.bf16 %v5141_v35  ;;  %v977_v35 = vmul.f32 %v4598_v43, %v505_v47 }
 0x204   :  { %v5248_v19 = vadd.f32 %v2213_v52, %v2120_v49  ;;  %v558_v52 = vunpack.c.l.bf16 %v5259_v36  ;;  %v507_v49 = vunpack.c.h.bf16 %v5146_v59 }
 0x205   :  { %v1017_v61 = vmul.f32 %v4583_v54, %v545_v34  ;;  %v1553_v34 = vld [vmem:[%s6589_s0 + $0x528] sm:$0xff] }
 0x206   :  { %2452 = vmatmul.bf16.gmra.mxu3 %v1278_v26  ;;  %v5275_v18 = vpop.f32.mrf.mxu2  ;;  %v1030_v22 = vmul.f32 %v4583_v54, %v558_v52  ;;  %v6624_v26 = vld [vmem:[#allocation9_spill] sm:$0xff]  ;;  %v1674_v59 = vpack.c.bf16 %v1553_v34, %v1552_v33  ;;  %v979_v28 = vmul.f32 %v4734_v37, %v507_v49  ;;  %v1289_v33 = vpack.c.bf16 %v977_v35, %v964_v56  ;;  %v5323_v35 = vld [vmem:[%s6590_s2 + $0x52c] sm:$0xff] }
 0x207   :  { %v5318_v56 = vld [vmem:[%s6590_s2 + $0x4f8] sm:$0xff] }
 0x208   :  { %v2227_v23 = vpop.f32.mrf.mxu1  ;;  %v2509_v17 = vpop.f32.mrf.mxu0  ;;  %v1316_v62 = vpack.c.bf16 %v1030_v22, %v1017_v61  ;;  %v967_v61 = vmul.f32 %v4730_v60, %v495_v21  ;;  %v980_v22 = vmul.f32 %v4730_v60, %v508_v16  ;;  %2691 = vmatpush.bf16.msrb.mxu2 %v1674_v59  ;;  %v1536_v21 = vld [vmem:[%s6589_s0 + $0x4a0] sm:$0xff]  ;;  %v1537_v16 = vld [vmem:[%s6589_s0 + $0x4a8] sm:$0xff]  ;;  %v584_v59 = vunpack.c.l.bf16 %v5323_v35 }
 0x209   :  { %v2413_v15 = vpop.f32.mrf.mxu3  ;;  %v2228_v13 = vadd.f32 %v2227_v23, %v6624_v26  ;;  %v966_v23 = vmul.f32 %v4734_v37, %v494_v3  ;;  %v1666_v49 = vpack.c.bf16 %v1537_v16, %v1536_v21  ;;  %v520_v21 = vunpack.c.h.bf16 %v5205_v7 }
 0x20a   :  { %v2414_v8 = vadd.f32 %v2413_v15, %v2320_v6  ;;  %v1568_v6 = vld [vmem:[%s6589_s0 + $0x5a0] sm:$0xff]  ;;  %v533_v16 = vunpack.c.h.bf16 %v5210_v58 }
 0x20b   :  { %v2322_v27 = vadd.f32 %v5159_v10, %v2228_v13  ;;  %2373 = vmatmul.bf16.gmra.mxu2 %v1316_v62  ;;  %v1682_v15 = vpack.c.bf16 %v1569_v5, %v1568_v6  ;;  %v1291_v13 = vpack.c.bf16 %v979_v28, %v966_v23  ;;  %2597 = vmatpush.bf16.msrb.mxu1 %v1666_v49  ;;  %v3083_v5 = vld [vmem:[%s6590_s2 + $0x420] sm:$0xff]  ;;  %v3084_v28 = vld [vmem:[%s6590_s2 + $0x454] sm:$0xff] }
 0x20c   :  { %v5296_v52 = vadd.f32 %v2507_v1, %v2414_v8  ;;  %v1292_v1 = vpack.c.bf16 %v980_v22, %v967_v61  ;;  %v992_v7 = vmul.f32 %v4734_v37, %v520_v21  ;;  %v1005_v58 = vmul.f32 %v4734_v37, %v533_v16  ;;  %v5370_v16 = vld [vmem:[%s6590_s2 + $0x560] sm:$0xff] }
 0x20d   :  { %2785 = vmatpush.bf16.msrb.mxu3 %v1682_v15  ;;  %v1056_v15 = vmul.f32 %v4583_v54, %v584_v59 }
 0x20e   :  { %v5303_v47 = vpop.f32.mrf.mxu2 }
 0x210   :  { %v2230_v34 = vpop.f32.mrf.mxu1  ;;  %v2512_v10 = vpop.f32.mrf.mxu0 }
 0x211   :  { %v2415_v26 = vpop.f32.mrf.mxu3  ;;  %v2231_v3 = vadd.f32 %v2230_v34, %v4261_v30  ;;  %v159_v30 = vld [vmem:[%s6590_s2 + $0x430] sm:$0xff] }
 0x212   :  { %v2416_v8 = vadd.f32 %v2415_v26, %v2322_v27  ;;  %v518_v27 = vunpack.c.h.bf16 %v3083_v5  ;;  %v531_v26 = vunpack.c.h.bf16 %v3084_v28 }
 0x213   :  { %2269 = vmatmul.bf16.gmra.mxu1 %v1289_v33  ;;  %2551 = vmatmul.bf16.gmra.mxu0 %v1292_v1  ;;  %v2325_v6 = vadd.f32 %v5193_v42, %v2231_v3  ;;  %v571_v42 = vunpack.c.l.bf16 %v5318_v56  ;;  %v521_v33 = vunpack.c.l.bf16 %v159_v30 }
 0x214   :  { %v5312_v62 = vadd.f32 %v2509_v17, %v2416_v8  ;;  %v166_v17 = vld [vmem:[%s6590_s2 + $0x464] sm:$0xff]  ;;  %v1003_v28 = vmul.f32 %v4598_v43, %v531_v26 }
 0x215   :  { %v1043_v22 = vmul.f32 %v4583_v54, %v571_v42  ;;  %v534_v1 = vunpack.c.l.bf16 %v166_v17  ;;  %v990_v42 = vmul.f32 %v4598_v43, %v518_v27  ;;  %v993_v30 = vmul.f32 %v4730_v60, %v521_v33  ;;  %v1582_v33 = vld [vmem:[%s6589_s0 + $0x610] sm:$0xff] }
 0x216   :  { %2457 = vmatmul.bf16.gmra.mxu3 %v1291_v13  ;;  %v5336_v61 = vpop.f32.mrf.mxu2 }
 0x217   :  { %v1329_v3 = vpack.c.bf16 %v1056_v15, %v1043_v22  ;;  %v1302_v22 = vpack.c.bf16 %v1003_v28, %v990_v42  ;;  %v3085_v42 = vld [vmem:[%s6590_s2 + $0x488] sm:$0xff] }
 0x218   :  { %v2232_v34 = vpop.f32.mrf.mxu1  ;;  %v2514_v13 = vpop.f32.mrf.mxu0 }
 0x219   :  { %v2418_v23 = vpop.f32.mrf.mxu3  ;;  %v2233_v49 = vadd.f32 %v2232_v34, %v4285_v20 }
 0x21a   :  { %v2419_v8 = vadd.f32 %v2418_v23, %v2325_v6  ;;  %v1006_v6 = vmul.f32 %v4730_v60, %v534_v1  ;;  %v1583_v1 = vld [vmem:[%s6589_s0 + $0x618] sm:$0xff] }
 0x21b   :  { %v2327_v5 = vadd.f32 %v5226_v9, %v2233_v49  ;;  %2378 = vmatmul.bf16.gmra.mxu2 %v1329_v3  ;;  %v1304_v9 = vpack.c.bf16 %v1005_v58, %v992_v7  ;;  %v180_v3 = vld [vmem:[%s6590_s2 + $0x4cc] sm:$0xff]  ;;  %v3086_v58 = vld [vmem:[%s6590_s2 + $0x4bc] sm:$0xff] }
 0x21c   :  { %v5347_v59 = vadd.f32 %v2512_v10, %v2419_v8  ;;  %v1305_v27 = vpack.c.bf16 %v1006_v6, %v993_v30  ;;  %v1689_v8 = vpack.c.bf16 %v1583_v1, %v1582_v33  ;;  %v559_v33 = vunpack.c.h.bf16 %v5259_v36 }
 0x21e   :  { %v5355_v17 = vpop.f32.mrf.mxu2  ;;  %2880 = vmatpush.bf16.msrb.mxu0 %v1689_v8 }
 0x220   :  { %v2235_v15 = vpop.f32.mrf.mxu1  ;;  %v2517_v23 = vpop.f32.mrf.mxu0 }
 0x221   :  { %v2420_v20 = vpop.f32.mrf.mxu3  ;;  %v2236_v26 = vadd.f32 %v2235_v15, %v4322_v24  ;;  %v5375_v24 = vld [vmem:[%s6590_s2 + $0x594] sm:$0xff] }
 0x222   :  { %v2421_v10 = vadd.f32 %v2420_v20, %v2327_v5  ;;  %v610_v49 = vunpack.c.l.bf16 %v5375_v24  ;;  %v544_v5 = vunpack.c.h.bf16 %v3085_v42  ;;  %v557_v20 = vunpack.c.h.bf16 %v3086_v58 }
 0x223   :  { %2274 = vmatmul.bf16.gmra.mxu1 %v1302_v22  ;;  %2556 = vmatmul.bf16.gmra.mxu0 %v1305_v27  ;;  %v2330_v21 = vadd.f32 %v5245_v0, %v2236_v26  ;;  %v597_v0 = vunpack.c.l.bf16 %v5370_v16  ;;  %v560_v27 = vunpack.c.l.bf16 %v180_v3  ;;  %v546_v26 = vunpack.c.h.bf16 %v5254_v31 }
 0x224   :  { %v5364_v34 = vadd.f32 %v2514_v13, %v2421_v10  ;;  %v173_v13 = vld [vmem:[%s6590_s2 + $0x498] sm:$0xff]  ;;  %v1082_v6 = vmul.f32 %v4583_v54, %v610_v49  ;;  %v1029_v36 = vmul.f32 %v4598_v43, %v557_v20  ;;  %v1566_v20 = vld [vmem:[%s6589_s0 + $0x590] sm:$0xff] }
 0x225   :  { %v1069_v30 = vmul.f32 %v4583_v54, %v597_v0  ;;  %v547_v22 = vunpack.c.l.bf16 %v173_v13  ;;  %v1550_v0 = vld [vmem:[%s6589_s0 + $0x510] sm:$0xff]  ;;  %v1551_v49 = vld [vmem:[%s6589_s0 + $0x518] sm:$0xff]  ;;  %v1016_v13 = vmul.f32 %v4598_v43, %v544_v5 }
 0x226   :  { %2462 = vmatmul.bf16.gmra.mxu3 %v1304_v9  ;;  %v5388_v28 = vpop.f32.mrf.mxu2 }
 0x227   :  { %v1342_v1 = vpack.c.bf16 %v1082_v6, %v1069_v30  ;;  %v1019_v42 = vmul.f32 %v4730_v60, %v547_v22  ;;  %v1018_v30 = vmul.f32 %v4734_v37, %v546_v26  ;;  %v1031_v6 = vmul.f32 %v4734_v37, %v559_v33  ;;  %v1567_v22 = vld [vmem:[%s6589_s0 + $0x598] sm:$0xff]  ;;  %v1534_v33 = vld [vmem:[%s6589_s0 + $0x490] sm:$0xff] }
 0x228   :  { %v2237_v15 = vpop.f32.mrf.mxu1  ;;  %v2519_v9 = vpop.f32.mrf.mxu0  ;;  %v1315_v58 = vpack.c.bf16 %v1029_v36, %v1016_v13  ;;  %v1681_v26 = vpack.c.bf16 %v1567_v22, %v1566_v20 }
 0x229   :  { %v2423_v7 = vpop.f32.mrf.mxu3  ;;  %v2238_v8 = vadd.f32 %v2237_v15, %v4358_v4  ;;  %v1032_v4 = vmul.f32 %v4730_v60, %v560_v27 }
 0x22a   :  { %v2424_v10 = vadd.f32 %v2423_v7, %v2330_v21  ;;  %v1673_v21 = vpack.c.bf16 %v1551_v49, %v1550_v0  ;;  %2786 = vmatpush.bf16.msrb.mxu3 %v1681_v26  ;;  %v572_v26 = vunpack.c.h.bf16 %v5318_v56 }
 0x22b   :  { %v2332_v31 = vadd.f32 %v5275_v18, %v2238_v8  ;;  %2383 = vmatmul.bf16.gmra.mxu2 %v1342_v1  ;;  %v1317_v8 = vpack.c.bf16 %v1031_v6, %v1018_v30  ;;  %v1535_v1 = vld [vmem:[%s6589_s0 + $0x498] sm:$0xff] }
 0x22c   :  { %v5405_v3 = vadd.f32 %v2517_v23, %v2424_v10  ;;  %2692 = vmatpush.bf16.msrb.mxu2 %v1673_v21  ;;  %v1318_v23 = vpack.c.bf16 %v1032_v4, %v1019_v42  ;;  %v1665_v0 = vpack.c.bf16 %v1535_v1, %v1534_v33  ;;  %v5439_v21 = vld [vmem:[%s6590_s2 + $0x5fc] sm:$0xff]  ;;  %v3087_v42 = vld [vmem:[%s6590_s2 + $0x4f0] sm:$0xff]  ;;  %v585_v33 = vunpack.c.h.bf16 %v5323_v35 }
 0x22d   :  { %v636_v36 = vunpack.c.l.bf16 %v5439_v21  ;;  %v570_v4 = vunpack.c.h.bf16 %v3087_v42  ;;  %v1044_v56 = vmul.f32 %v4734_v37, %v572_v26 }
 0x22e   :  { %v5413_v7 = vpop.f32.mrf.mxu2  ;;  %2598 = vmatpush.bf16.msrb.mxu1 %v1665_v0  ;;  %v1057_v35 = vmul.f32 %v4734_v37, %v585_v33  ;;  %v3089_v33 = vld [vmem:[%s6590_s2 + $0x558] sm:$0xff] }
 0x230   :  { %v2240_v15 = vpop.f32.mrf.mxu1  ;;  %v2522_v18 = vpop.f32.mrf.mxu0 }
 0x231   :  { %v2425_v5 = vpop.f32.mrf.mxu3  ;;  %v2241_v27 = vadd.f32 %v2240_v15, %v4395_v29  ;;  %v5434_v29 = vld [vmem:[%s6590_s2 + $0x5c8] sm:$0xff] }
 0x232   :  { %v2426_v10 = vadd.f32 %v2425_v5, %v2332_v31  ;;  %v194_v31 = vld [vmem:[%s6590_s2 + $0x534] sm:$0xff]  ;;  %v1108_v5 = vmul.f32 %v4583_v54, %v636_v36 }
 0x233   :  { %2279 = vmatmul.bf16.gmra.mxu1 %v1315_v58  ;;  %2561 = vmatmul.bf16.gmra.mxu0 %v1318_v23  ;;  %v2335_v13 = vadd.f32 %v5303_v47, %v2241_v27  ;;  %v623_v47 = vunpack.c.l.bf16 %v5434_v29  ;;  %v3088_v23 = vld [vmem:[%s6590_s2 + $0x524] sm:$0xff] }
 0x234   :  { %v5428_v49 = vadd.f32 %v2519_v9, %v2426_v10  ;;  %v187_v9 = vld [vmem:[%s6590_s2 + $0x500] sm:$0xff]  ;;  %v583_v10 = vunpack.c.h.bf16 %v3088_v23 }
 0x235   :  { %v1095_v6 = vmul.f32 %v4583_v54, %v623_v47  ;;  %v573_v15 = vunpack.c.l.bf16 %v187_v9  ;;  %v1042_v47 = vmul.f32 %v4598_v43, %v570_v4 }
 0x236   :  { %2467 = vmatmul.bf16.gmra.mxu3 %v1317_v8  ;;  %v5452_v30 = vpop.f32.mrf.mxu2  ;;  %v586_v8 = vunpack.c.l.bf16 %v194_v31  ;;  %v1055_v23 = vmul.f32 %v4598_v43, %v583_v10 }
 0x237   :  { %v1355_v1 = vpack.c.bf16 %v1108_v5, %v1095_v6  ;;  %v1045_v9 = vmul.f32 %v4730_v60, %v573_v15 }
 0x238   :  { %v2242_v22 = vpop.f32.mrf.mxu1  ;;  %v2524_v27 = vpop.f32.mrf.mxu0  ;;  %v1328_v6 = vpack.c.bf16 %v1055_v23, %v1042_v47 }
 0x239   :  { %v2428_v58 = vpop.f32.mrf.mxu3  ;;  %v2243_v0 = vadd.f32 %v2242_v22, %v4419_v14  ;;  %v5485_v22 = vld [vmem:[%s6590_s2 + $0x664] sm:$0xff] }
 0x23a   :  { %v2429_v20 = vadd.f32 %v2428_v58, %v2335_v13  ;;  %v1058_v13 = vmul.f32 %v4730_v60, %v586_v8  ;;  %v5480_v8 = vld [vmem:[%s6590_s2 + $0x630] sm:$0xff]  ;;  %v662_v26 = vunpack.c.l.bf16 %v5485_v22 }
 0x23b   :  { %v2337_v42 = vadd.f32 %v5336_v61, %v2243_v0  ;;  %2388 = vmatmul.bf16.gmra.mxu2 %v1355_v1  ;;  %v1330_v61 = vpack.c.bf16 %v1057_v35, %v1044_v56  ;;  %v596_v1 = vunpack.c.h.bf16 %v3089_v33 }
 0x23c   :  { %v5463_v36 = vadd.f32 %v2522_v18, %v2429_v20  ;;  %v1331_v4 = vpack.c.bf16 %v1058_v13, %v1045_v9  ;;  %v3090_v9 = vld [vmem:[%s6590_s2 + $0x58c] sm:$0xff] }
 0x23d   :  { %v609_v13 = vunpack.c.h.bf16 %v3090_v9 }
 0x23e   :  { %v5471_v31 = vpop.f32.mrf.mxu2 }
 0x23f   :  { %v1081_v9 = vmul.f32 %v4598_v43, %v609_v13  ;;  %v1580_v13 = vld [vmem:[%s6589_s0 + $0x600] sm:$0xff] }
 0x240   :  { %v2245_v5 = vpop.f32.mrf.mxu1  ;;  %v2527_v58 = vpop.f32.mrf.mxu0 }
 0x241   :  { %v2430_v14 = vpop.f32.mrf.mxu3  ;;  %v2246_v10 = vadd.f32 %v2245_v5, %v4450_v2  ;;  %v201_v2 = vld [vmem:[%s6590_s2 + $0x568] sm:$0xff]  ;;  %v611_v5 = vunpack.c.h.bf16 %v5375_v24 }
 0x242   :  { %v2431_v18 = vadd.f32 %v2430_v14, %v2337_v42  ;;  %v1134_v42 = vmul.f32 %v4583_v54, %v662_v26  ;;  %v599_v56 = vunpack.c.l.bf16 %v201_v2  ;;  %v1068_v26 = vmul.f32 %v4598_v43, %v596_v1 }
 0x243   :  { %2284 = vmatmul.bf16.gmra.mxu1 %v1328_v6  ;;  %2566 = vmatmul.bf16.gmra.mxu0 %v1331_v4  ;;  %v2340_v15 = vadd.f32 %v5355_v17, %v2246_v10  ;;  %v649_v17 = vunpack.c.l.bf16 %v5480_v8  ;;  %v6626_v10 = vld [vmem:[#allocation10_spill] sm:$0xff]  ;;  %v1083_v24 = vmul.f32 %v4734_v37, %v611_v5 }
 0x244   :  { %v5474_v20 = vadd.f32 %v2524_v27, %v2431_v18  ;;  %v208_v27 = vld [vmem:[%s6590_s2 + $0x59c] sm:$0xff]  ;;  %v598_v18 = vunpack.c.h.bf16 %v5370_v16  ;;  %v1071_v2 = vmul.f32 %v4730_v60, %v599_v56  ;;  %v1581_v56 = vld [vmem:[%s6589_s0 + $0x608] sm:$0xff] }
 0x245   :  { %v1121_v47 = vmul.f32 %v4583_v54, %v649_v17  ;;  %v612_v35 = vunpack.c.l.bf16 %v208_v27  ;;  %v1564_v5 = vld [vmem:[%s6589_s0 + $0x580] sm:$0xff] }
 0x246   :  { %6625 = vst [vmem:[#allocation5_spill] sm:$0xff] %v5474_v20  ;;  %2472 = vmatmul.bf16.gmra.mxu3 %v1330_v61  ;;  %v5498_v0 = vpop.f32.mrf.mxu2  ;;  %v1070_v16 = vmul.f32 %v4734_v37, %v598_v18  ;;  %v1688_v18 = vpack.c.bf16 %v1581_v56, %v1580_v13 }
 0x247   :  { %v1368_v61 = vpack.c.bf16 %v1134_v42, %v1121_v47  ;;  %v1341_v42 = vpack.c.bf16 %v1081_v9, %v1068_v26  ;;  %v5545_v9 = vld [vmem:[%s6590_s2 + $0x698] sm:$0xff] }
 0x248   :  { %v2247_v6 = vpop.f32.mrf.mxu1  ;;  %v2529_v4 = vpop.f32.mrf.mxu0  ;;  %2881 = vmatpush.bf16.msrb.mxu0 %v1688_v18 }
 0x249   :  { %v2433_v23 = vpop.f32.mrf.mxu3  ;;  %v2248_v17 = vadd.f32 %v2247_v6, %v6626_v10 }
 0x24a   :  { %v2434_v14 = vadd.f32 %v2433_v23, %v2340_v15  ;;  %v1084_v15 = vmul.f32 %v4730_v60, %v612_v35  ;;  %v1548_v35 = vld [vmem:[%s6589_s0 + $0x500] sm:$0xff] }
 0x24b   :  { %v2342_v20 = vadd.f32 %v5388_v28, %v2248_v17  ;;  %2393 = vmatmul.bf16.gmra.mxu2 %v1368_v61  ;;  %v1343_v28 = vpack.c.bf16 %v1083_v24, %v1070_v16  ;;  %v1565_v61 = vld [vmem:[%s6589_s0 + $0x588] sm:$0xff]  ;;  %v1532_v16 = vld [vmem:[%s6589_s0 + $0x480] sm:$0xff] }
 0x24c   :  { %v5509_v33 = vadd.f32 %v2527_v58, %v2434_v14  ;;  %v1344_v1 = vpack.c.bf16 %v1084_v15, %v1071_v2  ;;  %v1680_v17 = vpack.c.bf16 %v1565_v61, %v1564_v5  ;;  %v5550_v2 = vld [vmem:[%s6590_s2 + $0x6cc] sm:$0xff] }
 0x24d   :  { %v1533_v24 = vld [vmem:[%s6589_s0 + $0x488] sm:$0xff] }
 0x24e   :  { %v5517_v27 = vpop.f32.mrf.mxu2  ;;  %2787 = vmatpush.bf16.msrb.mxu3 %v1680_v17  ;;  %v624_v17 = vunpack.c.h.bf16 %v5434_v29 }
 0x250   :  { %v2250_v23 = vpop.f32.mrf.mxu1  ;;  %v2532_v14 = vpop.f32.mrf.mxu0  ;;  %v1096_v29 = vmul.f32 %v4734_v37, %v624_v17  ;;  %v236_v17 = vld [vmem:[%s6590_s2 + $0x66c] sm:$0xff] }
 0x251   :  { %v2435_v47 = vpop.f32.mrf.mxu3  ;;  %v2251_v6 = vadd.f32 %v2250_v23, %v4529_v11  ;;  %v215_v11 = vld [vmem:[%s6590_s2 + $0x5d0] sm:$0xff] }
 0x252   :  { %v2436_v58 = vadd.f32 %v2435_v47, %v2342_v20  ;;  %v1549_v20 = vld [vmem:[%s6589_s0 + $0x508] sm:$0xff]  ;;  %v675_v47 = vunpack.c.l.bf16 %v5545_v9  ;;  %v625_v18 = vunpack.c.l.bf16 %v215_v11 }
 0x253   :  { %v1672_v10 = vpack.c.bf16 %v1549_v20, %v1548_v35  ;;  %2289 = vmatmul.bf16.gmra.mxu1 %v1341_v42  ;;  %2571 = vmatmul.bf16.gmra.mxu0 %v1344_v1  ;;  %v2345_v26 = vadd.f32 %v5413_v7, %v2251_v6  ;;  %v222_v7 = vld [vmem:[%s6590_s2 + $0x604] sm:$0xff]  ;;  %v688_v42 = vunpack.c.l.bf16 %v5550_v2  ;;  %v3092_v35 = vld [vmem:[%s6590_s2 + $0x5f4] sm:$0xff] }
 0x254   :  { %v5552_v15 = vadd.f32 %v2529_v4, %v2436_v58  ;;  %v1664_v4 = vpack.c.bf16 %v1533_v24, %v1532_v16  ;;  %v3091_v1 = vld [vmem:[%s6590_s2 + $0x5c0] sm:$0xff]  ;;  %v635_v6 = vunpack.c.h.bf16 %v3092_v35  ;;  %v638_v20 = vunpack.c.l.bf16 %v222_v7  ;;  %v6629_v35 = vld [vmem:[#allocation11_spill] sm:$0xff] }
 0x255   :  { %2693 = vmatpush.bf16.msrb.mxu2 %v1672_v10  ;;  %v622_v58 = vunpack.c.h.bf16 %v3091_v1  ;;  %v1160_v13 = vmul.f32 %v4583_v54, %v688_v42  ;;  %v637_v16 = vunpack.c.h.bf16 %v5439_v21  ;;  %v1097_v7 = vmul.f32 %v4730_v60, %v625_v18 }
 0x256   :  { %6627 = vst [vmem:[#allocation6_spill] sm:$0xff] %v5552_v15  ;;  %2477 = vmatmul.bf16.gmra.mxu3 %v1343_v28  ;;  %v5568_v23 = vpop.f32.mrf.mxu2  ;;  %v1147_v28 = vmul.f32 %v4583_v54, %v675_v47  ;;  %2599 = vmatpush.bf16.msrb.mxu1 %v1664_v4  ;;  %v1107_v11 = vmul.f32 %v4598_v43, %v635_v6 }
 0x257   :  { %v1094_v54 = vmul.f32 %v4598_v43, %v622_v58  ;;  %v1109_v21 = vmul.f32 %v4734_v37, %v637_v16 }
 0x258   :  { %v2252_v61 = vpop.f32.mrf.mxu1  ;;  %v2534_v10 = vpop.f32.mrf.mxu0  ;;  %v1381_v24 = vpack.c.bf16 %v1160_v13, %v1147_v28 }
 0x259   :  { %v2438_v56 = vpop.f32.mrf.mxu3  ;;  %v2253_v47 = vadd.f32 %v2252_v61, %v4553_v32  ;;  %v1354_v28 = vpack.c.bf16 %v1107_v11, %v1094_v54  ;;  %v5601_v61 = vld [vmem:[%s6590_s2 + $0x5c] sm:$0xff]  ;;  %v3094_v54 = vld [vmem:[%s6590_s2 + $0x628] sm:$0xff] }
 0x25a   :  { %v2439_v5 = vadd.f32 %v2438_v56, %v2345_v26  ;;  %v1110_v26 = vmul.f32 %v4730_v60, %v638_v20  ;;  %v5596_v20 = vld [vmem:[%s6590_s2 + $0x28] sm:$0xff]  ;;  %v276_v16 = vunpack.c.l.bf16 %v5601_v61 }
 0x25b   :  { %v2347_v1 = vadd.f32 %v5452_v30, %v2253_v47  ;;  %2398 = vmatmul.bf16.gmra.mxu2 %v1381_v24  ;;  %v1356_v30 = vpack.c.bf16 %v1109_v21, %v1096_v29  ;;  %v5614_v24 = vld [vmem:[%s6591_s1 + $0x8] sm:$0x1f]  ;;  %v3095_v21 = vld [vmem:[%s6590_s2 + $0x65c] sm:$0xff] }
 0x25c   :  { %v5579_v42 = vadd.f32 %v2532_v14, %v2439_v5  ;;  %v1357_v58 = vpack.c.bf16 %v1110_v26, %v1097_v7  ;;  %v5617_v47 = vperm.slane %v5614_v24, 2 }
 0x25e   :  { %6628 = vst [vmem:[#allocation7_spill] sm:$0xff] %v5579_v42  ;;  %v5587_v4 = vpop.f32.mrf.mxu2  ;;  %v748_v26 = vmul.f32 %v5617_v47, %v276_v16 }
 0x260   :  { %v2255_v13 = vpop.f32.mrf.mxu1  ;;  %v2537_v56 = vpop.f32.mrf.mxu0 }
 0x261   :  { %v2440_v32 = vpop.f32.mrf.mxu3  ;;  %v2256_v6 = vadd.f32 %v2255_v13, %v6629_v35  ;;  %v650_v35 = vunpack.c.h.bf16 %v5480_v8 }
 0x262   :  { %v2441_v14 = vadd.f32 %v2440_v32, %v2347_v1  ;;  %v648_v1 = vunpack.c.h.bf16 %v3094_v54  ;;  %v661_v32 = vunpack.c.h.bf16 %v3095_v21 }
 0x263   :  { %2294 = vmatmul.bf16.gmra.mxu1 %v1354_v28  ;;  %2576 = vmatmul.bf16.gmra.mxu0 %v1357_v58  ;;  %v2350_v18 = vadd.f32 %v5471_v31, %v2256_v6  ;;  %v263_v31 = vunpack.c.l.bf16 %v5596_v20  ;;  %v664_v58 = vunpack.c.l.bf16 %v236_v17  ;;  %v663_v6 = vunpack.c.h.bf16 %v5485_v22 }
 0x264   :  { %v5590_v5 = vadd.f32 %v2534_v10, %v2441_v14  ;;  %v229_v10 = vld [vmem:[%s6590_s2 + $0x638] sm:$0xff]  ;;  %v1120_v16 = vmul.f32 %v4598_v43, %v648_v1  ;;  %v1133_v21 = vmul.f32 %v4598_v43, %v661_v32  ;;  %v1122_v8 = vmul.f32 %v4734_v37, %v650_v35  ;;  %v3096_v35 = vld [vmem:[%s6590_s2 + $0x690] sm:$0xff] }
 0x265   :  { %v735_v7 = vmul.f32 %v5617_v47, %v263_v31  ;;  %v651_v28 = vunpack.c.l.bf16 %v229_v10  ;;  %v1135_v22 = vmul.f32 %v4734_v37, %v663_v6  ;;  %v674_v6 = vunpack.c.h.bf16 %v3096_v35 }
 0x266   :  { %6630 = vst [vmem:[#allocation8_spill] sm:$0xff] %v5590_v5  ;;  %2482 = vmatmul.bf16.gmra.mxu3 %v1356_v30  ;;  %v5622_v11 = vpop.f32.mrf.mxu2  ;;  %v6631_v5 = vld [vmem:[#allocation12_spill] sm:$0xff] }
 0x267   :  { %v1177_v54 = vpack.c.bf16 %v748_v26, %v735_v7  ;;  %v1123_v10 = vmul.f32 %v4730_v60, %v651_v28  ;;  %v1367_v7 = vpack.c.bf16 %v1133_v21, %v1120_v16 }
 0x268   :  { %v2257_v13 = vpop.f32.mrf.mxu1  ;;  %v2539_v30 = vpop.f32.mrf.mxu0 }
 0x269   :  { %v2443_v29 = vpop.f32.mrf.mxu3  ;;  %v2258_v31 = vadd.f32 %v2257_v13, %v6631_v5  ;;  %v250_v13 = vld [vmem:[%s6590_s2 + $0x6d4] sm:$0xff] }
 0x26a   :  { %v2444_v14 = vadd.f32 %v2443_v29, %v2350_v18  ;;  %v1136_v18 = vmul.f32 %v4730_v60, %v664_v58  ;;  %v5650_v58 = vld [vmem:[%s6590_s2 + $0x90] sm:$0xff] }
 0x26b   :  { %v2352_v15 = vadd.f32 %v5498_v0, %v2258_v31  ;;  %2694 = vmatmul.bf16.vlgmr.msrb.gmra.mxu2 %v1177_v54  ;;  %v1369_v0 = vpack.c.bf16 %v1135_v22, %v1122_v8  ;;  %v690_v22 = vunpack.c.l.bf16 %v250_v13 }
 0x26c   :  { %v5633_v42 = vadd.f32 %v2537_v56, %v2444_v14  ;;  %v1370_v1 = vpack.c.bf16 %v1136_v18, %v1123_v10  ;;  %v3097_v10 = vld [vmem:[%s6590_s2 + $0x6c4] sm:$0xff] }
 0x26d   :  { %v687_v18 = vunpack.c.h.bf16 %v3097_v10 }
 0x26e   :  { %v5641_v17 = vpop.f32.mrf.mxu2 }
 0x26f   :  { %v1159_v10 = vmul.f32 %v4598_v43, %v687_v18 }
 0x270   :  { %v2260_v26 = vpop.f32.mrf.mxu1  ;;  %v2542_v29 = vpop.f32.mrf.mxu0 }
 0x271   :  { %v2445_v5 = vpop.f32.mrf.mxu3  ;;  %v2261_v32 = vadd.f32 %v2260_v26, %v4674_v40  ;;  %v243_v40 = vld [vmem:[%s6590_s2 + $0x6a0] sm:$0xff]  ;;  %v689_v26 = vunpack.c.h.bf16 %v5550_v2 }
 0x272   :  { %v2446_v56 = vadd.f32 %v2445_v5, %v2352_v15  ;;  %v5655_v15 = vld [vmem:[%s6590_s2 + $0xc4] sm:$0xff]  ;;  %v677_v8 = vunpack.c.l.bf16 %v243_v40 }
 0x273   :  { %2299 = vmatmul.bf16.gmra.mxu1 %v1367_v7  ;;  %2581 = vmatmul.bf16.gmra.mxu0 %v1370_v1  ;;  %v2355_v28 = vadd.f32 %v5517_v27, %v2261_v32  ;;  %v289_v27 = vunpack.c.l.bf16 %v5650_v58  ;;  %v1161_v2 = vmul.f32 %v4734_v37, %v689_v26 }
 0x274   :  { %v5644_v14 = vadd.f32 %v2539_v30, %v2446_v56  ;;  %v302_v30 = vunpack.c.l.bf16 %v5655_v15  ;;  %v676_v56 = vunpack.c.h.bf16 %v5545_v9  ;;  %v1149_v40 = vmul.f32 %v4730_v60, %v677_v8  ;;  %v5701_v8 = vld [vmem:[%s6590_s2 + $0x12c] sm:$0xff] }
 0x275   :  { %v761_v31 = vmul.f32 %v5617_v47, %v289_v27  ;;  %v1146_v27 = vmul.f32 %v4598_v43, %v674_v6 }
 0x276   :  { %2487 = vmatmul.bf16.gmra.mxu3 %v1369_v0  ;;  %v5668_v54 = vpop.f32.mrf.mxu2  ;;  %v774_v16 = vmul.f32 %v5617_v47, %v302_v30  ;;  %v1148_v9 = vmul.f32 %v4734_v37, %v676_v56  ;;  %v5696_v37 = vld [vmem:[%s6590_s2 + $0xf8] sm:$0xff] }
 0x277   :  { %v3099_v56 = vld [vmem:[%s6590_s2 + $0x54] sm:$0xff] }
 0x278   :  { %v2262_v7 = vpop.f32.mrf.mxu1  ;;  %v2544_v1 = vpop.f32.mrf.mxu0  ;;  %v1190_v0 = vpack.c.bf16 %v774_v16, %v761_v31  ;;  %v1380_v31 = vpack.c.bf16 %v1159_v10, %v1146_v27  ;;  %v275_v26 = vunpack.c.h.bf16 %v3099_v56 }
 0x279   :  { %v2448_v21 = vpop.f32.mrf.mxu3  ;;  %v2263_v32 = vadd.f32 %v2262_v7, %v4698_v48  ;;  %v3098_v7 = vld [vmem:[%s6590_s2 + $0x20] sm:$0xff] }
 0x27a   :  { %v2449_v5 = vadd.f32 %v2448_v21, %v2355_v28  ;;  %v1162_v28 = vmul.f32 %v4730_v60, %v690_v22  ;;  %v28_v22 = vld [vmem:[%s6590_s2 + $0x64] sm:$0xf] }
 0x27b   :  { %v2357_v35 = vadd.f32 %v5568_v23, %v2263_v32  ;;  %2699 = vmatmul.bf16.gmra.mxu2 %v1190_v0  ;;  %v1382_v23 = vpack.c.bf16 %v1161_v2, %v1148_v9  ;;  %v5718_v0 = vperm.slane %v5614_v24, 1  ;;  %v278_v9 = vunpack.c.l.bf16 %v28_v22 }
 0x27c   :  { %v5679_v30 = vadd.f32 %v2542_v29, %v2449_v5  ;;  %v1383_v6 = vpack.c.bf16 %v1162_v28, %v1149_v40  ;;  %v328_v5 = vunpack.c.l.bf16 %v5701_v8  ;;  %v264_v40 = vunpack.c.h.bf16 %v5596_v20 }
 0x27d   :  { %v5726_v2 = vperm.slane %v5614_v24, 4 }
 0x27e   :  { %v5687_v13 = vpop.f32.mrf.mxu2 }
 0x27f   :  { %v750_v22 = vmul.f32 %v5726_v2, %v278_v9  ;;  %v5757_v9 = vld [vmem:[%s6590_s2 + $0x194] sm:$0xff] }
 0x280   :  { %v2265_v16 = vpop.f32.mrf.mxu1  ;;  %v2547_v21 = vpop.f32.mrf.mxu0 }
 0x281   :  { %v2450_v48 = vpop.f32.mrf.mxu3  ;;  %v2266_v43 = vadd.f32 %v2265_v16, %v4737_v45  ;;  %v21_v45 = vld [vmem:[%s6590_s2 + $0x30] sm:$0xf]  ;;  %v5730_v16 = vperm.slane %v5614_v24, 3 }
 0x282   :  { %v2451_v29 = vadd.f32 %v2450_v48, %v2357_v35  ;;  %v800_v35 = vmul.f32 %v5617_v47, %v328_v5  ;;  %v265_v28 = vunpack.c.l.bf16 %v21_v45  ;;  %v747_v45 = vmul.f32 %v5718_v0, %v275_v26 }
 0x283   :  { %2304 = vmatmul.bf16.gmra.mxu1 %v1380_v31  ;;  %2586 = vmatmul.bf16.gmra.mxu0 %v1383_v6  ;;  %v2360_v60 = vadd.f32 %v5587_v4, %v2266_v43  ;;  %v315_v4 = vunpack.c.l.bf16 %v5696_v37 }
 0x284   :  { %v5690_v18 = vadd.f32 %v2544_v1, %v2451_v29  ;;  %v262_v1 = vunpack.c.h.bf16 %v3098_v7  ;;  %v277_v29 = vunpack.c.h.bf16 %v5601_v61  ;;  %v736_v61 = vmul.f32 %v5730_v16, %v264_v40 }
 0x285   :  { %v787_v27 = vmul.f32 %v5617_v47, %v315_v4 }
 0x286   :  { %2492 = vmatmul.bf16.gmra.mxu3 %v1382_v23  ;;  %v5720_v32 = vpop.f32.mrf.mxu2  ;;  %v734_v4 = vmul.f32 %v5718_v0, %v262_v1  ;;  %v749_v24 = vmul.f32 %v5730_v16, %v277_v29 }
 0x287   :  { %v1203_v23 = vpack.c.bf16 %v800_v35, %v787_v27 }
 0x288   :  { %v2267_v31 = vpop.f32.mrf.mxu1  ;;  %v2549_v6 = vpop.f32.mrf.mxu0  ;;  %v1176_v56 = vpack.c.bf16 %v747_v45, %v734_v4  ;;  %v3101_v45 = vld [vmem:[%s6590_s2 + $0xbc] sm:$0xff] }
 0x289   :  { %v2453_v10 = vpop.f32.mrf.mxu3  ;;  %v2268_v43 = vadd.f32 %v2267_v31, %v4764_v39  ;;  %v354_v31 = vunpack.c.l.bf16 %v5757_v9 }
 0x28a   :  { %v2454_v48 = vadd.f32 %v2453_v10, %v2360_v60  ;;  %v737_v60 = vmul.f32 %v5726_v2, %v265_v28  ;;  %v5752_v28 = vld [vmem:[%s6590_s2 + $0x160] sm:$0xff] }
 0x28b   :  { %v2362_v20 = vadd.f32 %v5622_v11, %v2268_v43  ;;  %2704 = vmatmul.bf16.gmra.mxu2 %v1203_v23  ;;  %v1178_v11 = vpack.c.bf16 %v749_v24, %v736_v61  ;;  %v826_v4 = vmul.f32 %v5617_v47, %v354_v31 }
 0x28c   :  { %v5734_v5 = vadd.f32 %v2547_v21, %v2454_v48  ;;  %v1179_v1 = vpack.c.bf16 %v750_v22, %v737_v60  ;;  %v42_v48 = vld [vmem:[%s6590_s2 + $0xcc] sm:$0xf]  ;;  %v301_v60 = vunpack.c.h.bf16 %v3101_v45 }
 0x28d   :  { %v304_v61 = vunpack.c.l.bf16 %v42_v48 }
 0x28e   :  { %v5742_v7 = vpop.f32.mrf.mxu2 }
 0x290   :  { %v2270_v27 = vpop.f32.mrf.mxu1  ;;  %v2552_v35 = vpop.f32.mrf.mxu0 }
 0x291   :  { %v2455_v39 = vpop.f32.mrf.mxu3  ;;  %v2271_v26 = vadd.f32 %v2270_v27, %v4810_v55  ;;  %v35_v55 = vld [vmem:[%s6590_s2 + $0x98] sm:$0xf] }
 0x292   :  { %v2456_v21 = vadd.f32 %v2455_v39, %v2362_v20  ;;  %v291_v22 = vunpack.c.l.bf16 %v35_v55 }
 0x293   :  { %2600 = vmatmul.bf16.vlgmr.msrb.gmra.mxu1 %v1176_v56  ;;  %3007 = vmatmul.msk.bf16.vlgmr.msrb.gmra.mxu0 %vm1694_vm0, %v1179_v1  ;;  %v2365_v40 = vadd.f32 %v5641_v17, %v2271_v26  ;;  %v341_v17 = vunpack.c.l.bf16 %v5752_v28  ;;  %v290_v1 = vunpack.c.h.bf16 %v5650_v58 }
 0x294   :  { %v5745_v10 = vadd.f32 %v2549_v6, %v2456_v21  ;;  %v3100_v6 = vld [vmem:[%s6590_s2 + $0x88] sm:$0xff]  ;;  %v303_v21 = vunpack.c.h.bf16 %v5655_v15  ;;  %v763_v55 = vmul.f32 %v5726_v2, %v291_v22 }
 0x295   :  { %v288_v29 = vunpack.c.h.bf16 %v3100_v6  ;;  %v813_v43 = vmul.f32 %v5617_v47, %v341_v17  ;;  %v773_v6 = vmul.f32 %v5718_v0, %v301_v60  ;;  %v762_v58 = vmul.f32 %v5730_v16, %v290_v1  ;;  %v3102_v1 = vld [vmem:[%s6590_s2 + $0xf0] sm:$0xff] }
 0x296   :  { %2788 = vmatmul.bf16.vlgmr.msrb.gmra.mxu3 %v1178_v11  ;;  %v5770_v23 = vpop.f32.mrf.mxu2  ;;  %v775_v15 = vmul.f32 %v5730_v16, %v303_v21  ;;  %v314_v21 = vunpack.c.h.bf16 %v3102_v1 }
 0x297   :  { %v1216_v27 = vpack.c.bf16 %v826_v4, %v813_v43  ;;  %v760_v26 = vmul.f32 %v5718_v0, %v288_v29 }
 0x298   :  { %v2272_v39 = vpop.f32.mrf.mxu1  ;;  %v2554_v56 = vpop.f32.mrf.mxu0 }
 0x299   :  { %v2458_v20 = vpop.f32.mrf.mxu3  ;;  %v2273_v11 = vadd.f32 %v2272_v39, %v4834_v57  ;;  %v1189_v43 = vpack.c.bf16 %v773_v6, %v760_v26  ;;  %v56_v39 = vld [vmem:[%s6590_s2 + $0x134] sm:$0xf]  ;;  %v3103_v6 = vld [vmem:[%s6590_s2 + $0x124] sm:$0xff] }
 0x29a   :  { %v2459_v24 = vadd.f32 %v2458_v20, %v2365_v40  ;;  %v776_v40 = vmul.f32 %v5726_v2, %v304_v61  ;;  %v5799_v61 = vld [vmem:[%s6590_s2 + $0x1c8] sm:$0xff] }
 0x29b   :  { %v2367_v31 = vadd.f32 %v5668_v54, %v2273_v11  ;;  %2709 = vmatmul.bf16.gmra.mxu2 %v1216_v27  ;;  %v1191_v54 = vpack.c.bf16 %v775_v15, %v762_v58  ;;  %v330_v58 = vunpack.c.l.bf16 %v56_v39 }
 0x29c   :  { %v5781_v17 = vadd.f32 %v2552_v35, %v2459_v24  ;;  %v1192_v29 = vpack.c.bf16 %v776_v40, %v763_v55  ;;  %v5804_v24 = vld [vmem:[%s6590_s2 + $0x1fc] sm:$0xff]  ;;  %v327_v55 = vunpack.c.h.bf16 %v3103_v6 }
 0x29e   :  { %v5789_v48 = vpop.f32.mrf.mxu2  ;;  %v799_v1 = vmul.f32 %v5718_v0, %v327_v55 }
 0x2a0   :  { %v2275_v4 = vpop.f32.mrf.mxu1  ;;  %v2557_v20 = vpop.f32.mrf.mxu0 }
 0x2a1   :  { %v2460_v57 = vpop.f32.mrf.mxu3  ;;  %v2276_v45 = vadd.f32 %v2275_v4, %v4871_v38  ;;  %v49_v38 = vld [vmem:[%s6590_s2 + $0x100] sm:$0xf] }
 0x2a2   :  { %v2461_v35 = vadd.f32 %v2460_v57, %v2367_v31  ;;  %v317_v40 = vunpack.c.l.bf16 %v49_v38 }
 0x2a3   :  { %2605 = vmatmul.bf16.gmra.mxu1 %v1189_v43  ;;  %3008 = vmatmul.msk.bf16.gmra.mxu0 %vm1694_vm0, %v1192_v29  ;;  %v2370_v22 = vadd.f32 %v5687_v13, %v2276_v45  ;;  %v367_v13 = vunpack.c.l.bf16 %v5799_v61  ;;  %v316_v29 = vunpack.c.h.bf16 %v5696_v37  ;;  %v786_v45 = vmul.f32 %v5718_v0, %v314_v21 }
 0x2a4   :  { %v5792_v60 = vadd.f32 %v2554_v56, %v2461_v35  ;;  %v380_v56 = vunpack.c.l.bf16 %v5804_v24  ;;  %v329_v35 = vunpack.c.h.bf16 %v5701_v8  ;;  %v789_v38 = vmul.f32 %v5726_v2, %v317_v40 }
 0x2a5   :  { %v839_v11 = vmul.f32 %v5617_v47, %v367_v13  ;;  %v788_v37 = vmul.f32 %v5730_v16, %v316_v29  ;;  %v3104_v29 = vld [vmem:[%s6590_s2 + $0x158] sm:$0xff] }
 0x2a6   :  { %2793 = vmatmul.bf16.gmra.mxu3 %v1191_v54  ;;  %v5817_v27 = vpop.f32.mrf.mxu2  ;;  %v852_v26 = vmul.f32 %v5617_v47, %v380_v56  ;;  %v801_v8 = vmul.f32 %v5730_v16, %v329_v35  ;;  %v340_v35 = vunpack.c.h.bf16 %v3104_v29 }
 0x2a8   :  { %v2277_v57 = vpop.f32.mrf.mxu1  ;;  %v2559_v43 = vpop.f32.mrf.mxu0  ;;  %v1229_v4 = vpack.c.bf16 %v852_v26, %v839_v11  ;;  %v1202_v11 = vpack.c.bf16 %v799_v1, %v786_v45  ;;  %v3105_v1 = vld [vmem:[%s6590_s2 + $0x18c] sm:$0xff] }
 0x2a9   :  { %v2463_v31 = vpop.f32.mrf.mxu3  ;;  %v2278_v54 = vadd.f32 %v2277_v57, %v4895_v51  ;;  %v70_v57 = vld [vmem:[%s6590_s2 + $0x19c] sm:$0xf] }
 0x2aa   :  { %v2464_v15 = vadd.f32 %v2463_v31, %v2370_v22  ;;  %v802_v22 = vmul.f32 %v5726_v2, %v330_v58  ;;  %v5846_v58 = vld [vmem:[%s6590_s2 + $0x230] sm:$0xff] }
 0x2ab   :  { %v2372_v56 = vadd.f32 %v5720_v32, %v2278_v54  ;;  %2714 = vmatmul.bf16.gmra.mxu2 %v1229_v4  ;;  %v1204_v32 = vpack.c.bf16 %v801_v8, %v788_v37  ;;  %v356_v37 = vunpack.c.l.bf16 %v70_v57 }
 0x2ac   :  { %v5828_v13 = vadd.f32 %v2557_v20, %v2464_v15  ;;  %v1205_v21 = vpack.c.bf16 %v802_v22, %v789_v38  ;;  %v5851_v15 = vld [vmem:[%s6590_s2 + $0x264] sm:$0xff]  ;;  %v353_v38 = vunpack.c.h.bf16 %v3105_v1 }
 0x2ae   :  { %v5836_v39 = vpop.f32.mrf.mxu2  ;;  %v825_v29 = vmul.f32 %v5718_v0, %v353_v38 }
 0x2b0   :  { %v2280_v26 = vpop.f32.mrf.mxu1  ;;  %v2562_v31 = vpop.f32.mrf.mxu0 }
 0x2b1   :  { %v2465_v51 = vpop.f32.mrf.mxu3  ;;  %v2281_v6 = vadd.f32 %v2280_v26, %v4944_v25  ;;  %v63_v25 = vld [vmem:[%s6590_s2 + $0x168] sm:$0xf] }
 0x2b2   :  { %v2466_v20 = vadd.f32 %v2465_v51, %v2372_v56  ;;  %v343_v22 = vunpack.c.l.bf16 %v63_v25 }
 0x2b3   :  { %2610 = vmatmul.bf16.gmra.mxu1 %v1202_v11  ;;  %3009 = vmatmul.msk.bf16.gmra.mxu0 %vm1694_vm0, %v1205_v21  ;;  %v2375_v40 = vadd.f32 %v5742_v7, %v2281_v6  ;;  %v393_v7 = vunpack.c.l.bf16 %v5846_v58  ;;  %v342_v21 = vunpack.c.h.bf16 %v5752_v28  ;;  %v812_v6 = vmul.f32 %v5718_v0, %v340_v35 }
 0x2b4   :  { %v5839_v55 = vadd.f32 %v2559_v43, %v2466_v20  ;;  %v406_v43 = vunpack.c.l.bf16 %v5851_v15  ;;  %v355_v20 = vunpack.c.h.bf16 %v5757_v9  ;;  %v815_v25 = vmul.f32 %v5726_v2, %v343_v22 }
 0x2b5   :  { %v865_v54 = vmul.f32 %v5617_v47, %v393_v7  ;;  %v814_v28 = vmul.f32 %v5730_v16, %v342_v21  ;;  %v3106_v21 = vld [vmem:[%s6590_s2 + $0x1c0] sm:$0xff] }
 0x2b6   :  { %2798 = vmatmul.bf16.gmra.mxu3 %v1204_v32  ;;  %v5864_v4 = vpop.f32.mrf.mxu2  ;;  %v878_v45 = vmul.f32 %v5617_v47, %v406_v43  ;;  %v827_v9 = vmul.f32 %v5730_v16, %v355_v20  ;;  %v366_v20 = vunpack.c.h.bf16 %v3106_v21 }
 0x2b8   :  { %v2282_v51 = vpop.f32.mrf.mxu1  ;;  %v2564_v11 = vpop.f32.mrf.mxu0  ;;  %v1242_v26 = vpack.c.bf16 %v878_v45, %v865_v54  ;;  %v1215_v54 = vpack.c.bf16 %v825_v29, %v812_v6  ;;  %v3107_v29 = vld [vmem:[%s6590_s2 + $0x1f4] sm:$0xff] }
 0x2b9   :  { %v2468_v56 = vpop.f32.mrf.mxu3  ;;  %v2283_v32 = vadd.f32 %v2282_v51, %v4968_v44  ;;  %v84_v51 = vld [vmem:[%s6590_s2 + $0x204] sm:$0xf] }
 0x2ba   :  { %v2469_v8 = vadd.f32 %v2468_v56, %v2375_v40  ;;  %v828_v40 = vmul.f32 %v5726_v2, %v356_v37  ;;  %v5893_v37 = vld [vmem:[%s6590_s2 + $0x298] sm:$0xff] }
 0x2bb   :  { %v2377_v43 = vadd.f32 %v5770_v23, %v2283_v32  ;;  %2719 = vmatmul.bf16.gmra.mxu2 %v1242_v26  ;;  %v1217_v23 = vpack.c.bf16 %v827_v9, %v814_v28  ;;  %v382_v28 = vunpack.c.l.bf16 %v84_v51 }
 0x2bc   :  { %v5875_v7 = vadd.f32 %v2562_v31, %v2469_v8  ;;  %v1218_v35 = vpack.c.bf16 %v828_v40, %v815_v25  ;;  %v5898_v8 = vld [vmem:[%s6590_s2 + $0x2cc] sm:$0xff]  ;;  %v379_v25 = vunpack.c.h.bf16 %v3107_v29 }
 0x2be   :  { %v5883_v57 = vpop.f32.mrf.mxu2  ;;  %v851_v21 = vmul.f32 %v5718_v0, %v379_v25 }
 0x2c0   :  { %v2285_v45 = vpop.f32.mrf.mxu1  ;;  %v2567_v56 = vpop.f32.mrf.mxu0 }
 0x2c1   :  { %v2470_v44 = vpop.f32.mrf.mxu3  ;;  %v2286_v1 = vadd.f32 %v2285_v45, %v4999_v50  ;;  %v77_v50 = vld [vmem:[%s6590_s2 + $0x1d0] sm:$0xf] }
 0x2c2   :  { %v2471_v31 = vadd.f32 %v2470_v44, %v2377_v43  ;;  %v369_v40 = vunpack.c.l.bf16 %v77_v50 }
 0x2c3   :  { %2615 = vmatmul.bf16.gmra.mxu1 %v1215_v54  ;;  %3010 = vmatmul.msk.bf16.gmra.mxu0 %vm1694_vm0, %v1218_v35  ;;  %v2380_v22 = vadd.f32 %v5789_v48, %v2286_v1  ;;  %v419_v48 = vunpack.c.l.bf16 %v5893_v37  ;;  %v368_v35 = vunpack.c.h.bf16 %v5799_v61  ;;  %v838_v1 = vmul.f32 %v5718_v0, %v366_v20 }
 0x2c4   :  { %v5886_v38 = vadd.f32 %v2564_v11, %v2471_v31  ;;  %v432_v11 = vunpack.c.l.bf16 %v5898_v8  ;;  %v381_v31 = vunpack.c.h.bf16 %v5804_v24  ;;  %v841_v50 = vmul.f32 %v5726_v2, %v369_v40 }
 0x2c5   :  { %v891_v32 = vmul.f32 %v5617_v47, %v419_v48  ;;  %v840_v61 = vmul.f32 %v5730_v16, %v368_v35  ;;  %v3108_v35 = vld [vmem:[%s6590_s2 + $0x228] sm:$0xff] }
 0x2c6   :  { %2803 = vmatmul.bf16.gmra.mxu3 %v1217_v23  ;;  %v5911_v26 = vpop.f32.mrf.mxu2  ;;  %v904_v6 = vmul.f32 %v5617_v47, %v432_v11  ;;  %v853_v24 = vmul.f32 %v5730_v16, %v381_v31  ;;  %v392_v31 = vunpack.c.h.bf16 %v3108_v35 }
 0x2c8   :  { %v2287_v44 = vpop.f32.mrf.mxu1  ;;  %v2569_v54 = vpop.f32.mrf.mxu0  ;;  %v1255_v45 = vpack.c.bf16 %v904_v6, %v891_v32  ;;  %v1228_v32 = vpack.c.bf16 %v851_v21, %v838_v1  ;;  %v3109_v21 = vld [vmem:[%s6590_s2 + $0x25c] sm:$0xff] }
 0x2c9   :  { %v2473_v43 = vpop.f32.mrf.mxu3  ;;  %v2288_v23 = vadd.f32 %v2287_v44, %v5023_v46  ;;  %v98_v44 = vld [vmem:[%s6590_s2 + $0x26c] sm:$0xf] }
 0x2ca   :  { %v2474_v9 = vadd.f32 %v2473_v43, %v2380_v22  ;;  %v854_v22 = vmul.f32 %v5726_v2, %v382_v28  ;;  %v5940_v28 = vld [vmem:[%s6590_s2 + $0x300] sm:$0xff] }
 0x2cb   :  { %v2382_v11 = vadd.f32 %v5817_v27, %v2288_v23  ;;  %2724 = vmatmul.bf16.gmra.mxu2 %v1255_v45  ;;  %v1230_v27 = vpack.c.bf16 %v853_v24, %v840_v61  ;;  %v408_v61 = vunpack.c.l.bf16 %v98_v44 }
 0x2cc   :  { %v5922_v48 = vadd.f32 %v2567_v56, %v2474_v9  ;;  %v1231_v20 = vpack.c.bf16 %v854_v22, %v841_v50  ;;  %v5945_v9 = vld [vmem:[%s6590_s2 + $0x334] sm:$0xff]  ;;  %v405_v50 = vunpack.c.h.bf16 %v3109_v21 }
 0x2ce   :  { %v5930_v51 = vpop.f32.mrf.mxu2  ;;  %v877_v35 = vmul.f32 %v5718_v0, %v405_v50 }
 0x2d0   :  { %v2290_v6 = vpop.f32.mrf.mxu1  ;;  %v2572_v43 = vpop.f32.mrf.mxu0 }
 0x2d1   :  { %v2475_v46 = vpop.f32.mrf.mxu3  ;;  %v2291_v29 = vadd.f32 %v2290_v6, %v5079_v41  ;;  %v91_v41 = vld [vmem:[%s6590_s2 + $0x238] sm:$0xf] }
 0x2d2   :  { %v2476_v56 = vadd.f32 %v2475_v46, %v2382_v11  ;;  %v395_v22 = vunpack.c.l.bf16 %v91_v41 }
 0x2d3   :  { %2620 = vmatmul.bf16.gmra.mxu1 %v1228_v32  ;;  %3011 = vmatmul.msk.bf16.gmra.mxu0 %vm1694_vm0, %v1231_v20  ;;  %v2385_v40 = vadd.f32 %v5836_v39, %v2291_v29  ;;  %v445_v39 = vunpack.c.l.bf16 %v5940_v28  ;;  %v394_v20 = vunpack.c.h.bf16 %v5846_v58  ;;  %v864_v29 = vmul.f32 %v5718_v0, %v392_v31 }
 0x2d4   :  { %v5933_v25 = vadd.f32 %v2569_v54, %v2476_v56  ;;  %v458_v54 = vunpack.c.l.bf16 %v5945_v9  ;;  %v407_v56 = vunpack.c.h.bf16 %v5851_v15  ;;  %v867_v41 = vmul.f32 %v5726_v2, %v395_v22 }
 0x2d5   :  { %v917_v23 = vmul.f32 %v5617_v47, %v445_v39  ;;  %v866_v58 = vmul.f32 %v5730_v16, %v394_v20  ;;  %v3110_v20 = vld [vmem:[%s6590_s2 + $0x290] sm:$0xff] }
 0x2d6   :  { %2808 = vmatmul.bf16.gmra.mxu3 %v1230_v27  ;;  %v5958_v45 = vpop.f32.mrf.mxu2  ;;  %v930_v1 = vmul.f32 %v5617_v47, %v458_v54  ;;  %v879_v15 = vmul.f32 %v5730_v16, %v407_v56  ;;  %v418_v56 = vunpack.c.h.bf16 %v3110_v20 }
 0x2d8   :  { %v2292_v46 = vpop.f32.mrf.mxu1  ;;  %v2574_v32 = vpop.f32.mrf.mxu0  ;;  %v1268_v6 = vpack.c.bf16 %v930_v1, %v917_v23  ;;  %v1241_v23 = vpack.c.bf16 %v877_v35, %v864_v29  ;;  %v3111_v35 = vld [vmem:[%s6590_s2 + $0x2c4] sm:$0xff] }
 0x2d9   :  { %v2478_v11 = vpop.f32.mrf.mxu3  ;;  %v2293_v27 = vadd.f32 %v2292_v46, %v5088_v53  ;;  %v112_v46 = vld [vmem:[%s6590_s2 + $0x2d4] sm:$0xf] }
 0x2da   :  { %v2479_v24 = vadd.f32 %v2478_v11, %v2385_v40  ;;  %v880_v40 = vmul.f32 %v5726_v2, %v408_v61  ;;  %v5987_v61 = vld [vmem:[%s6590_s2 + $0x368] sm:$0xff] }
 0x2db   :  { %v2387_v54 = vadd.f32 %v5864_v4, %v2293_v27  ;;  %2729 = vmatmul.bf16.gmra.mxu2 %v1268_v6  ;;  %v1243_v4 = vpack.c.bf16 %v879_v15, %v866_v58  ;;  %v434_v58 = vunpack.c.l.bf16 %v112_v46 }
 0x2dc   :  { %v5969_v39 = vadd.f32 %v2572_v43, %v2479_v24  ;;  %v1244_v31 = vpack.c.bf16 %v880_v40, %v867_v41  ;;  %v5992_v24 = vld [vmem:[%s6590_s2 + $0x39c] sm:$0xff]  ;;  %v431_v41 = vunpack.c.h.bf16 %v3111_v35 }
 0x2de   :  { %v5977_v44 = vpop.f32.mrf.mxu2  ;;  %v903_v35 = vmul.f32 %v5718_v0, %v431_v41 }
 0x2e0   :  { %v2295_v1 = vpop.f32.mrf.mxu1  ;;  %v2577_v11 = vpop.f32.mrf.mxu0 }
 0x2e1   :  { %v2480_v53 = vpop.f32.mrf.mxu3  ;;  %v2296_v21 = vadd.f32 %v2295_v1, %v5119_v12  ;;  %v105_v12 = vld [vmem:[%s6590_s2 + $0x2a0] sm:$0xf] }
 0x2e2   :  { %v2481_v43 = vadd.f32 %v2480_v53, %v2387_v54  ;;  %v421_v40 = vunpack.c.l.bf16 %v105_v12 }
 0x2e3   :  { %2625 = vmatmul.bf16.gmra.mxu1 %v1241_v23  ;;  %3012 = vmatmul.msk.bf16.gmra.mxu0 %vm1694_vm0, %v1244_v31  ;;  %v2390_v22 = vadd.f32 %v5883_v57, %v2296_v21  ;;  %v471_v57 = vunpack.c.l.bf16 %v5987_v61  ;;  %v420_v31 = vunpack.c.h.bf16 %v5893_v37 }
 0x2e4   :  { %v5980_v50 = vadd.f32 %v2574_v32, %v2481_v43  ;;  %v484_v32 = vunpack.c.l.bf16 %v5992_v24  ;;  %v433_v43 = vunpack.c.h.bf16 %v5898_v8  ;;  %v893_v12 = vmul.f32 %v5726_v2, %v421_v40 }
 0x2e5   :  { %v943_v27 = vmul.f32 %v5617_v47, %v471_v57  ;;  %v890_v57 = vmul.f32 %v5718_v0, %v418_v56  ;;  %v892_v37 = vmul.f32 %v5730_v16, %v420_v31  ;;  %v6039_v31 = vld [vmem:[%s6590_s2 + $0x404] sm:$0xff] }
 0x2e6   :  { %2813 = vmatmul.bf16.gmra.mxu3 %v1243_v4  ;;  %v6005_v6 = vpop.f32.mrf.mxu2  ;;  %v956_v29 = vmul.f32 %v5617_v47, %v484_v32  ;;  %v6632_v4 = vld [vmem:[#allocation2_spill] sm:$0xff]  ;;  %v905_v8 = vmul.f32 %v5730_v16, %v433_v43  ;;  %v126_v43 = vld [vmem:[%s6590_s2 + $0x33c] sm:$0xf] }
 0x2e8   :  { %v2297_v53 = vpop.f32.mrf.mxu1  ;;  %v2579_v23 = vpop.f32.mrf.mxu0  ;;  %v1281_v1 = vpack.c.bf16 %v956_v29, %v943_v27  ;;  %v1254_v29 = vpack.c.bf16 %v903_v35, %v890_v57 }
 0x2e9   :  { %v2483_v54 = vpop.f32.mrf.mxu3  ;;  %v2298_v21 = vadd.f32 %v2297_v53, %v6632_v4  ;;  %v6634_v53 = vld [vmem:[#allocation3_spill] sm:$0xff] }
 0x2ea   :  { %v2484_v15 = vadd.f32 %v2483_v54, %v2390_v22  ;;  %v906_v22 = vmul.f32 %v5726_v2, %v434_v58  ;;  %v6034_v58 = vld [vmem:[%s6590_s2 + $0x3d0] sm:$0xff] }
 0x2eb   :  { %v2392_v20 = vadd.f32 %v5911_v26, %v2298_v21  ;;  %2734 = vmatmul.bf16.gmra.mxu2 %v1281_v1  ;;  %v1256_v26 = vpack.c.bf16 %v905_v8, %v892_v37  ;;  %v510_v1 = vunpack.c.l.bf16 %v6039_v31  ;;  %v3112_v21 = vld [vmem:[%s6590_s2 + $0x2f8] sm:$0xff]  ;;  %v3113_v37 = vld [vmem:[%s6590_s2 + $0x32c] sm:$0xff] }
 0x2ec   :  { %v6016_v32 = vadd.f32 %v2577_v11, %v2484_v15  ;;  %v1257_v56 = vpack.c.bf16 %v906_v22, %v893_v12  ;;  %v444_v57 = vunpack.c.h.bf16 %v3112_v21  ;;  %v457_v8 = vunpack.c.h.bf16 %v3113_v37  ;;  %v6636_v21 = vld [vmem:[#allocation4_spill] sm:$0xff] }
 0x2ed   :  { %v982_v12 = vmul.f32 %v5617_v47, %v510_v1 }
 0x2ee   :  { %6633 = vst [vmem:[#allocation9_spill] sm:$0xff] %v6016_v32  ;;  %v6024_v46 = vpop.f32.mrf.mxu2  ;;  %v916_v1 = vmul.f32 %v5718_v0, %v444_v57  ;;  %v929_v37 = vmul.f32 %v5718_v0, %v457_v8 }
 0x2f0   :  { %v2300_v54 = vpop.f32.mrf.mxu1  ;;  %v2582_v15 = vpop.f32.mrf.mxu0 }
 0x2f1   :  { %v2485_v27 = vpop.f32.mrf.mxu3  ;;  %v2301_v41 = vadd.f32 %v2300_v54, %v6634_v53  ;;  %v459_v53 = vunpack.c.h.bf16 %v5945_v9 }
 0x2f2   :  { %v2486_v11 = vadd.f32 %v2485_v27, %v2392_v20 }
 0x2f3   :  { %2630 = vmatmul.bf16.gmra.mxu1 %v1254_v29  ;;  %3013 = vmatmul.msk.bf16.gmra.mxu0 %vm1694_vm0, %v1257_v56  ;;  %v2395_v40 = vadd.f32 %v5930_v51, %v2301_v41  ;;  %v497_v51 = vunpack.c.l.bf16 %v6034_v58  ;;  %v460_v29 = vunpack.c.l.bf16 %v126_v43  ;;  %v931_v9 = vmul.f32 %v5730_v16, %v459_v53  ;;  %v3114_v53 = vld [vmem:[%s6590_s2 + $0x360] sm:$0xff] }
 0x2f4   :  { %v6027_v4 = vadd.f32 %v2579_v23, %v2486_v11  ;;  %v119_v23 = vld [vmem:[%s6590_s2 + $0x308] sm:$0xf] }
 0x2f5   :  { %v969_v35 = vmul.f32 %v5617_v47, %v497_v51  ;;  %v447_v27 = vunpack.c.l.bf16 %v119_v23 }
 0x2f6   :  { %6635 = vst [vmem:[#allocation10_spill] sm:$0xff] %v6027_v4  ;;  %2818 = vmatmul.bf16.gmra.mxu3 %v1256_v26  ;;  %v6052_v20 = vpop.f32.mrf.mxu2  ;;  %v446_v26 = vunpack.c.h.bf16 %v5940_v28 }
 0x2f7   :  { %v1294_v41 = vpack.c.bf16 %v982_v12, %v969_v35  ;;  %v919_v23 = vmul.f32 %v5726_v2, %v447_v27  ;;  %v1267_v12 = vpack.c.bf16 %v929_v37, %v916_v1 }
 0x2f8   :  { %v2302_v11 = vpop.f32.mrf.mxu1  ;;  %v2584_v54 = vpop.f32.mrf.mxu0  ;;  %v918_v28 = vmul.f32 %v5730_v16, %v446_v26 }
 0x2f9   :  { %v2488_v22 = vpop.f32.mrf.mxu3  ;;  %v2303_v51 = vadd.f32 %v2302_v11, %v6636_v21 }
 0x2fa   :  { %v2489_v56 = vadd.f32 %v2488_v22, %v2395_v40  ;;  %v932_v40 = vmul.f32 %v5726_v2, %v460_v29  ;;  %v6081_v29 = vld [vmem:[%s6590_s2 + $0x438] sm:$0xff] }
 0x2fb   :  { %v2397_v32 = vadd.f32 %v5958_v45, %v2303_v51  ;;  %2739 = vmatmul.bf16.gmra.mxu2 %v1294_v41  ;;  %v1269_v45 = vpack.c.bf16 %v931_v9, %v918_v28  ;;  %v470_v41 = vunpack.c.h.bf16 %v3114_v53 }
 0x2fc   :  { %v6063_v4 = vadd.f32 %v2582_v15, %v2489_v56  ;;  %v1270_v57 = vpack.c.bf16 %v932_v40, %v919_v23  ;;  %v3115_v23 = vld [vmem:[%s6590_s2 + $0x394] sm:$0xff] }
 0x2fd   :  { %v483_v40 = vunpack.c.h.bf16 %v3115_v23 }
 0x2fe   :  { %v6071_v43 = vpop.f32.mrf.mxu2 }
 0x2ff   :  { %v955_v23 = vmul.f32 %v5718_v0, %v483_v40 }
 0x300   :  { %v2305_v22 = vpop.f32.mrf.mxu1  ;;  %v2587_v56 = vpop.f32.mrf.mxu0 }
 0x301   :  { %v2490_v35 = vpop.f32.mrf.mxu3  ;;  %v2306_v8 = vadd.f32 %v2305_v22, %v5237_v63  ;;  %v133_v63 = vld [vmem:[%s6590_s2 + $0x370] sm:$0xf]  ;;  %v485_v22 = vunpack.c.h.bf16 %v5992_v24 }
 0x302   :  { %v2491_v15 = vadd.f32 %v2490_v35, %v2397_v32  ;;  %v6086_v32 = vld [vmem:[%s6590_s2 + $0x46c] sm:$0xff]  ;;  %v473_v28 = vunpack.c.l.bf16 %v133_v63 }
 0x303   :  { %2635 = vmatmul.bf16.gmra.mxu1 %v1267_v12  ;;  %3014 = vmatmul.msk.bf16.gmra.mxu0 %vm1694_vm0, %v1270_v57  ;;  %v2400_v27 = vadd.f32 %v5977_v44, %v2306_v8  ;;  %v523_v44 = vunpack.c.l.bf16 %v6081_v29  ;;  %v536_v26 = vunpack.c.l.bf16 %v6086_v32  ;;  %v957_v24 = vmul.f32 %v5730_v16, %v485_v22 }
 0x304   :  { %v6074_v11 = vadd.f32 %v2584_v54, %v2491_v15  ;;  %v140_v54 = vld [vmem:[%s6590_s2 + $0x3a4] sm:$0xf]  ;;  %v472_v15 = vunpack.c.h.bf16 %v5987_v61  ;;  %v945_v63 = vmul.f32 %v5726_v2, %v473_v28 }
 0x305   :  { %v995_v51 = vmul.f32 %v5617_v47, %v523_v44  ;;  %v1008_v1 = vmul.f32 %v5617_v47, %v536_v26  ;;  %v486_v9 = vunpack.c.l.bf16 %v140_v54  ;;  %v942_v44 = vmul.f32 %v5718_v0, %v470_v41  ;;  %v6127_v28 = vld [vmem:[%s6590_s2 + $0x4a0] sm:$0xff] }
 0x306   :  { %2823 = vmatmul.bf16.gmra.mxu3 %v1269_v45  ;;  %v6099_v21 = vpop.f32.mrf.mxu2  ;;  %v944_v61 = vmul.f32 %v5730_v16, %v472_v15 }
 0x307   :  { %v1307_v45 = vpack.c.bf16 %v1008_v1, %v995_v51  ;;  %v1280_v51 = vpack.c.bf16 %v955_v23, %v942_v44  ;;  %v3116_v23 = vld [vmem:[%s6590_s2 + $0x3c8] sm:$0xff] }
 0x308   :  { %v2307_v12 = vpop.f32.mrf.mxu1  ;;  %v2589_v57 = vpop.f32.mrf.mxu0 }
 0x309   :  { %v2493_v37 = vpop.f32.mrf.mxu3  ;;  %v2308_v8 = vadd.f32 %v2307_v12, %v5248_v19  ;;  %v154_v12 = vld [vmem:[%s6590_s2 + $0x40c] sm:$0xf] }
 0x30a   :  { %v2494_v35 = vadd.f32 %v2493_v37, %v2400_v27  ;;  %v958_v27 = vmul.f32 %v5726_v2, %v486_v9  ;;  %v6132_v9 = vld [vmem:[%s6590_s2 + $0x4d4] sm:$0xff] }
 0x30b   :  { %v2402_v53 = vadd.f32 %v6005_v6, %v2308_v8  ;;  %2744 = vmatmul.bf16.gmra.mxu2 %v1307_v45  ;;  %v1282_v6 = vpack.c.bf16 %v957_v24, %v944_v61  ;;  %v562_v15 = vunpack.c.l.bf16 %v6132_v9 }
 0x30c   :  { %v6110_v26 = vadd.f32 %v2587_v56, %v2494_v35  ;;  %v1283_v41 = vpack.c.bf16 %v958_v27, %v945_v63  ;;  %v496_v63 = vunpack.c.h.bf16 %v3116_v23  ;;  %v3117_v27 = vld [vmem:[%s6590_s2 + $0x3fc] sm:$0xff] }
 0x30d   :  { %v1034_v44 = vmul.f32 %v5617_v47, %v562_v15  ;;  %v509_v61 = vunpack.c.h.bf16 %v3117_v27 }
 0x30e   :  { %v6118_v54 = vpop.f32.mrf.mxu2  ;;  %v968_v15 = vmul.f32 %v5718_v0, %v496_v63 }
 0x30f   :  { %v981_v23 = vmul.f32 %v5718_v0, %v509_v61 }
 0x310   :  { %v2601_v1 = vpop.f32.mrf.mxu1  ;;  %v2883_v37 = vpop.f32.mrf.mxu0 }
 0x311   :  { %v2495_v19 = vpop.f32.mrf.mxu3  ;;  %v2602_v40 = vadd.f32 %v2601_v1, %v5296_v52  ;;  %v147_v52 = vld [vmem:[%s6590_s2 + $0x3d8] sm:$0xf]  ;;  %v511_v1 = vunpack.c.h.bf16 %v6039_v31 }
 0x312   :  { %v2496_v56 = vadd.f32 %v2495_v19, %v2402_v53  ;;  %v499_v24 = vunpack.c.l.bf16 %v147_v52  ;;  %v512_v19 = vunpack.c.l.bf16 %v154_v12 }
 0x313   :  { %2640 = vmatmul.bf16.gmra.mxu1 %v1280_v51  ;;  %3015 = vmatmul.msk.bf16.gmra.mxu0 %vm1694_vm0, %v1283_v41  ;;  %v2696_v22 = vadd.f32 %v6024_v46, %v2602_v40  ;;  %v983_v31 = vmul.f32 %v5730_v16, %v511_v1 }
 0x314   :  { %v6121_v35 = vadd.f32 %v2589_v57, %v2496_v56  ;;  %v549_v57 = vunpack.c.l.bf16 %v6127_v28  ;;  %v498_v56 = vunpack.c.h.bf16 %v6034_v58  ;;  %v971_v27 = vmul.f32 %v5726_v2, %v499_v24 }
 0x315   :  { %v984_v52 = vmul.f32 %v5726_v2, %v512_v19 }
 0x316   :  { %2828 = vmatmul.bf16.gmra.mxu3 %v1282_v6  ;;  %v6143_v45 = vpop.f32.mrf.mxu2  ;;  %v1021_v8 = vmul.f32 %v5617_v47, %v549_v57  ;;  %v970_v58 = vmul.f32 %v5730_v16, %v498_v56 }
 0x318   :  { %v2603_v51 = vpop.f32.mrf.mxu1  ;;  %v2885_v41 = vpop.f32.mrf.mxu0  ;;  %v1320_v6 = vpack.c.bf16 %v1034_v44, %v1021_v8  ;;  %v1296_v8 = vpack.c.bf16 %v984_v52, %v971_v27  ;;  %v1295_v61 = vpack.c.bf16 %v983_v31, %v970_v58  ;;  %v3119_v52 = vld [vmem:[%s6590_s2 + $0x464] sm:$0xff] }
 0x319   :  { %v2789_v53 = vpop.f32.mrf.mxu3  ;;  %v2604_v57 = vadd.f32 %v2603_v51, %v5312_v62  ;;  %v168_v51 = vld [vmem:[%s6590_s2 + $0x474] sm:$0xf]  ;;  %v535_v58 = vunpack.c.h.bf16 %v3119_v52 }
 0x31a   :  { %v2790_v46 = vadd.f32 %v2789_v53, %v2696_v22  ;;  %v1293_v22 = vpack.c.bf16 %v981_v23, %v968_v15  ;;  %v3118_v23 = vld [vmem:[%s6590_s2 + $0x430] sm:$0xff] }
 0x31b   :  { %2749 = vmatmul.bf16.gmra.mxu2 %v1320_v6  ;;  %v2698_v62 = vadd.f32 %v6052_v20, %v2604_v57  ;;  %v6179_v20 = vld [vmem:[%s6590_s2 + $0x53c] sm:$0xff]  ;;  %v522_v27 = vunpack.c.h.bf16 %v3118_v23 }
 0x31c   :  { %v2884_v40 = vadd.f32 %v2883_v37, %v2790_v46  ;;  %v6174_v46 = vld [vmem:[%s6590_s2 + $0x508] sm:$0xff]  ;;  %v588_v56 = vunpack.c.l.bf16 %v6179_v20 }
 0x31e   :  { %2969 = vst.msk [vmem:[%s6592_s3] sm:$0xff] %vm2968_vm1, %v2884_v40  ;;  %v6167_v37 = vpop.f32.mrf.mxu2  ;;  %v1060_v57 = vmul.f32 %v5617_v47, %v588_v56 }
 0x320   :  { %v2606_v53 = vpop.f32.mrf.mxu1  ;;  %v2888_v63 = vpop.f32.mrf.mxu0 }
 0x321   :  { %v2791_v12 = vpop.f32.mrf.mxu3  ;;  %v2607_v19 = vadd.f32 %v2606_v53, %v5347_v59  ;;  %v161_v59 = vld [vmem:[%s6590_s2 + $0x440] sm:$0xf] }
 0x322   :  { %v2792_v44 = vadd.f32 %v2791_v12, %v2698_v62  ;;  %v525_v31 = vunpack.c.l.bf16 %v161_v59  ;;  %v538_v62 = vunpack.c.l.bf16 %v168_v51 }
 0x323   :  { %2645 = vmatmul.bf16.gmra.mxu1 %v1293_v22  ;;  %3016 = vmatmul.msk.bf16.gmra.mxu0 %vm1694_vm0, %v1296_v8  ;;  %v2701_v1 = vadd.f32 %v6071_v43, %v2607_v19  ;;  %v524_v8 = vunpack.c.h.bf16 %v6081_v29  ;;  %v994_v19 = vmul.f32 %v5718_v0, %v522_v27 }
 0x324   :  { %v2886_v24 = vadd.f32 %v2885_v41, %v2792_v44  ;;  %v575_v41 = vunpack.c.l.bf16 %v6174_v46  ;;  %v537_v44 = vunpack.c.h.bf16 %v6086_v32  ;;  %v997_v56 = vmul.f32 %v5726_v2, %v525_v31  ;;  %v175_v31 = vld [vmem:[%s6590_s2 + $0x4a8] sm:$0xf] }
 0x325   :  { %v1010_v59 = vmul.f32 %v5726_v2, %v538_v62  ;;  %v996_v29 = vmul.f32 %v5730_v16, %v524_v8  ;;  %v6240_v62 = vld [vmem:[%s6590_s2 + $0x5a4] sm:$0xff]  ;;  %v3120_v8 = vld [vmem:[%s6590_s2 + $0x498] sm:$0xff] }
 0x326   :  { %2970 = vst.msk [vmem:[%s6592_s3 + $0x8] sm:$0xff] %vm2968_vm1, %v2886_v24  ;;  %2833 = vmatmul.bf16.gmra.mxu3 %v1295_v61  ;;  %v6194_v6 = vpop.f32.mrf.mxu2  ;;  %v1047_v40 = vmul.f32 %v5617_v47, %v575_v41  ;;  %v1007_v41 = vmul.f32 %v5718_v0, %v535_v58  ;;  %v1009_v32 = vmul.f32 %v5730_v16, %v537_v44  ;;  %v548_v44 = vunpack.c.h.bf16 %v3120_v8 }
 0x328   :  { %v2608_v12 = vpop.f32.mrf.mxu1  ;;  %v2890_v22 = vpop.f32.mrf.mxu0  ;;  %v1333_v53 = vpack.c.bf16 %v1060_v57, %v1047_v40  ;;  %v1309_v40 = vpack.c.bf16 %v1010_v59, %v997_v56  ;;  %v1308_v27 = vpack.c.bf16 %v1009_v32, %v996_v29 }
 0x329   :  { %v2794_v15 = vpop.f32.mrf.mxu3  ;;  %v2609_v24 = vadd.f32 %v2608_v12, %v5364_v34  ;;  %v614_v12 = vunpack.c.l.bf16 %v6240_v62 }
 0x32a   :  { %v2795_v43 = vadd.f32 %v2794_v15, %v2701_v1  ;;  %v1306_v1 = vpack.c.bf16 %v1007_v41, %v994_v19  ;;  %v551_v41 = vunpack.c.l.bf16 %v175_v31 }
 0x32b   :  { %2754 = vmatmul.bf16.gmra.mxu2 %v1333_v53  ;;  %v2703_v34 = vadd.f32 %v6099_v21, %v2609_v24  ;;  %v182_v21 = vld [vmem:[%s6590_s2 + $0x4dc] sm:$0xf]  ;;  %v3121_v53 = vld [vmem:[%s6590_s2 + $0x4cc] sm:$0xff]  ;;  %v1086_v29 = vmul.f32 %v5617_v47, %v614_v12 }
 0x32c   :  { %v2889_v61 = vadd.f32 %v2888_v63, %v2795_v43  ;;  %v564_v56 = vunpack.c.l.bf16 %v182_v21 }
 0x32e   :  { %2971 = vst.msk [vmem:[%s6592_s3 + $0x10] sm:$0xff] %vm2968_vm1, %v2889_v61  ;;  %v6218_v63 = vpop.f32.mrf.mxu2  ;;  %v561_v61 = vunpack.c.h.bf16 %v3121_v53  ;;  %v1036_v31 = vmul.f32 %v5726_v2, %v564_v56  ;;  %v6291_v56 = vld [vmem:[%s6590_s2 + $0x60c] sm:$0xff] }
 0x330   :  { %v2611_v15 = vpop.f32.mrf.mxu1  ;;  %v2893_v23 = vpop.f32.mrf.mxu0 }
 0x331   :  { %v2796_v51 = vpop.f32.mrf.mxu3  ;;  %v2612_v58 = vadd.f32 %v2611_v15, %v5405_v3  ;;  %v6235_v3 = vld [vmem:[%s6590_s2 + $0x570] sm:$0xff] }
 0x332   :  { %v2797_v57 = vadd.f32 %v2796_v51, %v2703_v34  ;;  %v601_v43 = vunpack.c.l.bf16 %v6235_v3  ;;  %v550_v51 = vunpack.c.h.bf16 %v6127_v28 }
 0x333   :  { %2650 = vmatmul.bf16.gmra.mxu1 %v1306_v1  ;;  %3017 = vmatmul.msk.bf16.gmra.mxu0 %vm1694_vm0, %v1309_v40  ;;  %v563_v1 = vunpack.c.h.bf16 %v6132_v9 }
 0x334   :  { %v2891_v52 = vadd.f32 %v2890_v22, %v2797_v57  ;;  %v2706_v22 = vadd.f32 %v6118_v54, %v2612_v58  ;;  %v1073_v59 = vmul.f32 %v5617_v47, %v601_v43  ;;  %v1023_v58 = vmul.f32 %v5726_v2, %v551_v41  ;;  %v189_v41 = vld [vmem:[%s6590_s2 + $0x510] sm:$0xf] }
 0x335   :  { %v1022_v28 = vmul.f32 %v5730_v16, %v550_v51  ;;  %v1035_v9 = vmul.f32 %v5730_v16, %v563_v1  ;;  %v3123_v51 = vld [vmem:[%s6590_s2 + $0x534] sm:$0xff] }
 0x336   :  { %2972 = vst.msk [vmem:[%s6592_s3 + $0x18] sm:$0xff] %vm2968_vm1, %v2891_v52  ;;  %2838 = vmatmul.bf16.gmra.mxu3 %v1308_v27  ;;  %v6251_v24 = vpop.f32.mrf.mxu2  ;;  %v1346_v40 = vpack.c.bf16 %v1086_v29, %v1073_v59  ;;  %v1020_v27 = vmul.f32 %v5718_v0, %v548_v44  ;;  %v1033_v52 = vmul.f32 %v5718_v0, %v561_v61  ;;  %v640_v29 = vunpack.c.l.bf16 %v6291_v56 }
 0x337   :  { %v1322_v12 = vpack.c.bf16 %v1036_v31, %v1023_v58  ;;  %v1321_v53 = vpack.c.bf16 %v1035_v9, %v1022_v28  ;;  %v587_v1 = vunpack.c.h.bf16 %v3123_v51  ;;  %v576_v9 = vunpack.c.h.bf16 %v6174_v46 }
 0x338   :  { %v2613_v32 = vpop.f32.mrf.mxu1  ;;  %v2895_v34 = vpop.f32.mrf.mxu0  ;;  %v1319_v43 = vpack.c.bf16 %v1033_v52, %v1020_v27  ;;  %v1112_v58 = vmul.f32 %v5617_v47, %v640_v29 }
 0x339   :  { %v2799_v19 = vpop.f32.mrf.mxu3  ;;  %v2614_v15 = vadd.f32 %v2613_v32, %v5428_v49  ;;  %v3122_v32 = vld [vmem:[%s6590_s2 + $0x500] sm:$0xff]  ;;  %v1048_v46 = vmul.f32 %v5730_v16, %v576_v9 }
 0x33a   :  { %v2800_v54 = vadd.f32 %v2799_v19, %v2706_v22  ;;  %v3125_v9 = vld [vmem:[%s6590_s2 + $0x59c] sm:$0xff] }
 0x33b   :  { %2759 = vmatmul.bf16.gmra.mxu2 %v1346_v40  ;;  %v2708_v49 = vadd.f32 %v6143_v45, %v2614_v15  ;;  %v196_v45 = vld [vmem:[%s6590_s2 + $0x544] sm:$0xf]  ;;  %v577_v15 = vunpack.c.l.bf16 %v189_v41 }
 0x33c   :  { %v2894_v57 = vadd.f32 %v2893_v23, %v2800_v54  ;;  %v590_v27 = vunpack.c.l.bf16 %v196_v45 }
 0x33e   :  { %2973 = vst.msk [vmem:[%s6592_s3 + $0x20] sm:$0xff] %vm2968_vm1, %v2894_v57  ;;  %v6269_v23 = vpop.f32.mrf.mxu2 }
 0x340   :  { %v2616_v8 = vpop.f32.mrf.mxu1  ;;  %v2898_v44 = vpop.f32.mrf.mxu0 }
 0x341   :  { %v2801_v21 = vpop.f32.mrf.mxu3  ;;  %v2617_v19 = vadd.f32 %v2616_v8, %v5463_v36  ;;  %v6286_v36 = vld [vmem:[%s6590_s2 + $0x5d8] sm:$0xff] }
 0x342   :  { %v2802_v22 = vadd.f32 %v2801_v21, %v2708_v49  ;;  %v627_v59 = vunpack.c.l.bf16 %v6286_v36  ;;  %v589_v49 = vunpack.c.h.bf16 %v6179_v20 }
 0x343   :  { %2655 = vmatmul.bf16.gmra.mxu1 %v1319_v43  ;;  %3018 = vmatmul.msk.bf16.gmra.mxu0 %vm1694_vm0, %v1322_v12  ;;  %v2711_v54 = vadd.f32 %v6167_v37, %v2617_v19  ;;  %v6637_v12 = vld [vmem:[#allocation5_spill] sm:$0xff]  ;;  %v1062_v19 = vmul.f32 %v5726_v2, %v590_v27 }
 0x344   :  { %v2896_v61 = vadd.f32 %v2895_v34, %v2802_v22  ;;  %v574_v34 = vunpack.c.h.bf16 %v3122_v32  ;;  %v1099_v52 = vmul.f32 %v5617_v47, %v627_v59  ;;  %v1061_v20 = vmul.f32 %v5730_v16, %v589_v49  ;;  %v6342_v27 = vld [vmem:[%s6590_s2 + $0x674] sm:$0xff] }
 0x345   :  { %v613_v49 = vunpack.c.h.bf16 %v3125_v9 }
 0x346   :  { %2974 = vst.msk [vmem:[%s6592_s3 + $0x28] sm:$0xff] %vm2968_vm1, %v2896_v61  ;;  %2843 = vmatmul.bf16.gmra.mxu3 %v1321_v53  ;;  %v6302_v40 = vpop.f32.mrf.mxu2  ;;  %v1359_v21 = vpack.c.bf16 %v1112_v58, %v1099_v52  ;;  %v1046_v8 = vmul.f32 %v5718_v0, %v574_v34  ;;  %v1059_v53 = vmul.f32 %v5718_v0, %v587_v1  ;;  %v666_v58 = vunpack.c.l.bf16 %v6342_v27 }
 0x347   :  { %v1049_v61 = vmul.f32 %v5726_v2, %v577_v15  ;;  %v1334_v51 = vpack.c.bf16 %v1061_v20, %v1048_v46  ;;  %v203_v15 = vld [vmem:[%s6590_s2 + $0x578] sm:$0xf]  ;;  %v602_v46 = vunpack.c.h.bf16 %v6235_v3  ;;  %v615_v20 = vunpack.c.h.bf16 %v6240_v62 }
 0x348   :  { %v2618_v31 = vpop.f32.mrf.mxu1  ;;  %v2900_v28 = vpop.f32.mrf.mxu0  ;;  %v1332_v59 = vpack.c.bf16 %v1059_v53, %v1046_v8  ;;  %v1138_v53 = vmul.f32 %v5617_v47, %v666_v58 }
 0x349   :  { %v2804_v57 = vpop.f32.mrf.mxu3  ;;  %v2619_v22 = vadd.f32 %v2618_v31, %v6637_v12  ;;  %v1335_v29 = vpack.c.bf16 %v1062_v19, %v1049_v61  ;;  %v3124_v31 = vld [vmem:[%s6590_s2 + $0x568] sm:$0xff]  ;;  %v603_v12 = vunpack.c.l.bf16 %v203_v15  ;;  %v1074_v3 = vmul.f32 %v5730_v16, %v602_v46 }
 0x34a   :  { %v2805_v37 = vadd.f32 %v2804_v57, %v2711_v54  ;;  %v1087_v62 = vmul.f32 %v5730_v16, %v615_v20  ;;  %v3127_v20 = vld [vmem:[%s6590_s2 + $0x604] sm:$0xff] }
 0x34b   :  { %2764 = vmatmul.bf16.gmra.mxu2 %v1359_v21 }
 0x34c   :  { %v2899_v43 = vadd.f32 %v2898_v44, %v2805_v37  ;;  %v2713_v44 = vadd.f32 %v6194_v6, %v2619_v22  ;;  %v210_v6 = vld [vmem:[%s6590_s2 + $0x5ac] sm:$0xf] }
 0x34d   :  { %v616_v22 = vunpack.c.l.bf16 %v210_v6 }
 0x34e   :  { %2975 = vst.msk [vmem:[%s6592_s3 + $0x30] sm:$0xff] %vm2968_vm1, %v2899_v43  ;;  %v6320_v41 = vpop.f32.mrf.mxu2 }
 0x350   :  { %v2621_v32 = vpop.f32.mrf.mxu1  ;;  %v2903_v34 = vpop.f32.mrf.mxu0 }
 0x351   :  { %v2806_v45 = vpop.f32.mrf.mxu3  ;;  %v2622_v57 = vadd.f32 %v2621_v32, %v5509_v33  ;;  %v6337_v33 = vld [vmem:[%s6590_s2 + $0x640] sm:$0xff]  ;;  %v1085_v32 = vmul.f32 %v5718_v0, %v613_v49  ;;  %v6639_v49 = vld [vmem:[#allocation7_spill] sm:$0xff] }
 0x352   :  { %v2807_v54 = vadd.f32 %v2806_v45, %v2713_v44  ;;  %v653_v52 = vunpack.c.l.bf16 %v6337_v33 }
 0x353   :  { %2660 = vmatmul.bf16.gmra.mxu1 %v1332_v59  ;;  %3019 = vmatmul.msk.bf16.gmra.mxu0 %vm1694_vm0, %v1335_v29  ;;  %v2716_v37 = vadd.f32 %v6218_v63, %v2622_v57  ;;  %v6638_v59 = vld [vmem:[#allocation6_spill] sm:$0xff] }
 0x354   :  { %v2901_v1 = vadd.f32 %v2900_v28, %v2807_v54  ;;  %v600_v28 = vunpack.c.h.bf16 %v3124_v31  ;;  %v1125_v8 = vmul.f32 %v5617_v47, %v653_v52 }
 0x356   :  { %2976 = vst.msk [vmem:[%s6592_s3 + $0x38] sm:$0xff] %vm2968_vm1, %v2901_v1  ;;  %2848 = vmatmul.bf16.gmra.mxu3 %v1334_v51  ;;  %v6353_v21 = vpop.f32.mrf.mxu2  ;;  %v1372_v44 = vpack.c.bf16 %v1138_v53, %v1125_v8  ;;  %v1072_v54 = vmul.f32 %v5718_v0, %v600_v28  ;;  %v1075_v51 = vmul.f32 %v5726_v2, %v603_v12  ;;  %v217_v12 = vld [vmem:[%s6590_s2 + $0x5e0] sm:$0xf] }
 0x357   :  { %v1088_v1 = vmul.f32 %v5726_v2, %v616_v22  ;;  %v1347_v28 = vpack.c.bf16 %v1087_v62, %v1074_v3  ;;  %v6388_v22 = vld [vmem:[%s6590_s2 + $0x6a8] sm:$0xff]  ;;  %v6393_v8 = vld [vmem:[%s6590_s2 + $0x6dc] sm:$0xff]  ;;  %v628_v3 = vunpack.c.h.bf16 %v6286_v36  ;;  %v641_v62 = vunpack.c.h.bf16 %v6291_v56 }
 0x358   :  { %v2623_v61 = vpop.f32.mrf.mxu1  ;;  %v2905_v19 = vpop.f32.mrf.mxu0  ;;  %v1345_v15 = vpack.c.bf16 %v1085_v32, %v1072_v54  ;;  %v679_v53 = vunpack.c.l.bf16 %v6388_v22 }
 0x359   :  { %v2809_v43 = vpop.f32.mrf.mxu3  ;;  %v2624_v29 = vadd.f32 %v2623_v61, %v6638_v59  ;;  %v1348_v6 = vpack.c.bf16 %v1088_v1, %v1075_v51  ;;  %v629_v59 = vunpack.c.l.bf16 %v217_v12  ;;  %v1100_v36 = vmul.f32 %v5730_v16, %v628_v3 }
 0x35a   :  { %v2810_v63 = vadd.f32 %v2809_v43, %v2716_v37  ;;  %v1151_v54 = vmul.f32 %v5617_v47, %v679_v53  ;;  %v1113_v56 = vmul.f32 %v5730_v16, %v641_v62 }
 0x35b   :  { %2769 = vmatmul.bf16.gmra.mxu2 %v1372_v44  ;;  %v639_v44 = vunpack.c.h.bf16 %v3127_v20 }
 0x35c   :  { %v2904_v45 = vadd.f32 %v2903_v34, %v2810_v63  ;;  %v2718_v34 = vadd.f32 %v6251_v24, %v2624_v29  ;;  %v224_v24 = vld [vmem:[%s6590_s2 + $0x614] sm:$0xf]  ;;  %v692_v63 = vunpack.c.l.bf16 %v6393_v8 }
 0x35d   :  { %v642_v29 = vunpack.c.l.bf16 %v224_v24 }
 0x35e   :  { %2977 = vst.msk [vmem:[%s6592_s3 + $0x40] sm:$0xff] %vm2968_vm1, %v2904_v45  ;;  %v6371_v52 = vpop.f32.mrf.mxu2  ;;  %v1164_v32 = vmul.f32 %v5617_v47, %v692_v63 }
 0x35f   :  { %v1114_v47 = vmul.f32 %v5726_v2, %v642_v29 }
 0x360   :  { %v2626_v37 = vpop.f32.mrf.mxu1  ;;  %v2908_v31 = vpop.f32.mrf.mxu0 }
 0x361   :  { %v2811_v57 = vpop.f32.mrf.mxu3  ;;  %v2627_v43 = vadd.f32 %v2626_v37, %v6639_v49 }
 0x362   :  { %v2812_v58 = vadd.f32 %v2811_v57, %v2718_v34  ;;  %v1385_v57 = vpack.c.bf16 %v1164_v32, %v1151_v54  ;;  %v3129_v54 = vld [vmem:[%s6590_s2 + $0x66c] sm:$0xff] }
 0x363   :  { %2665 = vmatmul.bf16.gmra.mxu1 %v1345_v15  ;;  %3020 = vmatmul.msk.bf16.gmra.mxu0 %vm1694_vm0, %v1348_v6  ;;  %v2721_v61 = vadd.f32 %v6269_v23, %v2627_v43  ;;  %v6640_v6 = vld [vmem:[#allocation8_spill] sm:$0xff]  ;;  %v665_v32 = vunpack.c.h.bf16 %v3129_v54 }
 0x364   :  { %v2906_v9 = vadd.f32 %v2905_v19, %v2812_v58  ;;  %v3126_v19 = vld [vmem:[%s6590_s2 + $0x5d0] sm:$0xff] }
 0x365   :  { %v626_v46 = vunpack.c.h.bf16 %v3126_v19 }
 0x366   :  { %2978 = vst.msk [vmem:[%s6592_s3 + $0x48] sm:$0xff] %vm2968_vm1, %v2906_v9  ;;  %2853 = vmatmul.bf16.gmra.mxu3 %v1347_v28  ;;  %v6408_v34 = vpop.f32.mrf.mxu2  ;;  %v1111_v28 = vmul.f32 %v5718_v0, %v639_v44  ;;  %v1101_v9 = vmul.f32 %v5726_v2, %v629_v59  ;;  %v238_v44 = vld [vmem:[%s6590_s2 + $0x67c] sm:$0xf] }
 0x367   :  { %v1098_v37 = vmul.f32 %v5718_v0, %v626_v46  ;;  %v3128_v59 = vld [vmem:[%s6590_s2 + $0x638] sm:$0xff] }
 0x368   :  { %v2628_v1 = vpop.f32.mrf.mxu1  ;;  %v2910_v23 = vpop.f32.mrf.mxu0  ;;  %v1361_v12 = vpack.c.bf16 %v1114_v47, %v1101_v9  ;;  %v652_v29 = vunpack.c.h.bf16 %v3128_v59 }
 0x369   :  { %v2814_v45 = vpop.f32.mrf.mxu3  ;;  %v2629_v58 = vadd.f32 %v2628_v1, %v6640_v6  ;;  %v1358_v43 = vpack.c.bf16 %v1111_v28, %v1098_v37  ;;  %v668_v1 = vunpack.c.l.bf16 %v238_v44  ;;  %v1137_v37 = vmul.f32 %v5718_v0, %v665_v32  ;;  %v3131_v44 = vld [vmem:[%s6590_s2 + $0x6d4] sm:$0xff] }
 0x36a   :  { %v2815_v51 = vadd.f32 %v2814_v45, %v2721_v61  ;;  %v1360_v61 = vpack.c.bf16 %v1113_v56, %v1100_v36 }
 0x36b   :  { %2774 = vmatmul.bf16.gmra.mxu2 %v1385_v57  ;;  %v654_v57 = vunpack.c.h.bf16 %v6337_v33  ;;  %v1140_v9 = vmul.f32 %v5726_v2, %v668_v1  ;;  %v680_v1 = vunpack.c.h.bf16 %v6388_v22 }
 0x36c   :  { %v2909_v15 = vadd.f32 %v2908_v31, %v2815_v51  ;;  %v2723_v31 = vadd.f32 %v6302_v40, %v2629_v58  ;;  %v231_v40 = vld [vmem:[%s6590_s2 + $0x648] sm:$0xf]  ;;  %v1124_v58 = vmul.f32 %v5718_v0, %v652_v29 }
 0x36d   :  { %v655_v51 = vunpack.c.l.bf16 %v231_v40  ;;  %v1126_v33 = vmul.f32 %v5730_v16, %v654_v57  ;;  %v1152_v22 = vmul.f32 %v5730_v16, %v680_v1 }
 0x36e   :  { %2979 = vst.msk [vmem:[%s6592_s3 + $0x50] sm:$0xff] %vm2968_vm1, %v2909_v15  ;;  %v6424_v20 = vpop.f32.mrf.mxu2  ;;  %v1371_v56 = vpack.c.bf16 %v1137_v37, %v1124_v58 }
 0x36f   :  { %v1127_v28 = vmul.f32 %v5726_v2, %v655_v51 }
 0x370   :  { %v2631_v53 = vpop.f32.mrf.mxu1  ;;  %v2913_v63 = vpop.f32.mrf.mxu0 }
 0x371   :  { %v2816_v49 = vpop.f32.mrf.mxu3  ;;  %v2632_v46 = vadd.f32 %v2631_v53, %v5633_v42 }
 0x372   :  { %v2817_v24 = vadd.f32 %v2816_v49, %v2723_v31  ;;  %v1374_v31 = vpack.c.bf16 %v1140_v9, %v1127_v28 }
 0x373   :  { %2670 = vmatmul.bf16.gmra.mxu1 %v1358_v43  ;;  %3021 = vmatmul.msk.bf16.gmra.mxu0 %vm1694_vm0, %v1361_v12  ;;  %v2726_v42 = vadd.f32 %v6320_v41, %v2632_v46  ;;  %v667_v41 = vunpack.c.h.bf16 %v6342_v27  ;;  %v3130_v46 = vld [vmem:[%s6590_s2 + $0x6a0] sm:$0xff] }
 0x374   :  { %v2911_v19 = vadd.f32 %v2910_v23, %v2817_v24  ;;  %v678_v40 = vunpack.c.h.bf16 %v3130_v46 }
 0x375   :  { %v1139_v27 = vmul.f32 %v5730_v16, %v667_v41 }
 0x376   :  { %2980 = vst.msk [vmem:[%s6592_s3 + $0x58] sm:$0xff] %vm2968_vm1, %v2911_v19  ;;  %2858 = vmatmul.bf16.gmra.mxu3 %v1360_v61  ;;  %v6456_v47 = vpop.f32.mrf.mxu2  ;;  %v252_v61 = vld [vmem:[%s6590_s2 + $0x6e4] sm:$0xf] }
 0x377   :  { %v1373_v24 = vpack.c.bf16 %v1139_v27, %v1126_v33  ;;  %v694_v59 = vunpack.c.l.bf16 %v252_v61 }
 0x378   :  { %v2633_v3 = vpop.f32.mrf.mxu1  ;;  %v2915_v62 = vpop.f32.mrf.mxu0 }
 0x379   :  { %v2819_v45 = vpop.f32.mrf.mxu3  ;;  %v2634_v6 = vadd.f32 %v2633_v3, %v5644_v14 }
 0x37a   :  { %v2820_v23 = vadd.f32 %v2819_v45, %v2726_v42  ;;  %v691_v42 = vunpack.c.h.bf16 %v3131_v44 }
 0x37b   :  { %v2728_v14 = vadd.f32 %v6353_v21, %v2634_v6  ;;  %v245_v21 = vld [vmem:[%s6590_s2 + $0x6b0] sm:$0xf] }
 0x37c   :  { %v2914_v15 = vadd.f32 %v2913_v63, %v2820_v23  ;;  %v681_v45 = vunpack.c.l.bf16 %v245_v21  ;;  %v1163_v57 = vmul.f32 %v5718_v0, %v691_v42 }
 0x37e   :  { %2981 = vst.msk [vmem:[%s6592_s3 + $0x60] sm:$0xff] %vm2968_vm1, %v2914_v15  ;;  %v2740_v29 = vpop.f32.mrf.mxu2  ;;  %v1153_v41 = vmul.f32 %v5726_v2, %v681_v45  ;;  %v1166_v15 = vmul.f32 %v5726_v2, %v694_v59 }
 0x380   :  { %v2636_v43 = vpop.f32.mrf.mxu1  ;;  %v2918_v12 = vpop.f32.mrf.mxu0  ;;  %v1387_v37 = vpack.c.bf16 %v1166_v15, %v1153_v41 }
 0x381   :  { %v2821_v36 = vpop.f32.mrf.mxu3  ;;  %v2637_v63 = vadd.f32 %v2636_v43, %v5679_v30 }
 0x382   :  { %v2822_v49 = vadd.f32 %v2821_v36, %v2728_v14 }
 0x383   :  { %2675 = vmatmul.bf16.gmra.mxu1 %v1371_v56  ;;  %3022 = vmatmul.msk.bf16.gmra.mxu0 %vm1694_vm0, %v1374_v31  ;;  %v2731_v19 = vadd.f32 %v6371_v52, %v2637_v63  ;;  %v693_v52 = vunpack.c.h.bf16 %v6393_v8 }
 0x384   :  { %v2916_v53 = vadd.f32 %v2915_v62, %v2822_v49  ;;  %v1150_v62 = vmul.f32 %v5718_v0, %v678_v40 }
 0x385   :  { %v1165_v8 = vmul.f32 %v5730_v16, %v693_v52 }
 0x386   :  { %2982 = vst.msk [vmem:[%s6592_s3 + $0x68] sm:$0xff] %vm2968_vm1, %v2916_v53  ;;  %2863 = vmatmul.bf16.gmra.mxu3 %v1373_v24  ;;  %v1384_v58 = vpack.c.bf16 %v1163_v57, %v1150_v62  ;;  %v2742_v27 = vpop.f32.mrf.mxu2 }
 0x387   :  { %v1386_v33 = vpack.c.bf16 %v1165_v8, %v1152_v22 }
 0x388   :  { %v2638_v32 = vpop.f32.mrf.mxu1  ;;  %v2920_v51 = vpop.f32.mrf.mxu0 }
 0x389   :  { %v2824_v30 = vpop.f32.mrf.mxu3  ;;  %v2639_v3 = vadd.f32 %v2638_v32, %v5690_v18 }
 0x38a   :  { %v2825_v54 = vadd.f32 %v2824_v30, %v2731_v19 }
 0x38b   :  { %v2733_v6 = vadd.f32 %v6408_v34, %v2639_v3 }
 0x38c   :  { %v2919_v23 = vadd.f32 %v2918_v12, %v2825_v54 }
 0x38e   :  { %2983 = vst.msk [vmem:[%s6592_s3 + $0x70] sm:$0xff] %vm2968_vm1, %v2919_v23  ;;  %v2745_v12 = vpop.f32.mrf.mxu2 }
 0x390   :  { %v2641_v0 = vpop.f32.mrf.mxu1  ;;  %v2923_v9 = vpop.f32.mrf.mxu0 }
 0x391   :  { %v2826_v18 = vpop.f32.mrf.mxu3  ;;  %v2642_v14 = vadd.f32 %v2641_v0, %v5734_v5 }
 0x392   :  { %v2827_v28 = vadd.f32 %v2826_v18, %v2733_v6 }
 0x393   :  { %2680 = vmatmul.bf16.gmra.mxu1 %v1384_v58  ;;  %3023 = vmatmul.msk.bf16.gmra.mxu0 %vm1694_vm0, %v1387_v37  ;;  %v2736_v16 = vadd.f32 %v6424_v20, %v2642_v14 }
 0x394   :  { %v2921_v2 = vadd.f32 %v2920_v51, %v2827_v28 }
 0x396   :  { %2984 = vst.msk [vmem:[%s6592_s3 + $0x78] sm:$0xff] %vm2968_vm1, %v2921_v2  ;;  %2868 = vmatmul.bf16.gmra.mxu3 %v1386_v33 }
 0x398   :  { %v2643_v56 = vpop.f32.mrf.mxu1  ;;  %v2925_v31 = vpop.f32.mrf.mxu0 }
 0x399   :  { %v2829_v34 = vpop.f32.mrf.mxu3  ;;  %v2644_v43 = vadd.f32 %v2643_v56, %v5745_v10  ;;  %v2747_v10 = vpop.f32.mrf.mxu2 }
 0x39a   :  { %v2830_v36 = vadd.f32 %v2829_v34, %v2736_v16 }
 0x39b   :  { %v2738_v5 = vadd.f32 %v6456_v47, %v2644_v43 }
 0x39c   :  { %v2924_v49 = vadd.f32 %v2923_v9, %v2830_v36 }
 0x39e   :  { %2985 = vst.msk [vmem:[%s6592_s3 + $0x80] sm:$0xff] %vm2968_vm1, %v2924_v49 }
 0x3a0   :  { %v2646_v63 = vpop.f32.mrf.mxu1  ;;  %v2928_v21 = vpop.f32.mrf.mxu0 }
 0x3a1   :  { %v2831_v24 = vpop.f32.mrf.mxu3  ;;  %v2647_v61 = vadd.f32 %v2646_v63, %v5781_v17  ;;  %v2750_v59 = vpop.f32.mrf.mxu2 }
 0x3a2   :  { %v2832_v53 = vadd.f32 %v2831_v24, %v2738_v5 }
 0x3a3   :  { %v2741_v19 = vadd.f32 %v2740_v29, %v2647_v61 }
 0x3a4   :  { %v2926_v20 = vadd.f32 %v2925_v31, %v2832_v53 }
 0x3a6   :  { %2986 = vst.msk [vmem:[%s6592_s3 + $0x88] sm:$0xff] %vm2968_vm1, %v2926_v20 }
 0x3a8   :  { %v2648_v40 = vpop.f32.mrf.mxu1  ;;  %v2930_v44 = vpop.f32.mrf.mxu0 }
 0x3a9   :  { %v2834_v30 = vpop.f32.mrf.mxu3  ;;  %v2649_v47 = vadd.f32 %v2648_v40, %v5792_v60  ;;  %v2752_v57 = vpop.f32.mrf.mxu2 }
 0x3aa   :  { %v2835_v46 = vadd.f32 %v2834_v30, %v2741_v19 }
 0x3ab   :  { %v2743_v17 = vadd.f32 %v2742_v27, %v2649_v47 }
 0x3ac   :  { %v2929_v42 = vadd.f32 %v2928_v21, %v2835_v46 }
 0x3ae   :  { %2987 = vst.msk [vmem:[%s6592_s3 + $0x90] sm:$0xff] %vm2968_vm1, %v2929_v42 }
 0x3b0   :  { %v2651_v32 = vpop.f32.mrf.mxu1  ;;  %v2933_v51 = vpop.f32.mrf.mxu0 }
 0x3b1   :  { %v2836_v45 = vpop.f32.mrf.mxu3  ;;  %v2652_v29 = vadd.f32 %v2651_v32, %v5828_v13  ;;  %v2755_v28 = vpop.f32.mrf.mxu2 }
 0x3b2   :  { %v2837_v54 = vadd.f32 %v2836_v45, %v2743_v17 }
 0x3b3   :  { %v2746_v60 = vadd.f32 %v2745_v12, %v2652_v29 }
 0x3b4   :  { %v2931_v1 = vadd.f32 %v2930_v44, %v2837_v54 }
 0x3b6   :  { %2988 = vst.msk [vmem:[%s6592_s3 + $0x98] sm:$0xff] %vm2968_vm1, %v2931_v1 }
 0x3b8   :  { %v2653_v3 = vpop.f32.mrf.mxu1  ;;  %v2935_v62 = vpop.f32.mrf.mxu0 }
 0x3b9   :  { %v2839_v52 = vpop.f32.mrf.mxu3  ;;  %v2654_v15 = vadd.f32 %v2653_v3, %v5839_v55 }
 0x3ba   :  { %v2840_v23 = vadd.f32 %v2839_v52, %v2746_v60 }
 0x3bb   :  { %v2748_v13 = vadd.f32 %v2747_v10, %v2654_v15 }
 0x3bc   :  { %v2934_v41 = vadd.f32 %v2933_v51, %v2840_v23  ;;  %v6641_v23 = vld [vmem:[#allocation9_spill] sm:$0xff] }
 0x3be   :  { %2989 = vst.msk [vmem:[%s6592_s3 + $0xa0] sm:$0xff] %vm2968_vm1, %v2934_v41 }
 0x3c0   :  { %v2656_v6 = vpop.f32.mrf.mxu1  ;;  %v2938_v18 = vpop.f32.mrf.mxu0 }
 0x3c1   :  { %v2841_v22 = vpop.f32.mrf.mxu3  ;;  %v2657_v37 = vadd.f32 %v2656_v6, %v5875_v7  ;;  %v2757_v7 = vpop.f32.mrf.mxu2 }
 0x3c2   :  { %v2842_v8 = vadd.f32 %v2841_v22, %v2748_v13 }
 0x3c3   :  { %v2751_v55 = vadd.f32 %v2750_v59, %v2657_v37 }
 0x3c4   :  { %v2936_v58 = vadd.f32 %v2935_v62, %v2842_v8  ;;  %v6642_v8 = vld [vmem:[#allocation10_spill] sm:$0xff] }
 0x3c6   :  { %2990 = vst.msk [vmem:[%s6592_s3 + $0xa8] sm:$0xff] %vm2968_vm1, %v2936_v58 }
 0x3c8   :  { %v2658_v33 = vpop.f32.mrf.mxu1  ;;  %v2940_v27 = vpop.f32.mrf.mxu0 }
 0x3c9   :  { %v2844_v0 = vpop.f32.mrf.mxu3  ;;  %v2659_v14 = vadd.f32 %v2658_v33, %v5886_v38  ;;  %v2760_v5 = vpop.f32.mrf.mxu2 }
 0x3ca   :  { %v2845_v9 = vadd.f32 %v2844_v0, %v2751_v55 }
 0x3cb   :  { %v2753_v16 = vadd.f32 %v2752_v57, %v2659_v14 }
 0x3cc   :  { %v2939_v2 = vadd.f32 %v2938_v18, %v2845_v9 }
 0x3ce   :  { %2991 = vst.msk [vmem:[%s6592_s3 + $0xb0] sm:$0xff] %vm2968_vm1, %v2939_v2 }
 0x3d0   :  { %v2661_v56 = vpop.f32.mrf.mxu1  ;;  %v2943_v31 = vpop.f32.mrf.mxu0 }
 0x3d1   :  { %v2846_v34 = vpop.f32.mrf.mxu3  ;;  %v2662_v43 = vadd.f32 %v2661_v56, %v5922_v48  ;;  %v2762_v46 = vpop.f32.mrf.mxu2 }
 0x3d2   :  { %v2847_v36 = vadd.f32 %v2846_v34, %v2753_v16 }
 0x3d3   :  { %v2756_v38 = vadd.f32 %v2755_v28, %v2662_v43 }
 0x3d4   :  { %v2941_v49 = vadd.f32 %v2940_v27, %v2847_v36 }
 0x3d6   :  { %2992 = vst.msk [vmem:[%s6592_s3 + $0xb8] sm:$0xff] %vm2968_vm1, %v2941_v49 }
 0x3d8   :  { %v2663_v53 = vpop.f32.mrf.mxu1  ;;  %v2945_v63 = vpop.f32.mrf.mxu0 }
 0x3d9   :  { %v2849_v12 = vpop.f32.mrf.mxu3  ;;  %v2664_v20 = vadd.f32 %v2663_v53, %v5933_v25  ;;  %v2765_v32 = vpop.f32.mrf.mxu2 }
 0x3da   :  { %v2850_v24 = vadd.f32 %v2849_v12, %v2756_v38 }
 0x3db   :  { %v2758_v48 = vadd.f32 %v2757_v7, %v2664_v20 }
 0x3dc   :  { %v2944_v21 = vadd.f32 %v2943_v31, %v2850_v24 }
 0x3de   :  { %2993 = vst.msk [vmem:[%s6592_s3 + $0xc0] sm:$0xff] %vm2968_vm1, %v2944_v21 }
 0x3e0   :  { %v2666_v19 = vpop.f32.mrf.mxu1  ;;  %v2948_v30 = vpop.f32.mrf.mxu0 }
 0x3e1   :  { %v2851_v61 = vpop.f32.mrf.mxu3  ;;  %v2667_v44 = vadd.f32 %v2666_v19, %v5969_v39 }
 0x3e2   :  { %v2852_v10 = vadd.f32 %v2851_v61, %v2758_v48 }
 0x3e3   :  { %v2761_v25 = vadd.f32 %v2760_v5, %v2667_v44 }
 0x3e4   :  { %v2946_v40 = vadd.f32 %v2945_v63, %v2852_v10 }
 0x3e6   :  { %2994 = vst.msk [vmem:[%s6592_s3 + $0xc8] sm:$0xff] %vm2968_vm1, %v2946_v40 }
 0x3e8   :  { %v2668_v17 = vpop.f32.mrf.mxu1  ;;  %v2950_v45 = vpop.f32.mrf.mxu0 }
 0x3e9   :  { %v2854_v42 = vpop.f32.mrf.mxu3  ;;  %v2669_v54 = vadd.f32 %v2668_v17, %v5980_v50  ;;  %v2767_v50 = vpop.f32.mrf.mxu2 }
 0x3ea   :  { %v2855_v47 = vadd.f32 %v2854_v42, %v2761_v25 }
 0x3eb   :  { %v2763_v39 = vadd.f32 %v2762_v46, %v2669_v54 }
 0x3ec   :  { %v2949_v59 = vadd.f32 %v2948_v30, %v2855_v47 }
 0x3ee   :  { %2995 = vst.msk [vmem:[%s6592_s3 + $0xd0] sm:$0xff] %vm2968_vm1, %v2949_v59 }
 0x3f0   :  { %v2671_v29 = vpop.f32.mrf.mxu1  ;;  %v2953_v60 = vpop.f32.mrf.mxu0 }
 0x3f1   :  { %v2856_v51 = vpop.f32.mrf.mxu3  ;;  %v2672_v3 = vadd.f32 %v2671_v29, %v6641_v23  ;;  %v2770_v58 = vpop.f32.mrf.mxu2 }
 0x3f2   :  { %v2857_v1 = vadd.f32 %v2856_v51, %v2763_v39 }
 0x3f3   :  { %v2766_v62 = vadd.f32 %v2765_v32, %v2672_v3 }
 0x3f4   :  { %v2951_v52 = vadd.f32 %v2950_v45, %v2857_v1 }
 0x3f6   :  { %2996 = vst.msk [vmem:[%s6592_s3 + $0xd8] sm:$0xff] %vm2968_vm1, %v2951_v52 }
 0x3f8   :  { %v2673_v15 = vpop.f32.mrf.mxu1  ;;  %v2955_v13 = vpop.f32.mrf.mxu0 }
 0x3f9   :  { %v2859_v57 = vpop.f32.mrf.mxu3  ;;  %v2674_v6 = vadd.f32 %v2673_v15, %v6642_v8  ;;  %v2772_v16 = vpop.f32.mrf.mxu2 }
 0x3fa   :  { %v2860_v41 = vadd.f32 %v2859_v57, %v2766_v62 }
 0x3fb   :  { %v2768_v18 = vadd.f32 %v2767_v50, %v2674_v6 }
 0x3fc   :  { %v2954_v22 = vadd.f32 %v2953_v60, %v2860_v41 }
 0x3fe   :  { %2997 = vst.msk [vmem:[%s6592_s3 + $0xe0] sm:$0xff] %vm2968_vm1, %v2954_v22 }
 0x400   :  { %v2676_v55 = vpop.f32.mrf.mxu1  ;;  %v2958_v33 = vpop.f32.mrf.mxu0 }
 0x401   :  { %v2861_v37 = vpop.f32.mrf.mxu3  ;;  %v2677_v9 = vadd.f32 %v2676_v55, %v6063_v4  ;;  %v2775_v5 = vpop.f32.mrf.mxu2 }
 0x402   :  { %v2862_v28 = vadd.f32 %v2861_v37, %v2768_v18 }
 0x403   :  { %v2771_v27 = vadd.f32 %v2770_v58, %v2677_v9 }
 0x404   :  { %v2956_v0 = vadd.f32 %v2955_v13, %v2862_v28 }
 0x406   :  { %2998 = vst.msk [vmem:[%s6592_s3 + $0xe8] sm:$0xff] %vm2968_vm1, %v2956_v0 }
 0x408   :  { %v2678_v7 = vpop.f32.mrf.mxu1  ;;  %v2960_v4 = vpop.f32.mrf.mxu0 }
 0x409   :  { %v2864_v2 = vpop.f32.mrf.mxu3  ;;  %v2679_v36 = vadd.f32 %v2678_v7, %v6074_v11 }
 0x40a   :  { %v2865_v14 = vadd.f32 %v2864_v2, %v2771_v27 }
 0x40b   :  { %v2773_v56 = vadd.f32 %v2772_v16, %v2679_v36 }
 0x40c   :  { %v2959_v34 = vadd.f32 %v2958_v33, %v2865_v14 }
 0x40e   :  { %2999 = vst.msk [vmem:[%s6592_s3 + $0xf0] sm:$0xff] %vm2968_vm1, %v2959_v34 }
 0x410   :  { %v2681_v43 = vpop.f32.mrf.mxu1  ;;  %v2963_v24 = vpop.f32.mrf.mxu0 }
 0x411   :  { %v2866_v31 = vpop.f32.mrf.mxu3  ;;  %v2682_v12 = vadd.f32 %v2681_v43, %v6110_v26  ;;  %v2777_v26 = vpop.f32.mrf.mxu2 }
 0x412   :  { %v2867_v49 = vadd.f32 %v2866_v31, %v2773_v56 }
 0x413   :  { %v2776_v11 = vadd.f32 %v2775_v5, %v2682_v12 }
 0x414   :  { %v2961_v38 = vadd.f32 %v2960_v4, %v2867_v49 }
 0x416   :  { %3000 = vst.msk [vmem:[%s6592_s3 + $0xf8] sm:$0xff] %vm2968_vm1, %v2961_v38 }
 0x418   :  { %v2683_v21 = vpop.f32.mrf.mxu1  ;;  %v2965_v30 = vpop.f32.mrf.mxu0 }
 0x419   :  { %v2869_v53 = vpop.f32.mrf.mxu3  ;;  %v2684_v48 = vadd.f32 %v2683_v21, %v6121_v35 }
 0x41a   :  { %v2870_v63 = vadd.f32 %v2869_v53, %v2776_v11 }
 0x41b   :  { %v2778_v61 = vadd.f32 %v2777_v26, %v2684_v48 }
 0x41c   :  { %v2964_v20 = vadd.f32 %v2963_v24, %v2870_v63 }
 0x41e   :  { %3001 = vst.msk [vmem:[%s6592_s3 + $0x100] sm:$0xff] %vm2968_vm1, %v2964_v20 }
 0x421   :  { %v2871_v10 = vpop.f32.mrf.mxu3 }
 0x422   :  { %v2872_v19 = vadd.f32 %v2871_v10, %v2778_v61 }
 0x424   :  { %v2966_v46 = vadd.f32 %v2965_v30, %v2872_v19 }
 0x426   :  { %3002 = vst.msk [vmem:[%s6592_s3 + $0x108] sm:$0xff] %vm2968_vm1, %v2966_v46 }

</bundles_post_ra>
